<compile_context>
chip_gen: v7x
topology: tpu7x:2x2x1
jax: 0.10.0
libtpu: 0.0.40
codegen_flags: <defaults>
</compile_context>

<pallas_src>
import functools
import math

import jax
import jax.numpy as jnp
from jax import lax
from jax.experimental import pallas as pl
from jax.experimental.pallas import tpu as pltpu


def _round_up(x, m):
    return ((x + m - 1) // m) * m


# ---------------------------------------------------------------------------
# Kernel
# ---------------------------------------------------------------------------
def _lstm_fused_kernel(x_ref, wih_ref, whh_ref, b_ref, h0_ref, c0_ref,
                       out_ref, gx_scr, h_scr, c_scr, *, T, Bp, Hp, L):
    """Fused multi-layer LSTM.

    x_ref:   (T*Bp, Hp)      padded input sequence (feature dim padded to Hp)
    wih_ref: (L, Hp, 4Hp)    pre-transposed, per-gate zero-padded W_ih
    whh_ref: (L, Hp, 4Hp)    pre-transposed, per-gate zero-padded W_hh
    b_ref:   (L, 1, 4Hp)     b_ih + b_hh (per-gate zero-padded)
    h0_ref:  (L, Bp, Hp)     initial hidden states
    c0_ref:  (L, Bp, Hp)     initial cell states
    out_ref: (T*Bp, Hp)      output slab; also the inter-layer activation slab
    gx_scr:  (T*Bp, 4Hp)     hoisted input-projection scratch
    h_scr/c_scr: (Bp, Hp)    recurrent state
    """
    # out_ref doubles as the activation slab: seeded with the padded input,
    # overwritten layer by layer with that layer's hidden states, and DMA'd
    # back to HBM once at the end (last dim Hp is a multiple of 128 lanes).
    out_ref[...] = x_ref[...]

    unroll = T <= 16

    for layer in range(L):          # static python loop, L is small
        # ---- Hoisted input projection: one big MXU matmul per layer. ----
        gx_scr[...] = (
            jnp.dot(out_ref[...], wih_ref[layer],
                    preferred_element_type=jnp.float32)
            + b_ref[layer]
        )

        h_scr[...] = h0_ref[layer]
        c_scr[...] = c0_ref[layer]

        # ---- Sequential recurrence: only h @ W_hh^T per step. ----
        # TODO(synk): for large H, hold W_hh in MXU weight regs across steps
        # via pltpu.matmul_push_rhs / matmul_acc_lhs (and cast weights to bf16).
        def step(t, carry, layer=layer):
            h = h_scr[...]                       # (Bp, Hp) f32
            c = c_scr[...]                       # (Bp, Hp) f32
            row = pl.multiple_of(t * Bp, Bp)     # sublane-aligned row offset
            gates = gx_scr[pl.ds(row, Bp), :] + jnp.dot(
                h, whh_ref[layer], preferred_element_type=jnp.float32)
            # Gate order (i, f, g, o); each slice is a full 128-lane block.
            i_g = jax.nn.sigmoid(gates[:, 0 * Hp:1 * Hp])
            f_g = jax.nn.sigmoid(gates[:, 1 * Hp:2 * Hp])
            g_g = jnp.tanh(gates[:, 2 * Hp:3 * Hp])
            o_g = jax.nn.sigmoid(gates[:, 3 * Hp:4 * Hp])
            c_new = f_g * c + i_g * g_g
            h_new = o_g * jnp.tanh(c_new)
            h_scr[...] = h_new
            c_scr[...] = c_new
            out_ref[pl.ds(row, Bp), :] = h_new   # next layer's input / output
            return carry

        lax.fori_loop(0, T, step, 0, unroll=unroll)


# ---------------------------------------------------------------------------
# Wrapper (padding / weight layout glue + pallas_call)
# ---------------------------------------------------------------------------
def _pad_gate_mat(w, h, hp, d, dp):
    """PyTorch-layout gate matrix (4h, d) -> transposed (dp, 4hp), each of the
    four gate blocks zero-padded from h->hp rows and d->dp columns."""
    w4 = w.reshape(4, h, d)
    w4 = jnp.pad(w4, ((0, 0), (0, hp - h), (0, dp - d)))
    return jnp.transpose(w4.reshape(4 * hp, dp))        # (dp, 4hp)


def _pad_gate_bias(b_ih, b_hh, h, hp):
    b4 = (b_ih + b_hh).reshape(4, h)
    b4 = jnp.pad(b4, ((0, 0), (0, hp - h)))
    return b4.reshape(1, 4 * hp)


def lstm_forward(x, params, h0, c0):
    """Multi-layer LSTM forward; returns the last layer's hidden states.

    x: (T, B, D_in); params[l]: w_ih (4H, D_l), w_hh (4H, H), b_ih, b_hh (4H,)
    in PyTorch gate order (i, f, g, o); h0/c0: (L, B, H).
    Returns out: (T, B, H) float32.
    """
    T, B, D_in = x.shape
    L = len(params)
    H = params[0]["w_hh"].shape[1]

    Bp = _round_up(B, 8)                       # f32 sublane tile
    Hp = _round_up(max(H, D_in), 128)          # lane tile; uniform feature dim

    f32 = jnp.float32
    # TODO(synk): cast weights to bf16 (keep f32 accumulate) once H grows
    # beyond toy sizes; also time-chunk the grid if T*Bp*4Hp stops fitting VMEM.
    wih = jnp.stack([
        _pad_gate_mat(p["w_ih"].astype(f32), H, Hp, p["w_ih"].shape[1], Hp)
        for p in params])                                   # (L, Hp, 4Hp)
    whh = jnp.stack([
        _pad_gate_mat(p["w_hh"].astype(f32), H, Hp, H, Hp)
        for p in params])                                   # (L, Hp, 4Hp)
    b = jnp.stack([
        _pad_gate_bias(p["b_ih"].astype(f32), p["b_hh"].astype(f32), H, Hp)
        for p in params])                                   # (L, 1, 4Hp)

    x_p = jnp.pad(x.astype(f32), ((0, 0), (0, Bp - B), (0, Hp - D_in)))
    x2d = x_p.reshape(T * Bp, Hp)
    h0_p = jnp.pad(h0.astype(f32), ((0, 0), (0, Bp - B), (0, Hp - H)))
    c0_p = jnp.pad(c0.astype(f32), ((0, 0), (0, Bp - B), (0, Hp - H)))

    kernel = functools.partial(_lstm_fused_kernel, T=T, Bp=Bp, Hp=Hp, L=L)

    out2d = pl.pallas_call(
        kernel,
        out_shape=jax.ShapeDtypeStruct((T * Bp, Hp), f32),
        grid_spec=pltpu.PrefetchScalarGridSpec(
            num_scalar_prefetch=0,
            grid=(1,),
            in_specs=[
                pl.BlockSpec((T * Bp, Hp), lambda i: (0, 0)),        # x (flat)
                pl.BlockSpec((L, Hp, 4 * Hp), lambda i: (0, 0, 0)),  # W_ih^T
                pl.BlockSpec((L, Hp, 4 * Hp), lambda i: (0, 0, 0)),  # W_hh^T
                pl.BlockSpec((L, 1, 4 * Hp), lambda i: (0, 0, 0)),   # bias
                pl.BlockSpec((L, Bp, Hp), lambda i: (0, 0, 0)),      # h0
                pl.BlockSpec((L, Bp, Hp), lambda i: (0, 0, 0)),      # c0
            ],
            out_specs=pl.BlockSpec((T * Bp, Hp), lambda i: (0, 0)),
            scratch_shapes=[
                pltpu.VMEM((T * Bp, 4 * Hp), f32),   # hoisted x-projection
                pltpu.VMEM((Bp, Hp), f32),           # h state
                pltpu.VMEM((Bp, Hp), f32),           # c state
            ],
        ),
        compiler_params=pltpu.CompilerParams(
            dimension_semantics=("arbitrary",),      # single recurrent "step"
        ),
    )(x2d, wih, whh, b, h0_p, c0_p)

    return out2d.reshape(T, Bp, Hp)[:, :B, :H]


# ---------------------------------------------------------------------------
# Parameter init (matches nn.LSTM shapes: U(-1/sqrt(H), 1/sqrt(H)))
# ---------------------------------------------------------------------------
def init_lstm_params(key, input_dims, hidden_dims, layers):
    k = 1.0 / math.sqrt(hidden_dims)
    params = []
    for layer in range(layers):
        d_in = input_dims if layer == 0 else hidden_dims
        key, k1, k2, k3, k4 = jax.random.split(key, 5)
        params.append({
            "w_ih": jax.random.uniform(k1, (4 * hidden_dims, d_in),
                                       jnp.float32, -k, k),
            "w_hh": jax.random.uniform(k2, (4 * hidden_dims, hidden_dims),
                                       jnp.float32, -k, k),
            "b_ih": jax.random.uniform(k3, (4 * hidden_dims,),
                                       jnp.float32, -k, k),
            "b_hh": jax.random.uniform(k4, (4 * hidden_dims,),
                                       jnp.float32, -k, k),
        })
    return params


# ---------------------------------------------------------------------------
# Pure-JAX reference (for a loose numerical self-check)
# ---------------------------------------------------------------------------
def lstm_reference(x, params, h0, c0):
    out = x
    for l, p in enumerate(params):
        w_ih, w_hh = p["w_ih"], p["w_hh"]
        bias = p["b_ih"] + p["b_hh"]
        H = w_hh.shape[1]

        def step(carry, x_t, w_ih=w_ih, w_hh=w_hh, bias=bias, H=H):
            h, c = carry
            gates = x_t @ w_ih.T + h @ w_hh.T + bias
            i = jax.nn.sigmoid(gates[:, 0 * H:1 * H])
            f = jax.nn.sigmoid(gates[:, 1 * H:2 * H])
            g = jnp.tanh(gates[:, 2 * H:3 * H])
            o = jax.nn.sigmoid(gates[:, 3 * H:4 * H])
            c = f * c + i * g
            h = o * jnp.tanh(c)
            return (h, c), h

        (_, _), out = lax.scan(step, (h0[l], c0[l]), out)
    return out


if __name__ == "__main__":
    # Module hyperparameters (small, consistent with the torch module).
    input_dims = 4
    hidden_dims = 32
    batch_size = 2
    layers = 2
    seq_len = 8

    key = jax.random.PRNGKey(0)
    k_x, k_h0, k_c0, k_params = jax.random.split(key, 4)

    # layout: x is (seq_len, batch, input_dims) -- PyTorch default (batch_first=False)
    x = jax.random.normal(k_x, (seq_len, batch_size, input_dims), jnp.float32)
    h0 = jax.random.normal(k_h0, (layers, batch_size, hidden_dims), jnp.float32)
    c0 = jax.random.normal(k_c0, (layers, batch_size, hidden_dims), jnp.float32)

    params = init_lstm_params(k_params, input_dims, hidden_dims, layers)

    out = lstm_forward(x, params, h0, c0)
    out = jax.block_until_ready(out)

    assert out.shape == (seq_len, batch_size, hidden_dims)
    assert bool(jnp.all(jnp.isfinite(out)))

    ref = lstm_reference(x, params, h0, c0)
    max_diff = float(jnp.max(jnp.abs(out - ref)))
    assert max_diff < 5e-2, f"mismatch vs reference: {max_diff}"

    print("KERNEL_OK")
</pallas_src>

<mosaic_0001>
module attributes {stable_mosaic.version = 11 : i64} {
  func.func @_lstm_fused_kernel(%arg0: i32, %arg1: memref<64x128xf32, #tpu.memory_space<vmem>>, %arg2: memref<2x128x512xf32, #tpu.memory_space<vmem>>, %arg3: memref<2x128x512xf32, #tpu.memory_space<vmem>>, %arg4: memref<2x1x512xf32, #tpu.memory_space<vmem>>, %arg5: memref<2x8x128xf32, #tpu.memory_space<vmem>>, %arg6: memref<2x8x128xf32, #tpu.memory_space<vmem>>, %arg7: memref<64x128xf32, #tpu.memory_space<vmem>>, %arg8: memref<64x512xf32, #tpu.memory_space<vmem>>, %arg9: memref<8x128xf32, #tpu.memory_space<vmem>>, %arg10: memref<8x128xf32, #tpu.memory_space<vmem>>) attributes {dimension_semantics = [#tpu.dimension_semantics<arbitrary>], iteration_bounds = array<i64: 1>, scalar_prefetch = 0 : i64, scratch_operands = 3 : i64, tpu.core_type = #tpu.core_type<tc>, window_params = [{pipeline_mode = #tpu.pipeline_mode<synchronous>, transform_indices = @transform_0, window_bounds = array<i64: 64, 128>}, {pipeline_mode = #tpu.pipeline_mode<synchronous>, transform_indices = @transform_1, window_bounds = array<i64: 2, 128, 512>}, {pipeline_mode = #tpu.pipeline_mode<synchronous>, transform_indices = @transform_2, window_bounds = array<i64: 2, 128, 512>}, {pipeline_mode = #tpu.pipeline_mode<synchronous>, transform_indices = @transform_3, window_bounds = array<i64: 2, 1, 512>}, {pipeline_mode = #tpu.pipeline_mode<synchronous>, transform_indices = @transform_4, window_bounds = array<i64: 2, 8, 128>}, {pipeline_mode = #tpu.pipeline_mode<synchronous>, transform_indices = @transform_5, window_bounds = array<i64: 2, 8, 128>}, {pipeline_mode = #tpu.pipeline_mode<synchronous>, transform_indices = @transform_6, window_bounds = array<i64: 64, 128>}]} {
    %c0 = arith.constant 0 : index
    %c0_0 = arith.constant 0 : index
    %0 = vector.load %arg1[%c0, %c0_0] : memref<64x128xf32, #tpu.memory_space<vmem>>, vector<64x128xf32>
    %c0_1 = arith.constant 0 : index
    %c0_2 = arith.constant 0 : index
    %1 = vector.load %arg7[%c0_1, %c0_2] : memref<64x128xf32, #tpu.memory_space<vmem>>, vector<64x128xf32>
    tpu.vector_store %arg7[%c0_1, %c0_2], %0 {strides = array<i32>} : memref<64x128xf32, #tpu.memory_space<vmem>>, vector<64x128xf32>,
    %c0_3 = arith.constant 0 : index
    %c0_4 = arith.constant 0 : index
    %2 = vector.load %arg7[%c0_3, %c0_4] : memref<64x128xf32, #tpu.memory_space<vmem>>, vector<64x128xf32>
    %c0_5 = arith.constant 0 : index
    %c0_6 = arith.constant 0 : index
    %c0_7 = arith.constant 0 : index
    %3 = vector.load %arg2[%c0_5, %c0_6, %c0_7] : memref<2x128x512xf32, #tpu.memory_space<vmem>>, vector<1x128x512xf32>
    %4 = vector.shape_cast %3 : vector<1x128x512xf32> to vector<128x512xf32>
    %cst = arith.constant dense<0.000000e+00> : vector<64x512xf32>
    %5 = tpu.matmul %2, %4, %cst {dimension_numbers = #tpu.dot_dimension_numbers<[1], [0], [0], [1], [0, 0, 1, 1], [], []>} : vector<64x128xf32>, vector<128x512xf32>, vector<64x512xf32> -> vector<64x512xf32>
    %c0_8 = arith.constant 0 : index
    %c0_9 = arith.constant 0 : index
    %c0_10 = arith.constant 0 : index
    %6 = vector.load %arg4[%c0_8, %c0_9, %c0_10] : memref<2x1x512xf32, #tpu.memory_space<vmem>>, vector<1x1x512xf32>
    %7 = vector.shape_cast %6 : vector<1x1x512xf32> to vector<1x512xf32>
    %8 = vector.broadcast %7 : vector<1x512xf32> to vector<64x512xf32>
    %9 = arith.addf %5, %8 : vector<64x512xf32>
    %c0_11 = arith.constant 0 : index
    %c0_12 = arith.constant 0 : index
    %10 = vector.load %arg8[%c0_11, %c0_12] : memref<64x512xf32, #tpu.memory_space<vmem>>, vector<64x512xf32>
    tpu.vector_store %arg8[%c0_11, %c0_12], %9 {strides = array<i32>} : memref<64x512xf32, #tpu.memory_space<vmem>>, vector<64x512xf32>,
    %c0_13 = arith.constant 0 : index
    %c0_14 = arith.constant 0 : index
    %c0_15 = arith.constant 0 : index
    %11 = vector.load %arg5[%c0_13, %c0_14, %c0_15] : memref<2x8x128xf32, #tpu.memory_space<vmem>>, vector<1x8x128xf32>
    %12 = vector.shape_cast %11 : vector<1x8x128xf32> to vector<8x128xf32>
    %c0_16 = arith.constant 0 : index
    %c0_17 = arith.constant 0 : index
    %13 = vector.load %arg9[%c0_16, %c0_17] : memref<8x128xf32, #tpu.memory_space<vmem>>, vector<8x128xf32>
    tpu.vector_store %arg9[%c0_16, %c0_17], %12 {strides = array<i32>} : memref<8x128xf32, #tpu.memory_space<vmem>>, vector<8x128xf32>,
    %c0_18 = arith.constant 0 : index
    %c0_19 = arith.constant 0 : index
    %c0_20 = arith.constant 0 : index
    %14 = vector.load %arg6[%c0_18, %c0_19, %c0_20] : memref<2x8x128xf32, #tpu.memory_space<vmem>>, vector<1x8x128xf32>
    %15 = vector.shape_cast %14 : vector<1x8x128xf32> to vector<8x128xf32>
    %c0_21 = arith.constant 0 : index
    %c0_22 = arith.constant 0 : index
    %16 = vector.load %arg10[%c0_21, %c0_22] : memref<8x128xf32, #tpu.memory_space<vmem>>, vector<8x128xf32>
    tpu.vector_store %arg10[%c0_21, %c0_22], %15 {strides = array<i32>} : memref<8x128xf32, #tpu.memory_space<vmem>>, vector<8x128xf32>,
    %c0_i32 = arith.constant 0 : i32
    %c0_23 = arith.constant 0 : index
    %c0_24 = arith.constant 0 : index
    %17 = vector.load %arg9[%c0_23, %c0_24] : memref<8x128xf32, #tpu.memory_space<vmem>>, vector<8x128xf32>
    %c0_25 = arith.constant 0 : index
    %c0_26 = arith.constant 0 : index
    %18 = vector.load %arg10[%c0_25, %c0_26] : memref<8x128xf32, #tpu.memory_space<vmem>>, vector<8x128xf32>
    %c8_i32 = arith.constant 8 : i32
    %19 = arith.muli %c0_i32, %c8_i32 : i32
    %20 = tpu.assume_multiple %19, 8 : i32
    %21 = arith.index_cast %20 : i32 to index
    %c0_27 = arith.constant 0 : index
    %22 = vector.load %arg8[%21, %c0_27] : memref<64x512xf32, #tpu.memory_space<vmem>>, vector<8x512xf32>
    %c0_28 = arith.constant 0 : index
    %c0_29 = arith.constant 0 : index
    %c0_30 = arith.constant 0 : index
    %23 = vector.load %arg3[%c0_28, %c0_29, %c0_30] : memref<2x128x512xf32, #tpu.memory_space<vmem>>, vector<1x128x512xf32>
    %24 = vector.shape_cast %23 : vector<1x128x512xf32> to vector<128x512xf32>
    %cst_31 = arith.constant dense<0.000000e+00> : vector<8x512xf32>
    %25 = tpu.matmul %17, %24, %cst_31 {dimension_numbers = #tpu.dot_dimension_numbers<[1], [0], [0], [1], [0, 0, 1, 1], [], []>} : vector<8x128xf32>, vector<128x512xf32>, vector<8x512xf32> -> vector<8x512xf32>
    %26 = arith.addf %22, %25 : vector<8x512xf32>
    %27 = vector.extract_strided_slice %26 {offsets = [0, 0], sizes = [8, 128], strides = [1, 1]} : vector<8x512xf32> to vector<8x128xf32>
    %28 = arith.negf %27 : vector<8x128xf32>
    %29 = math.exp %28 : vector<8x128xf32>
    %cst_32 = arith.constant 1.000000e+00 : f32
    %30 = vector.broadcast %cst_32 : f32 to vector<8x128xf32>
    %31 = arith.addf %30, %29 : vector<8x128xf32>
    %32 = arith.divf %30, %31 : vector<8x128xf32>
    %33 = vector.extract_strided_slice %26 {offsets = [0, 128], sizes = [8, 128], strides = [1, 1]} : vector<8x512xf32> to vector<8x128xf32>
    %34 = arith.negf %33 : vector<8x128xf32>
    %35 = math.exp %34 : vector<8x128xf32>
    %cst_33 = arith.constant 1.000000e+00 : f32
    %36 = vector.broadcast %cst_33 : f32 to vector<8x128xf32>
    %37 = arith.addf %36, %35 : vector<8x128xf32>
    %38 = arith.divf %36, %37 : vector<8x128xf32>
    %39 = vector.extract_strided_slice %26 {offsets = [0, 256], sizes = [8, 128], strides = [1, 1]} : vector<8x512xf32> to vector<8x128xf32>
    %40 = math.tanh %39 : vector<8x128xf32>
    %41 = vector.extract_strided_slice %26 {offsets = [0, 384], sizes = [8, 128], strides = [1, 1]} : vector<8x512xf32> to vector<8x128xf32>
    %42 = arith.negf %41 : vector<8x128xf32>
    %43 = math.exp %42 : vector<8x128xf32>
    %cst_34 = arith.constant 1.000000e+00 : f32
    %44 = vector.broadcast %cst_34 : f32 to vector<8x128xf32>
    %45 = arith.addf %44, %43 : vector<8x128xf32>
    %46 = arith.divf %44, %45 : vector<8x128xf32>
    %47 = arith.mulf %38, %18 : vector<8x128xf32>
    %48 = arith.mulf %32, %40 : vector<8x128xf32>
    %49 = arith.addf %47, %48 : vector<8x128xf32>
    %50 = math.tanh %49 : vector<8x128xf32>
    %51 = arith.mulf %46, %50 : vector<8x128xf32>
    %c0_35 = arith.constant 0 : index
    %c0_36 = arith.constant 0 : index
    %52 = vector.load %arg9[%c0_35, %c0_36] : memref<8x128xf32, #tpu.memory_space<vmem>>, vector<8x128xf32>
    tpu.vector_store %arg9[%c0_35, %c0_36], %51 {strides = array<i32>} : memref<8x128xf32, #tpu.memory_space<vmem>>, vector<8x128xf32>,
    %c0_37 = arith.constant 0 : index
    %c0_38 = arith.constant 0 : index
    %53 = vector.load %arg10[%c0_37, %c0_38] : memref<8x128xf32, #tpu.memory_space<vmem>>, vector<8x128xf32>
    tpu.vector_store %arg10[%c0_37, %c0_38], %49 {strides = array<i32>} : memref<8x128xf32, #tpu.memory_space<vmem>>, vector<8x128xf32>,
    %54 = arith.index_cast %20 : i32 to index
    %c0_39 = arith.constant 0 : index
    %55 = vector.load %arg7[%54, %c0_39] : memref<64x128xf32, #tpu.memory_space<vmem>>, vector<8x128xf32>
    tpu.vector_store %arg7[%54, %c0_39], %51 {strides = array<i32>} : memref<64x128xf32, #tpu.memory_space<vmem>>, vector<8x128xf32>,
    %c1_i32 = arith.constant 1 : i32
    %c0_40 = arith.constant 0 : index
    %c0_41 = arith.constant 0 : index
    %56 = vector.load %arg9[%c0_40, %c0_41] : memref<8x128xf32, #tpu.memory_space<vmem>>, vector<8x128xf32>
    %c0_42 = arith.constant 0 : index
    %c0_43 = arith.constant 0 : index
    %57 = vector.load %arg10[%c0_42, %c0_43] : memref<8x128xf32, #tpu.memory_space<vmem>>, vector<8x128xf32>
    %c8_i32_44 = arith.constant 8 : i32
    %58 = arith.muli %c1_i32, %c8_i32_44 : i32
    %59 = tpu.assume_multiple %58, 8 : i32
    %60 = arith.index_cast %59 : i32 to index
    %c0_45 = arith.constant 0 : index
    %61 = vector.load %arg8[%60, %c0_45] : memref<64x512xf32, #tpu.memory_space<vmem>>, vector<8x512xf32>
    %c0_46 = arith.constant 0 : index
    %c0_47 = arith.constant 0 : index
    %c0_48 = arith.constant 0 : index
    %62 = vector.load %arg3[%c0_46, %c0_47, %c0_48] : memref<2x128x512xf32, #tpu.memory_space<vmem>>, vector<1x128x512xf32>
    %63 = vector.shape_cast %62 : vector<1x128x512xf32> to vector<128x512xf32>
    %cst_49 = arith.constant dense<0.000000e+00> : vector<8x512xf32>
    %64 = tpu.matmul %56, %63, %cst_49 {dimension_numbers = #tpu.dot_dimension_numbers<[1], [0], [0], [1], [0, 0, 1, 1], [], []>} : vector<8x128xf32>, vector<128x512xf32>, vector<8x512xf32> -> vector<8x512xf32>
    %65 = arith.addf %61, %64 : vector<8x512xf32>
    %66 = vector.extract_strided_slice %65 {offsets = [0, 0], sizes = [8, 128], strides = [1, 1]} : vector<8x512xf32> to vector<8x128xf32>
    %67 = arith.negf %66 : vector<8x128xf32>
    %68 = math.exp %67 : vector<8x128xf32>
    %cst_50 = arith.constant 1.000000e+00 : f32
    %69 = vector.broadcast %cst_50 : f32 to vector<8x128xf32>
    %70 = arith.addf %69, %68 : vector<8x128xf32>
    %71 = arith.divf %69, %70 : vector<8x128xf32>
    %72 = vector.extract_strided_slice %65 {offsets = [0, 128], sizes = [8, 128], strides = [1, 1]} : vector<8x512xf32> to vector<8x128xf32>
    %73 = arith.negf %72 : vector<8x128xf32>
    %74 = math.exp %73 : vector<8x128xf32>
    %cst_51 = arith.constant 1.000000e+00 : f32
    %75 = vector.broadcast %cst_51 : f32 to vector<8x128xf32>
    %76 = arith.addf %75, %74 : vector<8x128xf32>
    %77 = arith.divf %75, %76 : vector<8x128xf32>
    %78 = vector.extract_strided_slice %65 {offsets = [0, 256], sizes = [8, 128], strides = [1, 1]} : vector<8x512xf32> to vector<8x128xf32>
    %79 = math.tanh %78 : vector<8x128xf32>
    %80 = vector.extract_strided_slice %65 {offsets = [0, 384], sizes = [8, 128], strides = [1, 1]} : vector<8x512xf32> to vector<8x128xf32>
    %81 = arith.negf %80 : vector<8x128xf32>
    %82 = math.exp %81 : vector<8x128xf32>
    %cst_52 = arith.constant 1.000000e+00 : f32
    %83 = vector.broadcast %cst_52 : f32 to vector<8x128xf32>
    %84 = arith.addf %83, %82 : vector<8x128xf32>
    %85 = arith.divf %83, %84 : vector<8x128xf32>
    %86 = arith.mulf %77, %57 : vector<8x128xf32>
    %87 = arith.mulf %71, %79 : vector<8x128xf32>
    %88 = arith.addf %86, %87 : vector<8x128xf32>
    %89 = math.tanh %88 : vector<8x128xf32>
    %90 = arith.mulf %85, %89 : vector<8x128xf32>
    %c0_53 = arith.constant 0 : index
    %c0_54 = arith.constant 0 : index
    %91 = vector.load %arg9[%c0_53, %c0_54] : memref<8x128xf32, #tpu.memory_space<vmem>>, vector<8x128xf32>
    tpu.vector_store %arg9[%c0_53, %c0_54], %90 {strides = array<i32>} : memref<8x128xf32, #tpu.memory_space<vmem>>, vector<8x128xf32>,
    %c0_55 = arith.constant 0 : index
    %c0_56 = arith.constant 0 : index
    %92 = vector.load %arg10[%c0_55, %c0_56] : memref<8x128xf32, #tpu.memory_space<vmem>>, vector<8x128xf32>
    tpu.vector_store %arg10[%c0_55, %c0_56], %88 {strides = array<i32>} : memref<8x128xf32, #tpu.memory_space<vmem>>, vector<8x128xf32>,
    %93 = arith.index_cast %59 : i32 to index
    %c0_57 = arith.constant 0 : index
    %94 = vector.load %arg7[%93, %c0_57] : memref<64x128xf32, #tpu.memory_space<vmem>>, vector<8x128xf32>
    tpu.vector_store %arg7[%93, %c0_57], %90 {strides = array<i32>} : memref<64x128xf32, #tpu.memory_space<vmem>>, vector<8x128xf32>,
    %c2_i32 = arith.constant 2 : i32
    %c0_58 = arith.constant 0 : index
    %c0_59 = arith.constant 0 : index
    %95 = vector.load %arg9[%c0_58, %c0_59] : memref<8x128xf32, #tpu.memory_space<vmem>>, vector<8x128xf32>
    %c0_60 = arith.constant 0 : index
    %c0_61 = arith.constant 0 : index
    %96 = vector.load %arg10[%c0_60, %c0_61] : memref<8x128xf32, #tpu.memory_space<vmem>>, vector<8x128xf32>
    %c8_i32_62 = arith.constant 8 : i32
    %97 = arith.muli %c2_i32, %c8_i32_62 : i32
    %98 = tpu.assume_multiple %97, 8 : i32
    %99 = arith.index_cast %98 : i32 to index
    %c0_63 = arith.constant 0 : index
    %100 = vector.load %arg8[%99, %c0_63] : memref<64x512xf32, #tpu.memory_space<vmem>>, vector<8x512xf32>
    %c0_64 = arith.constant 0 : index
    %c0_65 = arith.constant 0 : index
    %c0_66 = arith.constant 0 : index
    %101 = vector.load %arg3[%c0_64, %c0_65, %c0_66] : memref<2x128x512xf32, #tpu.memory_space<vmem>>, vector<1x128x512xf32>
    %102 = vector.shape_cast %101 : vector<1x128x512xf32> to vector<128x512xf32>
    %cst_67 = arith.constant dense<0.000000e+00> : vector<8x512xf32>
    %103 = tpu.matmul %95, %102, %cst_67 {dimension_numbers = #tpu.dot_dimension_numbers<[1], [0], [0], [1], [0, 0, 1, 1], [], []>} : vector<8x128xf32>, vector<128x512xf32>, vector<8x512xf32> -> vector<8x512xf32>
    %104 = arith.addf %100, %103 : vector<8x512xf32>
    %105 = vector.extract_strided_slice %104 {offsets = [0, 0], sizes = [8, 128], strides = [1, 1]} : vector<8x512xf32> to vector<8x128xf32>
    %106 = arith.negf %105 : vector<8x128xf32>
    %107 = math.exp %106 : vector<8x128xf32>
    %cst_68 = arith.constant 1.000000e+00 : f32
    %108 = vector.broadcast %cst_68 : f32 to vector<8x128xf32>
    %109 = arith.addf %108, %107 : vector<8x128xf32>
    %110 = arith.divf %108, %109 : vector<8x128xf32>
    %111 = vector.extract_strided_slice %104 {offsets = [0, 128], sizes = [8, 128], strides = [1, 1]} : vector<8x512xf32> to vector<8x128xf32>
    %112 = arith.negf %111 : vector<8x128xf32>
    %113 = math.exp %112 : vector<8x128xf32>
    %cst_69 = arith.constant 1.000000e+00 : f32
    %114 = vector.broadcast %cst_69 : f32 to vector<8x128xf32>
    %115 = arith.addf %114, %113 : vector<8x128xf32>
    %116 = arith.divf %114, %115 : vector<8x128xf32>
    %117 = vector.extract_strided_slice %104 {offsets = [0, 256], sizes = [8, 128], strides = [1, 1]} : vector<8x512xf32> to vector<8x128xf32>
    %118 = math.tanh %117 : vector<8x128xf32>
    %119 = vector.extract_strided_slice %104 {offsets = [0, 384], sizes = [8, 128], strides = [1, 1]} : vector<8x512xf32> to vector<8x128xf32>
    %120 = arith.negf %119 : vector<8x128xf32>
    %121 = math.exp %120 : vector<8x128xf32>
    %cst_70 = arith.constant 1.000000e+00 : f32
    %122 = vector.broadcast %cst_70 : f32 to vector<8x128xf32>
    %123 = arith.addf %122, %121 : vector<8x128xf32>
    %124 = arith.divf %122, %123 : vector<8x128xf32>
    %125 = arith.mulf %116, %96 : vector<8x128xf32>
    %126 = arith.mulf %110, %118 : vector<8x128xf32>
    %127 = arith.addf %125, %126 : vector<8x128xf32>
    %128 = math.tanh %127 : vector<8x128xf32>
    %129 = arith.mulf %124, %128 : vector<8x128xf32>
    %c0_71 = arith.constant 0 : index
    %c0_72 = arith.constant 0 : index
    %130 = vector.load %arg9[%c0_71, %c0_72] : memref<8x128xf32, #tpu.memory_space<vmem>>, vector<8x128xf32>
    tpu.vector_store %arg9[%c0_71, %c0_72], %129 {strides = array<i32>} : memref<8x128xf32, #tpu.memory_space<vmem>>, vector<8x128xf32>,
    %c0_73 = arith.constant 0 : index
    %c0_74 = arith.constant 0 : index
    %131 = vector.load %arg10[%c0_73, %c0_74] : memref<8x128xf32, #tpu.memory_space<vmem>>, vector<8x128xf32>
    tpu.vector_store %arg10[%c0_73, %c0_74], %127 {strides = array<i32>} : memref<8x128xf32, #tpu.memory_space<vmem>>, vector<8x128xf32>,
    %132 = arith.index_cast %98 : i32 to index
    %c0_75 = arith.constant 0 : index
    %133 = vector.load %arg7[%132, %c0_75] : memref<64x128xf32, #tpu.memory_space<vmem>>, vector<8x128xf32>
    tpu.vector_store %arg7[%132, %c0_75], %129 {strides = array<i32>} : memref<64x128xf32, #tpu.memory_space<vmem>>, vector<8x128xf32>,
    %c3_i32 = arith.constant 3 : i32
    %c0_76 = arith.constant 0 : index
    %c0_77 = arith.constant 0 : index
    %134 = vector.load %arg9[%c0_76, %c0_77] : memref<8x128xf32, #tpu.memory_space<vmem>>, vector<8x128xf32>
    %c0_78 = arith.constant 0 : index
    %c0_79 = arith.constant 0 : index
    %135 = vector.load %arg10[%c0_78, %c0_79] : memref<8x128xf32, #tpu.memory_space<vmem>>, vector<8x128xf32>
    %c8_i32_80 = arith.constant 8 : i32
    %136 = arith.muli %c3_i32, %c8_i32_80 : i32
    %137 = tpu.assume_multiple %136, 8 : i32
    %138 = arith.index_cast %137 : i32 to index
    %c0_81 = arith.constant 0 : index
    %139 = vector.load %arg8[%138, %c0_81] : memref<64x512xf32, #tpu.memory_space<vmem>>, vector<8x512xf32>
    %c0_82 = arith.constant 0 : index
    %c0_83 = arith.constant 0 : index
    %c0_84 = arith.constant 0 : index
    %140 = vector.load %arg3[%c0_82, %c0_83, %c0_84] : memref<2x128x512xf32, #tpu.memory_space<vmem>>, vector<1x128x512xf32>
    %141 = vector.shape_cast %140 : vector<1x128x512xf32> to vector<128x512xf32>
    %cst_85 = arith.constant dense<0.000000e+00> : vector<8x512xf32>
    %142 = tpu.matmul %134, %141, %cst_85 {dimension_numbers = #tpu.dot_dimension_numbers<[1], [0], [0], [1], [0, 0, 1, 1], [], []>} : vector<8x128xf32>, vector<128x512xf32>, vector<8x512xf32> -> vector<8x512xf32>
    %143 = arith.addf %139, %142 : vector<8x512xf32>
    %144 = vector.extract_strided_slice %143 {offsets = [0, 0], sizes = [8, 128], strides = [1, 1]} : vector<8x512xf32> to vector<8x128xf32>
    %145 = arith.negf %144 : vector<8x128xf32>
    %146 = math.exp %145 : vector<8x128xf32>
    %cst_86 = arith.constant 1.000000e+00 : f32
    %147 = vector.broadcast %cst_86 : f32 to vector<8x128xf32>
    %148 = arith.addf %147, %146 : vector<8x128xf32>
    %149 = arith.divf %147, %148 : vector<8x128xf32>
    %150 = vector.extract_strided_slice %143 {offsets = [0, 128], sizes = [8, 128], strides = [1, 1]} : vector<8x512xf32> to vector<8x128xf32>
    %151 = arith.negf %150 : vector<8x128xf32>
    %152 = math.exp %151 : vector<8x128xf32>
    %cst_87 = arith.constant 1.000000e+00 : f32
    %153 = vector.broadcast %cst_87 : f32 to vector<8x128xf32>
    %154 = arith.addf %153, %152 : vector<8x128xf32>
    %155 = arith.divf %153, %154 : vector<8x128xf32>
    %156 = vector.extract_strided_slice %143 {offsets = [0, 256], sizes = [8, 128], strides = [1, 1]} : vector<8x512xf32> to vector<8x128xf32>
    %157 = math.tanh %156 : vector<8x128xf32>
    %158 = vector.extract_strided_slice %143 {offsets = [0, 384], sizes = [8, 128], strides = [1, 1]} : vector<8x512xf32> to vector<8x128xf32>
    %159 = arith.negf %158 : vector<8x128xf32>
    %160 = math.exp %159 : vector<8x128xf32>
    %cst_88 = arith.constant 1.000000e+00 : f32
    %161 = vector.broadcast %cst_88 : f32 to vector<8x128xf32>
    %162 = arith.addf %161, %160 : vector<8x128xf32>
    %163 = arith.divf %161, %162 : vector<8x128xf32>
    %164 = arith.mulf %155, %135 : vector<8x128xf32>
    %165 = arith.mulf %149, %157 : vector<8x128xf32>
    %166 = arith.addf %164, %165 : vector<8x128xf32>
    %167 = math.tanh %166 : vector<8x128xf32>
    %168 = arith.mulf %163, %167 : vector<8x128xf32>
    %c0_89 = arith.constant 0 : index
    %c0_90 = arith.constant 0 : index
    %169 = vector.load %arg9[%c0_89, %c0_90] : memref<8x128xf32, #tpu.memory_space<vmem>>, vector<8x128xf32>
    tpu.vector_store %arg9[%c0_89, %c0_90], %168 {strides = array<i32>} : memref<8x128xf32, #tpu.memory_space<vmem>>, vector<8x128xf32>,
    %c0_91 = arith.constant 0 : index
    %c0_92 = arith.constant 0 : index
    %170 = vector.load %arg10[%c0_91, %c0_92] : memref<8x128xf32, #tpu.memory_space<vmem>>, vector<8x128xf32>
    tpu.vector_store %arg10[%c0_91, %c0_92], %166 {strides = array<i32>} : memref<8x128xf32, #tpu.memory_space<vmem>>, vector<8x128xf32>,
    %171 = arith.index_cast %137 : i32 to index
    %c0_93 = arith.constant 0 : index
    %172 = vector.load %arg7[%171, %c0_93] : memref<64x128xf32, #tpu.memory_space<vmem>>, vector<8x128xf32>
    tpu.vector_store %arg7[%171, %c0_93], %168 {strides = array<i32>} : memref<64x128xf32, #tpu.memory_space<vmem>>, vector<8x128xf32>,
    %c4_i32 = arith.constant 4 : i32
    %c0_94 = arith.constant 0 : index
    %c0_95 = arith.constant 0 : index
    %173 = vector.load %arg9[%c0_94, %c0_95] : memref<8x128xf32, #tpu.memory_space<vmem>>, vector<8x128xf32>
    %c0_96 = arith.constant 0 : index
    %c0_97 = arith.constant 0 : index
    %174 = vector.load %arg10[%c0_96, %c0_97] : memref<8x128xf32, #tpu.memory_space<vmem>>, vector<8x128xf32>
    %c8_i32_98 = arith.constant 8 : i32
    %175 = arith.muli %c4_i32, %c8_i32_98 : i32
    %176 = tpu.assume_multiple %175, 8 : i32
    %177 = arith.index_cast %176 : i32 to index
    %c0_99 = arith.constant 0 : index
    %178 = vector.load %arg8[%177, %c0_99] : memref<64x512xf32, #tpu.memory_space<vmem>>, vector<8x512xf32>
    %c0_100 = arith.constant 0 : index
    %c0_101 = arith.constant 0 : index
    %c0_102 = arith.constant 0 : index
    %179 = vector.load %arg3[%c0_100, %c0_101, %c0_102] : memref<2x128x512xf32, #tpu.memory_space<vmem>>, vector<1x128x512xf32>
    %180 = vector.shape_cast %179 : vector<1x128x512xf32> to vector<128x512xf32>
    %cst_103 = arith.constant dense<0.000000e+00> : vector<8x512xf32>
    %181 = tpu.matmul %173, %180, %cst_103 {dimension_numbers = #tpu.dot_dimension_numbers<[1], [0], [0], [1], [0, 0, 1, 1], [], []>} : vector<8x128xf32>, vector<128x512xf32>, vector<8x512xf32> -> vector<8x512xf32>
    %182 = arith.addf %178, %181 : vector<8x512xf32>
    %183 = vector.extract_strided_slice %182 {offsets = [0, 0], sizes = [8, 128], strides = [1, 1]} : vector<8x512xf32> to vector<8x128xf32>
    %184 = arith.negf %183 : vector<8x128xf32>
    %185 = math.exp %184 : vector<8x128xf32>
    %cst_104 = arith.constant 1.000000e+00 : f32
    %186 = vector.broadcast %cst_104 : f32 to vector<8x128xf32>
    %187 = arith.addf %186, %185 : vector<8x128xf32>
    %188 = arith.divf %186, %187 : vector<8x128xf32>
    %189 = vector.extract_strided_slice %182 {offsets = [0, 128], sizes = [8, 128], strides = [1, 1]} : vector<8x512xf32> to vector<8x128xf32>
    %190 = arith.negf %189 : vector<8x128xf32>
    %191 = math.exp %190 : vector<8x128xf32>
    %cst_105 = arith.constant 1.000000e+00 : f32
    %192 = vector.broadcast %cst_105 : f32 to vector<8x128xf32>
    %193 = arith.addf %192, %191 : vector<8x128xf32>
    %194 = arith.divf %192, %193 : vector<8x128xf32>
    %195 = vector.extract_strided_slice %182 {offsets = [0, 256], sizes = [8, 128], strides = [1, 1]} : vector<8x512xf32> to vector<8x128xf32>
    %196 = math.tanh %195 : vector<8x128xf32>
    %197 = vector.extract_strided_slice %182 {offsets = [0, 384], sizes = [8, 128], strides = [1, 1]} : vector<8x512xf32> to vector<8x128xf32>
    %198 = arith.negf %197 : vector<8x128xf32>
    %199 = math.exp %198 : vector<8x128xf32>
    %cst_106 = arith.constant 1.000000e+00 : f32
    %200 = vector.broadcast %cst_106 : f32 to vector<8x128xf32>
    %201 = arith.addf %200, %199 : vector<8x128xf32>
    %202 = arith.divf %200, %201 : vector<8x128xf32>
    %203 = arith.mulf %194, %174 : vector<8x128xf32>
    %204 = arith.mulf %188, %196 : vector<8x128xf32>
    %205 = arith.addf %203, %204 : vector<8x128xf32>
    %206 = math.tanh %205 : vector<8x128xf32>
    %207 = arith.mulf %202, %206 : vector<8x128xf32>
    %c0_107 = arith.constant 0 : index
    %c0_108 = arith.constant 0 : index
    %208 = vector.load %arg9[%c0_107, %c0_108] : memref<8x128xf32, #tpu.memory_space<vmem>>, vector<8x128xf32>
    tpu.vector_store %arg9[%c0_107, %c0_108], %207 {strides = array<i32>} : memref<8x128xf32, #tpu.memory_space<vmem>>, vector<8x128xf32>,
    %c0_109 = arith.constant 0 : index
    %c0_110 = arith.constant 0 : index
    %209 = vector.load %arg10[%c0_109, %c0_110] : memref<8x128xf32, #tpu.memory_space<vmem>>, vector<8x128xf32>
    tpu.vector_store %arg10[%c0_109, %c0_110], %205 {strides = array<i32>} : memref<8x128xf32, #tpu.memory_space<vmem>>, vector<8x128xf32>,
    %210 = arith.index_cast %176 : i32 to index
    %c0_111 = arith.constant 0 : index
    %211 = vector.load %arg7[%210, %c0_111] : memref<64x128xf32, #tpu.memory_space<vmem>>, vector<8x128xf32>
    tpu.vector_store %arg7[%210, %c0_111], %207 {strides = array<i32>} : memref<64x128xf32, #tpu.memory_space<vmem>>, vector<8x128xf32>,
    %c5_i32 = arith.constant 5 : i32
    %c0_112 = arith.constant 0 : index
    %c0_113 = arith.constant 0 : index
    %212 = vector.load %arg9[%c0_112, %c0_113] : memref<8x128xf32, #tpu.memory_space<vmem>>, vector<8x128xf32>
    %c0_114 = arith.constant 0 : index
    %c0_115 = arith.constant 0 : index
    %213 = vector.load %arg10[%c0_114, %c0_115] : memref<8x128xf32, #tpu.memory_space<vmem>>, vector<8x128xf32>
    %c8_i32_116 = arith.constant 8 : i32
    %214 = arith.muli %c5_i32, %c8_i32_116 : i32
    %215 = tpu.assume_multiple %214, 8 : i32
    %216 = arith.index_cast %215 : i32 to index
    %c0_117 = arith.constant 0 : index
    %217 = vector.load %arg8[%216, %c0_117] : memref<64x512xf32, #tpu.memory_space<vmem>>, vector<8x512xf32>
    %c0_118 = arith.constant 0 : index
    %c0_119 = arith.constant 0 : index
    %c0_120 = arith.constant 0 : index
    %218 = vector.load %arg3[%c0_118, %c0_119, %c0_120] : memref<2x128x512xf32, #tpu.memory_space<vmem>>, vector<1x128x512xf32>
    %219 = vector.shape_cast %218 : vector<1x128x512xf32> to vector<128x512xf32>
    %cst_121 = arith.constant dense<0.000000e+00> : vector<8x512xf32>
    %220 = tpu.matmul %212, %219, %cst_121 {dimension_numbers = #tpu.dot_dimension_numbers<[1], [0], [0], [1], [0, 0, 1, 1], [], []>} : vector<8x128xf32>, vector<128x512xf32>, vector<8x512xf32> -> vector<8x512xf32>
    %221 = arith.addf %217, %220 : vector<8x512xf32>
    %222 = vector.extract_strided_slice %221 {offsets = [0, 0], sizes = [8, 128], strides = [1, 1]} : vector<8x512xf32> to vector<8x128xf32>
    %223 = arith.negf %222 : vector<8x128xf32>
    %224 = math.exp %223 : vector<8x128xf32>
    %cst_122 = arith.constant 1.000000e+00 : f32
    %225 = vector.broadcast %cst_122 : f32 to vector<8x128xf32>
    %226 = arith.addf %225, %224 : vector<8x128xf32>
    %227 = arith.divf %225, %226 : vector<8x128xf32>
    %228 = vector.extract_strided_slice %221 {offsets = [0, 128], sizes = [8, 128], strides = [1, 1]} : vector<8x512xf32> to vector<8x128xf32>
    %229 = arith.negf %228 : vector<8x128xf32>
    %230 = math.exp %229 : vector<8x128xf32>
    %cst_123 = arith.constant 1.000000e+00 : f32
    %231 = vector.broadcast %cst_123 : f32 to vector<8x128xf32>
    %232 = arith.addf %231, %230 : vector<8x128xf32>
    %233 = arith.divf %231, %232 : vector<8x128xf32>
    %234 = vector.extract_strided_slice %221 {offsets = [0, 256], sizes = [8, 128], strides = [1, 1]} : vector<8x512xf32> to vector<8x128xf32>
    %235 = math.tanh %234 : vector<8x128xf32>
    %236 = vector.extract_strided_slice %221 {offsets = [0, 384], sizes = [8, 128], strides = [1, 1]} : vector<8x512xf32> to vector<8x128xf32>
    %237 = arith.negf %236 : vector<8x128xf32>
    %238 = math.exp %237 : vector<8x128xf32>
    %cst_124 = arith.constant 1.000000e+00 : f32
    %239 = vector.broadcast %cst_124 : f32 to vector<8x128xf32>
    %240 = arith.addf %239, %238 : vector<8x128xf32>
    %241 = arith.divf %239, %240 : vector<8x128xf32>
    %242 = arith.mulf %233, %213 : vector<8x128xf32>
    %243 = arith.mulf %227, %235 : vector<8x128xf32>
    %244 = arith.addf %242, %243 : vector<8x128xf32>
    %245 = math.tanh %244 : vector<8x128xf32>
    %246 = arith.mulf %241, %245 : vector<8x128xf32>
    %c0_125 = arith.constant 0 : index
    %c0_126 = arith.constant 0 : index
    %247 = vector.load %arg9[%c0_125, %c0_126] : memref<8x128xf32, #tpu.memory_space<vmem>>, vector<8x128xf32>
    tpu.vector_store %arg9[%c0_125, %c0_126], %246 {strides = array<i32>} : memref<8x128xf32, #tpu.memory_space<vmem>>, vector<8x128xf32>,
    %c0_127 = arith.constant 0 : index
    %c0_128 = arith.constant 0 : index
    %248 = vector.load %arg10[%c0_127, %c0_128] : memref<8x128xf32, #tpu.memory_space<vmem>>, vector<8x128xf32>
    tpu.vector_store %arg10[%c0_127, %c0_128], %244 {strides = array<i32>} : memref<8x128xf32, #tpu.memory_space<vmem>>, vector<8x128xf32>,
    %249 = arith.index_cast %215 : i32 to index
    %c0_129 = arith.constant 0 : index
    %250 = vector.load %arg7[%249, %c0_129] : memref<64x128xf32, #tpu.memory_space<vmem>>, vector<8x128xf32>
    tpu.vector_store %arg7[%249, %c0_129], %246 {strides = array<i32>} : memref<64x128xf32, #tpu.memory_space<vmem>>, vector<8x128xf32>,
    %c6_i32 = arith.constant 6 : i32
    %c0_130 = arith.constant 0 : index
    %c0_131 = arith.constant 0 : index
    %251 = vector.load %arg9[%c0_130, %c0_131] : memref<8x128xf32, #tpu.memory_space<vmem>>, vector<8x128xf32>
    %c0_132 = arith.constant 0 : index
    %c0_133 = arith.constant 0 : index
    %252 = vector.load %arg10[%c0_132, %c0_133] : memref<8x128xf32, #tpu.memory_space<vmem>>, vector<8x128xf32>
    %c8_i32_134 = arith.constant 8 : i32
    %253 = arith.muli %c6_i32, %c8_i32_134 : i32
    %254 = tpu.assume_multiple %253, 8 : i32
    %255 = arith.index_cast %254 : i32 to index
    %c0_135 = arith.constant 0 : index
    %256 = vector.load %arg8[%255, %c0_135] : memref<64x512xf32, #tpu.memory_space<vmem>>, vector<8x512xf32>
    %c0_136 = arith.constant 0 : index
    %c0_137 = arith.constant 0 : index
    %c0_138 = arith.constant 0 : index
    %257 = vector.load %arg3[%c0_136, %c0_137, %c0_138] : memref<2x128x512xf32, #tpu.memory_space<vmem>>, vector<1x128x512xf32>
    %258 = vector.shape_cast %257 : vector<1x128x512xf32> to vector<128x512xf32>
    %cst_139 = arith.constant dense<0.000000e+00> : vector<8x512xf32>
    %259 = tpu.matmul %251, %258, %cst_139 {dimension_numbers = #tpu.dot_dimension_numbers<[1], [0], [0], [1], [0, 0, 1, 1], [], []>} : vector<8x128xf32>, vector<128x512xf32>, vector<8x512xf32> -> vector<8x512xf32>
    %260 = arith.addf %256, %259 : vector<8x512xf32>
    %261 = vector.extract_strided_slice %260 {offsets = [0, 0], sizes = [8, 128], strides = [1, 1]} : vector<8x512xf32> to vector<8x128xf32>
    %262 = arith.negf %261 : vector<8x128xf32>
    %263 = math.exp %262 : vector<8x128xf32>
    %cst_140 = arith.constant 1.000000e+00 : f32
    %264 = vector.broadcast %cst_140 : f32 to vector<8x128xf32>
    %265 = arith.addf %264, %263 : vector<8x128xf32>
    %266 = arith.divf %264, %265 : vector<8x128xf32>
    %267 = vector.extract_strided_slice %260 {offsets = [0, 128], sizes = [8, 128], strides = [1, 1]} : vector<8x512xf32> to vector<8x128xf32>
    %268 = arith.negf %267 : vector<8x128xf32>
    %269 = math.exp %268 : vector<8x128xf32>
    %cst_141 = arith.constant 1.000000e+00 : f32
    %270 = vector.broadcast %cst_141 : f32 to vector<8x128xf32>
    %271 = arith.addf %270, %269 : vector<8x128xf32>
    %272 = arith.divf %270, %271 : vector<8x128xf32>
    %273 = vector.extract_strided_slice %260 {offsets = [0, 256], sizes = [8, 128], strides = [1, 1]} : vector<8x512xf32> to vector<8x128xf32>
    %274 = math.tanh %273 : vector<8x128xf32>
    %275 = vector.extract_strided_slice %260 {offsets = [0, 384], sizes = [8, 128], strides = [1, 1]} : vector<8x512xf32> to vector<8x128xf32>
    %276 = arith.negf %275 : vector<8x128xf32>
    %277 = math.exp %276 : vector<8x128xf32>
    %cst_142 = arith.constant 1.000000e+00 : f32
    %278 = vector.broadcast %cst_142 : f32 to vector<8x128xf32>
    %279 = arith.addf %278, %277 : vector<8x128xf32>
    %280 = arith.divf %278, %279 : vector<8x128xf32>
    %281 = arith.mulf %272, %252 : vector<8x128xf32>
    %282 = arith.mulf %266, %274 : vector<8x128xf32>
    %283 = arith.addf %281, %282 : vector<8x128xf32>
    %284 = math.tanh %283 : vector<8x128xf32>
    %285 = arith.mulf %280, %284 : vector<8x128xf32>
    %c0_143 = arith.constant 0 : index
    %c0_144 = arith.constant 0 : index
    %286 = vector.load %arg9[%c0_143, %c0_144] : memref<8x128xf32, #tpu.memory_space<vmem>>, vector<8x128xf32>
    tpu.vector_store %arg9[%c0_143, %c0_144], %285 {strides = array<i32>} : memref<8x128xf32, #tpu.memory_space<vmem>>, vector<8x128xf32>,
    %c0_145 = arith.constant 0 : index
    %c0_146 = arith.constant 0 : index
    %287 = vector.load %arg10[%c0_145, %c0_146] : memref<8x128xf32, #tpu.memory_space<vmem>>, vector<8x128xf32>
    tpu.vector_store %arg10[%c0_145, %c0_146], %283 {strides = array<i32>} : memref<8x128xf32, #tpu.memory_space<vmem>>, vector<8x128xf32>,
    %288 = arith.index_cast %254 : i32 to index
    %c0_147 = arith.constant 0 : index
    %289 = vector.load %arg7[%288, %c0_147] : memref<64x128xf32, #tpu.memory_space<vmem>>, vector<8x128xf32>
    tpu.vector_store %arg7[%288, %c0_147], %285 {strides = array<i32>} : memref<64x128xf32, #tpu.memory_space<vmem>>, vector<8x128xf32>,
    %c7_i32 = arith.constant 7 : i32
    %c0_148 = arith.constant 0 : index
    %c0_149 = arith.constant 0 : index
    %290 = vector.load %arg9[%c0_148, %c0_149] : memref<8x128xf32, #tpu.memory_space<vmem>>, vector<8x128xf32>
    %c0_150 = arith.constant 0 : index
    %c0_151 = arith.constant 0 : index
    %291 = vector.load %arg10[%c0_150, %c0_151] : memref<8x128xf32, #tpu.memory_space<vmem>>, vector<8x128xf32>
    %c8_i32_152 = arith.constant 8 : i32
    %292 = arith.muli %c7_i32, %c8_i32_152 : i32
    %293 = tpu.assume_multiple %292, 8 : i32
    %294 = arith.index_cast %293 : i32 to index
    %c0_153 = arith.constant 0 : index
    %295 = vector.load %arg8[%294, %c0_153] : memref<64x512xf32, #tpu.memory_space<vmem>>, vector<8x512xf32>
    %c0_154 = arith.constant 0 : index
    %c0_155 = arith.constant 0 : index
    %c0_156 = arith.constant 0 : index
    %296 = vector.load %arg3[%c0_154, %c0_155, %c0_156] : memref<2x128x512xf32, #tpu.memory_space<vmem>>, vector<1x128x512xf32>
    %297 = vector.shape_cast %296 : vector<1x128x512xf32> to vector<128x512xf32>
    %cst_157 = arith.constant dense<0.000000e+00> : vector<8x512xf32>
    %298 = tpu.matmul %290, %297, %cst_157 {dimension_numbers = #tpu.dot_dimension_numbers<[1], [0], [0], [1], [0, 0, 1, 1], [], []>} : vector<8x128xf32>, vector<128x512xf32>, vector<8x512xf32> -> vector<8x512xf32>
    %299 = arith.addf %295, %298 : vector<8x512xf32>
    %300 = vector.extract_strided_slice %299 {offsets = [0, 0], sizes = [8, 128], strides = [1, 1]} : vector<8x512xf32> to vector<8x128xf32>
    %301 = arith.negf %300 : vector<8x128xf32>
    %302 = math.exp %301 : vector<8x128xf32>
    %cst_158 = arith.constant 1.000000e+00 : f32
    %303 = vector.broadcast %cst_158 : f32 to vector<8x128xf32>
    %304 = arith.addf %303, %302 : vector<8x128xf32>
    %305 = arith.divf %303, %304 : vector<8x128xf32>
    %306 = vector.extract_strided_slice %299 {offsets = [0, 128], sizes = [8, 128], strides = [1, 1]} : vector<8x512xf32> to vector<8x128xf32>
    %307 = arith.negf %306 : vector<8x128xf32>
    %308 = math.exp %307 : vector<8x128xf32>
    %cst_159 = arith.constant 1.000000e+00 : f32
    %309 = vector.broadcast %cst_159 : f32 to vector<8x128xf32>
    %310 = arith.addf %309, %308 : vector<8x128xf32>
    %311 = arith.divf %309, %310 : vector<8x128xf32>
    %312 = vector.extract_strided_slice %299 {offsets = [0, 256], sizes = [8, 128], strides = [1, 1]} : vector<8x512xf32> to vector<8x128xf32>
    %313 = math.tanh %312 : vector<8x128xf32>
    %314 = vector.extract_strided_slice %299 {offsets = [0, 384], sizes = [8, 128], strides = [1, 1]} : vector<8x512xf32> to vector<8x128xf32>
    %315 = arith.negf %314 : vector<8x128xf32>
    %316 = math.exp %315 : vector<8x128xf32>
    %cst_160 = arith.constant 1.000000e+00 : f32
    %317 = vector.broadcast %cst_160 : f32 to vector<8x128xf32>
    %318 = arith.addf %317, %316 : vector<8x128xf32>
    %319 = arith.divf %317, %318 : vector<8x128xf32>
    %320 = arith.mulf %311, %291 : vector<8x128xf32>
    %321 = arith.mulf %305, %313 : vector<8x128xf32>
    %322 = arith.addf %320, %321 : vector<8x128xf32>
    %323 = math.tanh %322 : vector<8x128xf32>
    %324 = arith.mulf %319, %323 : vector<8x128xf32>
    %c0_161 = arith.constant 0 : index
    %c0_162 = arith.constant 0 : index
    %325 = vector.load %arg9[%c0_161, %c0_162] : memref<8x128xf32, #tpu.memory_space<vmem>>, vector<8x128xf32>
    tpu.vector_store %arg9[%c0_161, %c0_162], %324 {strides = array<i32>} : memref<8x128xf32, #tpu.memory_space<vmem>>, vector<8x128xf32>,
    %c0_163 = arith.constant 0 : index
    %c0_164 = arith.constant 0 : index
    %326 = vector.load %arg10[%c0_163, %c0_164] : memref<8x128xf32, #tpu.memory_space<vmem>>, vector<8x128xf32>
    tpu.vector_store %arg10[%c0_163, %c0_164], %322 {strides = array<i32>} : memref<8x128xf32, #tpu.memory_space<vmem>>, vector<8x128xf32>,
    %327 = arith.index_cast %293 : i32 to index
    %c0_165 = arith.constant 0 : index
    %328 = vector.load %arg7[%327, %c0_165] : memref<64x128xf32, #tpu.memory_space<vmem>>, vector<8x128xf32>
    tpu.vector_store %arg7[%327, %c0_165], %324 {strides = array<i32>} : memref<64x128xf32, #tpu.memory_space<vmem>>, vector<8x128xf32>,
    %c8_i32_166 = arith.constant 8 : i32
    %c0_167 = arith.constant 0 : index
    %c0_168 = arith.constant 0 : index
    %329 = vector.load %arg7[%c0_167, %c0_168] : memref<64x128xf32, #tpu.memory_space<vmem>>, vector<64x128xf32>
    %c1 = arith.constant 1 : index
    %c0_169 = arith.constant 0 : index
    %c0_170 = arith.constant 0 : index
    %330 = vector.load %arg2[%c1, %c0_169, %c0_170] : memref<2x128x512xf32, #tpu.memory_space<vmem>>, vector<1x128x512xf32>
    %331 = vector.shape_cast %330 : vector<1x128x512xf32> to vector<128x512xf32>
    %cst_171 = arith.constant dense<0.000000e+00> : vector<64x512xf32>
    %332 = tpu.matmul %329, %331, %cst_171 {dimension_numbers = #tpu.dot_dimension_numbers<[1], [0], [0], [1], [0, 0, 1, 1], [], []>} : vector<64x128xf32>, vector<128x512xf32>, vector<64x512xf32> -> vector<64x512xf32>
    %c1_172 = arith.constant 1 : index
    %c0_173 = arith.constant 0 : index
    %c0_174 = arith.constant 0 : index
    %333 = vector.load %arg4[%c1_172, %c0_173, %c0_174] : memref<2x1x512xf32, #tpu.memory_space<vmem>>, vector<1x1x512xf32>
    %334 = vector.shape_cast %333 : vector<1x1x512xf32> to vector<1x512xf32>
    %335 = vector.broadcast %334 : vector<1x512xf32> to vector<64x512xf32>
    %336 = arith.addf %332, %335 : vector<64x512xf32>
    %c0_175 = arith.constant 0 : index
    %c0_176 = arith.constant 0 : index
    %337 = vector.load %arg8[%c0_175, %c0_176] : memref<64x512xf32, #tpu.memory_space<vmem>>, vector<64x512xf32>
    tpu.vector_store %arg8[%c0_175, %c0_176], %336 {strides = array<i32>} : memref<64x512xf32, #tpu.memory_space<vmem>>, vector<64x512xf32>,
    %c1_177 = arith.constant 1 : index
    %c0_178 = arith.constant 0 : index
    %c0_179 = arith.constant 0 : index
    %338 = vector.load %arg5[%c1_177, %c0_178, %c0_179] : memref<2x8x128xf32, #tpu.memory_space<vmem>>, vector<1x8x128xf32>
    %339 = vector.shape_cast %338 : vector<1x8x128xf32> to vector<8x128xf32>
    %c0_180 = arith.constant 0 : index
    %c0_181 = arith.constant 0 : index
    %340 = vector.load %arg9[%c0_180, %c0_181] : memref<8x128xf32, #tpu.memory_space<vmem>>, vector<8x128xf32>
    tpu.vector_store %arg9[%c0_180, %c0_181], %339 {strides = array<i32>} : memref<8x128xf32, #tpu.memory_space<vmem>>, vector<8x128xf32>,
    %c1_182 = arith.constant 1 : index
    %c0_183 = arith.constant 0 : index
    %c0_184 = arith.constant 0 : index
    %341 = vector.load %arg6[%c1_182, %c0_183, %c0_184] : memref<2x8x128xf32, #tpu.memory_space<vmem>>, vector<1x8x128xf32>
    %342 = vector.shape_cast %341 : vector<1x8x128xf32> to vector<8x128xf32>
    %c0_185 = arith.constant 0 : index
    %c0_186 = arith.constant 0 : index
    %343 = vector.load %arg10[%c0_185, %c0_186] : memref<8x128xf32, #tpu.memory_space<vmem>>, vector<8x128xf32>
    tpu.vector_store %arg10[%c0_185, %c0_186], %342 {strides = array<i32>} : memref<8x128xf32, #tpu.memory_space<vmem>>, vector<8x128xf32>,
    %c0_i32_187 = arith.constant 0 : i32
    %c0_188 = arith.constant 0 : index
    %c0_189 = arith.constant 0 : index
    %344 = vector.load %arg9[%c0_188, %c0_189] : memref<8x128xf32, #tpu.memory_space<vmem>>, vector<8x128xf32>
    %c0_190 = arith.constant 0 : index
    %c0_191 = arith.constant 0 : index
    %345 = vector.load %arg10[%c0_190, %c0_191] : memref<8x128xf32, #tpu.memory_space<vmem>>, vector<8x128xf32>
    %c8_i32_192 = arith.constant 8 : i32
    %346 = arith.muli %c0_i32_187, %c8_i32_192 : i32
    %347 = tpu.assume_multiple %346, 8 : i32
    %348 = arith.index_cast %347 : i32 to index
    %c0_193 = arith.constant 0 : index
    %349 = vector.load %arg8[%348, %c0_193] : memref<64x512xf32, #tpu.memory_space<vmem>>, vector<8x512xf32>
    %c1_194 = arith.constant 1 : index
    %c0_195 = arith.constant 0 : index
    %c0_196 = arith.constant 0 : index
    %350 = vector.load %arg3[%c1_194, %c0_195, %c0_196] : memref<2x128x512xf32, #tpu.memory_space<vmem>>, vector<1x128x512xf32>
    %351 = vector.shape_cast %350 : vector<1x128x512xf32> to vector<128x512xf32>
    %cst_197 = arith.constant dense<0.000000e+00> : vector<8x512xf32>
    %352 = tpu.matmul %344, %351, %cst_197 {dimension_numbers = #tpu.dot_dimension_numbers<[1], [0], [0], [1], [0, 0, 1, 1], [], []>} : vector<8x128xf32>, vector<128x512xf32>, vector<8x512xf32> -> vector<8x512xf32>
    %353 = arith.addf %349, %352 : vector<8x512xf32>
    %354 = vector.extract_strided_slice %353 {offsets = [0, 0], sizes = [8, 128], strides = [1, 1]} : vector<8x512xf32> to vector<8x128xf32>
    %355 = arith.negf %354 : vector<8x128xf32>
    %356 = math.exp %355 : vector<8x128xf32>
    %cst_198 = arith.constant 1.000000e+00 : f32
    %357 = vector.broadcast %cst_198 : f32 to vector<8x128xf32>
    %358 = arith.addf %357, %356 : vector<8x128xf32>
    %359 = arith.divf %357, %358 : vector<8x128xf32>
    %360 = vector.extract_strided_slice %353 {offsets = [0, 128], sizes = [8, 128], strides = [1, 1]} : vector<8x512xf32> to vector<8x128xf32>
    %361 = arith.negf %360 : vector<8x128xf32>
    %362 = math.exp %361 : vector<8x128xf32>
    %cst_199 = arith.constant 1.000000e+00 : f32
    %363 = vector.broadcast %cst_199 : f32 to vector<8x128xf32>
    %364 = arith.addf %363, %362 : vector<8x128xf32>
    %365 = arith.divf %363, %364 : vector<8x128xf32>
    %366 = vector.extract_strided_slice %353 {offsets = [0, 256], sizes = [8, 128], strides = [1, 1]} : vector<8x512xf32> to vector<8x128xf32>
    %367 = math.tanh %366 : vector<8x128xf32>
    %368 = vector.extract_strided_slice %353 {offsets = [0, 384], sizes = [8, 128], strides = [1, 1]} : vector<8x512xf32> to vector<8x128xf32>
    %369 = arith.negf %368 : vector<8x128xf32>
    %370 = math.exp %369 : vector<8x128xf32>
    %cst_200 = arith.constant 1.000000e+00 : f32
    %371 = vector.broadcast %cst_200 : f32 to vector<8x128xf32>
    %372 = arith.addf %371, %370 : vector<8x128xf32>
    %373 = arith.divf %371, %372 : vector<8x128xf32>
    %374 = arith.mulf %365, %345 : vector<8x128xf32>
    %375 = arith.mulf %359, %367 : vector<8x128xf32>
    %376 = arith.addf %374, %375 : vector<8x128xf32>
    %377 = math.tanh %376 : vector<8x128xf32>
    %378 = arith.mulf %373, %377 : vector<8x128xf32>
    %c0_201 = arith.constant 0 : index
    %c0_202 = arith.constant 0 : index
    %379 = vector.load %arg9[%c0_201, %c0_202] : memref<8x128xf32, #tpu.memory_space<vmem>>, vector<8x128xf32>
    tpu.vector_store %arg9[%c0_201, %c0_202], %378 {strides = array<i32>} : memref<8x128xf32, #tpu.memory_space<vmem>>, vector<8x128xf32>,
    %c0_203 = arith.constant 0 : index
    %c0_204 = arith.constant 0 : index
    %380 = vector.load %arg10[%c0_203, %c0_204] : memref<8x128xf32, #tpu.memory_space<vmem>>, vector<8x128xf32>
    tpu.vector_store %arg10[%c0_203, %c0_204], %376 {strides = array<i32>} : memref<8x128xf32, #tpu.memory_space<vmem>>, vector<8x128xf32>,
    %381 = arith.index_cast %347 : i32 to index
    %c0_205 = arith.constant 0 : index
    %382 = vector.load %arg7[%381, %c0_205] : memref<64x128xf32, #tpu.memory_space<vmem>>, vector<8x128xf32>
    tpu.vector_store %arg7[%381, %c0_205], %378 {strides = array<i32>} : memref<64x128xf32, #tpu.memory_space<vmem>>, vector<8x128xf32>,
    %c1_i32_206 = arith.constant 1 : i32
    %c0_207 = arith.constant 0 : index
    %c0_208 = arith.constant 0 : index
    %383 = vector.load %arg9[%c0_207, %c0_208] : memref<8x128xf32, #tpu.memory_space<vmem>>, vector<8x128xf32>
    %c0_209 = arith.constant 0 : index
    %c0_210 = arith.constant 0 : index
    %384 = vector.load %arg10[%c0_209, %c0_210] : memref<8x128xf32, #tpu.memory_space<vmem>>, vector<8x128xf32>
    %c8_i32_211 = arith.constant 8 : i32
    %385 = arith.muli %c1_i32_206, %c8_i32_211 : i32
    %386 = tpu.assume_multiple %385, 8 : i32
    %387 = arith.index_cast %386 : i32 to index
    %c0_212 = arith.constant 0 : index
    %388 = vector.load %arg8[%387, %c0_212] : memref<64x512xf32, #tpu.memory_space<vmem>>, vector<8x512xf32>
    %c1_213 = arith.constant 1 : index
    %c0_214 = arith.constant 0 : index
    %c0_215 = arith.constant 0 : index
    %389 = vector.load %arg3[%c1_213, %c0_214, %c0_215] : memref<2x128x512xf32, #tpu.memory_space<vmem>>, vector<1x128x512xf32>
    %390 = vector.shape_cast %389 : vector<1x128x512xf32> to vector<128x512xf32>
    %cst_216 = arith.constant dense<0.000000e+00> : vector<8x512xf32>
    %391 = tpu.matmul %383, %390, %cst_216 {dimension_numbers = #tpu.dot_dimension_numbers<[1], [0], [0], [1], [0, 0, 1, 1], [], []>} : vector<8x128xf32>, vector<128x512xf32>, vector<8x512xf32> -> vector<8x512xf32>
    %392 = arith.addf %388, %391 : vector<8x512xf32>
    %393 = vector.extract_strided_slice %392 {offsets = [0, 0], sizes = [8, 128], strides = [1, 1]} : vector<8x512xf32> to vector<8x128xf32>
    %394 = arith.negf %393 : vector<8x128xf32>
    %395 = math.exp %394 : vector<8x128xf32>
    %cst_217 = arith.constant 1.000000e+00 : f32
    %396 = vector.broadcast %cst_217 : f32 to vector<8x128xf32>
    %397 = arith.addf %396, %395 : vector<8x128xf32>
    %398 = arith.divf %396, %397 : vector<8x128xf32>
    %399 = vector.extract_strided_slice %392 {offsets = [0, 128], sizes = [8, 128], strides = [1, 1]} : vector<8x512xf32> to vector<8x128xf32>
    %400 = arith.negf %399 : vector<8x128xf32>
    %401 = math.exp %400 : vector<8x128xf32>
    %cst_218 = arith.constant 1.000000e+00 : f32
    %402 = vector.broadcast %cst_218 : f32 to vector<8x128xf32>
    %403 = arith.addf %402, %401 : vector<8x128xf32>
    %404 = arith.divf %402, %403 : vector<8x128xf32>
    %405 = vector.extract_strided_slice %392 {offsets = [0, 256], sizes = [8, 128], strides = [1, 1]} : vector<8x512xf32> to vector<8x128xf32>
    %406 = math.tanh %405 : vector<8x128xf32>
    %407 = vector.extract_strided_slice %392 {offsets = [0, 384], sizes = [8, 128], strides = [1, 1]} : vector<8x512xf32> to vector<8x128xf32>
    %408 = arith.negf %407 : vector<8x128xf32>
    %409 = math.exp %408 : vector<8x128xf32>
    %cst_219 = arith.constant 1.000000e+00 : f32
    %410 = vector.broadcast %cst_219 : f32 to vector<8x128xf32>
    %411 = arith.addf %410, %409 : vector<8x128xf32>
    %412 = arith.divf %410, %411 : vector<8x128xf32>
    %413 = arith.mulf %404, %384 : vector<8x128xf32>
    %414 = arith.mulf %398, %406 : vector<8x128xf32>
    %415 = arith.addf %413, %414 : vector<8x128xf32>
    %416 = math.tanh %415 : vector<8x128xf32>
    %417 = arith.mulf %412, %416 : vector<8x128xf32>
    %c0_220 = arith.constant 0 : index
    %c0_221 = arith.constant 0 : index
    %418 = vector.load %arg9[%c0_220, %c0_221] : memref<8x128xf32, #tpu.memory_space<vmem>>, vector<8x128xf32>
    tpu.vector_store %arg9[%c0_220, %c0_221], %417 {strides = array<i32>} : memref<8x128xf32, #tpu.memory_space<vmem>>, vector<8x128xf32>,
    %c0_222 = arith.constant 0 : index
    %c0_223 = arith.constant 0 : index
    %419 = vector.load %arg10[%c0_222, %c0_223] : memref<8x128xf32, #tpu.memory_space<vmem>>, vector<8x128xf32>
    tpu.vector_store %arg10[%c0_222, %c0_223], %415 {strides = array<i32>} : memref<8x128xf32, #tpu.memory_space<vmem>>, vector<8x128xf32>,
    %420 = arith.index_cast %386 : i32 to index
    %c0_224 = arith.constant 0 : index
    %421 = vector.load %arg7[%420, %c0_224] : memref<64x128xf32, #tpu.memory_space<vmem>>, vector<8x128xf32>
    tpu.vector_store %arg7[%420, %c0_224], %417 {strides = array<i32>} : memref<64x128xf32, #tpu.memory_space<vmem>>, vector<8x128xf32>,
    %c2_i32_225 = arith.constant 2 : i32
    %c0_226 = arith.constant 0 : index
    %c0_227 = arith.constant 0 : index
    %422 = vector.load %arg9[%c0_226, %c0_227] : memref<8x128xf32, #tpu.memory_space<vmem>>, vector<8x128xf32>
    %c0_228 = arith.constant 0 : index
    %c0_229 = arith.constant 0 : index
    %423 = vector.load %arg10[%c0_228, %c0_229] : memref<8x128xf32, #tpu.memory_space<vmem>>, vector<8x128xf32>
    %c8_i32_230 = arith.constant 8 : i32
    %424 = arith.muli %c2_i32_225, %c8_i32_230 : i32
    %425 = tpu.assume_multiple %424, 8 : i32
    %426 = arith.index_cast %425 : i32 to index
    %c0_231 = arith.constant 0 : index
    %427 = vector.load %arg8[%426, %c0_231] : memref<64x512xf32, #tpu.memory_space<vmem>>, vector<8x512xf32>
    %c1_232 = arith.constant 1 : index
    %c0_233 = arith.constant 0 : index
    %c0_234 = arith.constant 0 : index
    %428 = vector.load %arg3[%c1_232, %c0_233, %c0_234] : memref<2x128x512xf32, #tpu.memory_space<vmem>>, vector<1x128x512xf32>
    %429 = vector.shape_cast %428 : vector<1x128x512xf32> to vector<128x512xf32>
    %cst_235 = arith.constant dense<0.000000e+00> : vector<8x512xf32>
    %430 = tpu.matmul %422, %429, %cst_235 {dimension_numbers = #tpu.dot_dimension_numbers<[1], [0], [0], [1], [0, 0, 1, 1], [], []>} : vector<8x128xf32>, vector<128x512xf32>, vector<8x512xf32> -> vector<8x512xf32>
    %431 = arith.addf %427, %430 : vector<8x512xf32>
    %432 = vector.extract_strided_slice %431 {offsets = [0, 0], sizes = [8, 128], strides = [1, 1]} : vector<8x512xf32> to vector<8x128xf32>
    %433 = arith.negf %432 : vector<8x128xf32>
    %434 = math.exp %433 : vector<8x128xf32>
    %cst_236 = arith.constant 1.000000e+00 : f32
    %435 = vector.broadcast %cst_236 : f32 to vector<8x128xf32>
    %436 = arith.addf %435, %434 : vector<8x128xf32>
    %437 = arith.divf %435, %436 : vector<8x128xf32>
    %438 = vector.extract_strided_slice %431 {offsets = [0, 128], sizes = [8, 128], strides = [1, 1]} : vector<8x512xf32> to vector<8x128xf32>
    %439 = arith.negf %438 : vector<8x128xf32>
    %440 = math.exp %439 : vector<8x128xf32>
    %cst_237 = arith.constant 1.000000e+00 : f32
    %441 = vector.broadcast %cst_237 : f32 to vector<8x128xf32>
    %442 = arith.addf %441, %440 : vector<8x128xf32>
    %443 = arith.divf %441, %442 : vector<8x128xf32>
    %444 = vector.extract_strided_slice %431 {offsets = [0, 256], sizes = [8, 128], strides = [1, 1]} : vector<8x512xf32> to vector<8x128xf32>
    %445 = math.tanh %444 : vector<8x128xf32>
    %446 = vector.extract_strided_slice %431 {offsets = [0, 384], sizes = [8, 128], strides = [1, 1]} : vector<8x512xf32> to vector<8x128xf32>
    %447 = arith.negf %446 : vector<8x128xf32>
    %448 = math.exp %447 : vector<8x128xf32>
    %cst_238 = arith.constant 1.000000e+00 : f32
    %449 = vector.broadcast %cst_238 : f32 to vector<8x128xf32>
    %450 = arith.addf %449, %448 : vector<8x128xf32>
    %451 = arith.divf %449, %450 : vector<8x128xf32>
    %452 = arith.mulf %443, %423 : vector<8x128xf32>
    %453 = arith.mulf %437, %445 : vector<8x128xf32>
    %454 = arith.addf %452, %453 : vector<8x128xf32>
    %455 = math.tanh %454 : vector<8x128xf32>
    %456 = arith.mulf %451, %455 : vector<8x128xf32>
    %c0_239 = arith.constant 0 : index
    %c0_240 = arith.constant 0 : index
    %457 = vector.load %arg9[%c0_239, %c0_240] : memref<8x128xf32, #tpu.memory_space<vmem>>, vector<8x128xf32>
    tpu.vector_store %arg9[%c0_239, %c0_240], %456 {strides = array<i32>} : memref<8x128xf32, #tpu.memory_space<vmem>>, vector<8x128xf32>,
    %c0_241 = arith.constant 0 : index
    %c0_242 = arith.constant 0 : index
    %458 = vector.load %arg10[%c0_241, %c0_242] : memref<8x128xf32, #tpu.memory_space<vmem>>, vector<8x128xf32>
    tpu.vector_store %arg10[%c0_241, %c0_242], %454 {strides = array<i32>} : memref<8x128xf32, #tpu.memory_space<vmem>>, vector<8x128xf32>,
    %459 = arith.index_cast %425 : i32 to index
    %c0_243 = arith.constant 0 : index
    %460 = vector.load %arg7[%459, %c0_243] : memref<64x128xf32, #tpu.memory_space<vmem>>, vector<8x128xf32>
    tpu.vector_store %arg7[%459, %c0_243], %456 {strides = array<i32>} : memref<64x128xf32, #tpu.memory_space<vmem>>, vector<8x128xf32>,
    %c3_i32_244 = arith.constant 3 : i32
    %c0_245 = arith.constant 0 : index
    %c0_246 = arith.constant 0 : index
    %461 = vector.load %arg9[%c0_245, %c0_246] : memref<8x128xf32, #tpu.memory_space<vmem>>, vector<8x128xf32>
    %c0_247 = arith.constant 0 : index
    %c0_248 = arith.constant 0 : index
    %462 = vector.load %arg10[%c0_247, %c0_248] : memref<8x128xf32, #tpu.memory_space<vmem>>, vector<8x128xf32>
    %c8_i32_249 = arith.constant 8 : i32
    %463 = arith.muli %c3_i32_244, %c8_i32_249 : i32
    %464 = tpu.assume_multiple %463, 8 : i32
    %465 = arith.index_cast %464 : i32 to index
    %c0_250 = arith.constant 0 : index
    %466 = vector.load %arg8[%465, %c0_250] : memref<64x512xf32, #tpu.memory_space<vmem>>, vector<8x512xf32>
    %c1_251 = arith.constant 1 : index
    %c0_252 = arith.constant 0 : index
    %c0_253 = arith.constant 0 : index
    %467 = vector.load %arg3[%c1_251, %c0_252, %c0_253] : memref<2x128x512xf32, #tpu.memory_space<vmem>>, vector<1x128x512xf32>
    %468 = vector.shape_cast %467 : vector<1x128x512xf32> to vector<128x512xf32>
    %cst_254 = arith.constant dense<0.000000e+00> : vector<8x512xf32>
    %469 = tpu.matmul %461, %468, %cst_254 {dimension_numbers = #tpu.dot_dimension_numbers<[1], [0], [0], [1], [0, 0, 1, 1], [], []>} : vector<8x128xf32>, vector<128x512xf32>, vector<8x512xf32> -> vector<8x512xf32>
    %470 = arith.addf %466, %469 : vector<8x512xf32>
    %471 = vector.extract_strided_slice %470 {offsets = [0, 0], sizes = [8, 128], strides = [1, 1]} : vector<8x512xf32> to vector<8x128xf32>
    %472 = arith.negf %471 : vector<8x128xf32>
    %473 = math.exp %472 : vector<8x128xf32>
    %cst_255 = arith.constant 1.000000e+00 : f32
    %474 = vector.broadcast %cst_255 : f32 to vector<8x128xf32>
    %475 = arith.addf %474, %473 : vector<8x128xf32>
    %476 = arith.divf %474, %475 : vector<8x128xf32>
    %477 = vector.extract_strided_slice %470 {offsets = [0, 128], sizes = [8, 128], strides = [1, 1]} : vector<8x512xf32> to vector<8x128xf32>
    %478 = arith.negf %477 : vector<8x128xf32>
    %479 = math.exp %478 : vector<8x128xf32>
    %cst_256 = arith.constant 1.000000e+00 : f32
    %480 = vector.broadcast %cst_256 : f32 to vector<8x128xf32>
    %481 = arith.addf %480, %479 : vector<8x128xf32>
    %482 = arith.divf %480, %481 : vector<8x128xf32>
    %483 = vector.extract_strided_slice %470 {offsets = [0, 256], sizes = [8, 128], strides = [1, 1]} : vector<8x512xf32> to vector<8x128xf32>
    %484 = math.tanh %483 : vector<8x128xf32>
    %485 = vector.extract_strided_slice %470 {offsets = [0, 384], sizes = [8, 128], strides = [1, 1]} : vector<8x512xf32> to vector<8x128xf32>
    %486 = arith.negf %485 : vector<8x128xf32>
    %487 = math.exp %486 : vector<8x128xf32>
    %cst_257 = arith.constant 1.000000e+00 : f32
    %488 = vector.broadcast %cst_257 : f32 to vector<8x128xf32>
    %489 = arith.addf %488, %487 : vector<8x128xf32>
    %490 = arith.divf %488, %489 : vector<8x128xf32>
    %491 = arith.mulf %482, %462 : vector<8x128xf32>
    %492 = arith.mulf %476, %484 : vector<8x128xf32>
    %493 = arith.addf %491, %492 : vector<8x128xf32>
    %494 = math.tanh %493 : vector<8x128xf32>
    %495 = arith.mulf %490, %494 : vector<8x128xf32>
    %c0_258 = arith.constant 0 : index
    %c0_259 = arith.constant 0 : index
    %496 = vector.load %arg9[%c0_258, %c0_259] : memref<8x128xf32, #tpu.memory_space<vmem>>, vector<8x128xf32>
    tpu.vector_store %arg9[%c0_258, %c0_259], %495 {strides = array<i32>} : memref<8x128xf32, #tpu.memory_space<vmem>>, vector<8x128xf32>,
    %c0_260 = arith.constant 0 : index
    %c0_261 = arith.constant 0 : index
    %497 = vector.load %arg10[%c0_260, %c0_261] : memref<8x128xf32, #tpu.memory_space<vmem>>, vector<8x128xf32>
    tpu.vector_store %arg10[%c0_260, %c0_261], %493 {strides = array<i32>} : memref<8x128xf32, #tpu.memory_space<vmem>>, vector<8x128xf32>,
    %498 = arith.index_cast %464 : i32 to index
    %c0_262 = arith.constant 0 : index
    %499 = vector.load %arg7[%498, %c0_262] : memref<64x128xf32, #tpu.memory_space<vmem>>, vector<8x128xf32>
    tpu.vector_store %arg7[%498, %c0_262], %495 {strides = array<i32>} : memref<64x128xf32, #tpu.memory_space<vmem>>, vector<8x128xf32>,
    %c4_i32_263 = arith.constant 4 : i32
    %c0_264 = arith.constant 0 : index
    %c0_265 = arith.constant 0 : index
    %500 = vector.load %arg9[%c0_264, %c0_265] : memref<8x128xf32, #tpu.memory_space<vmem>>, vector<8x128xf32>
    %c0_266 = arith.constant 0 : index
    %c0_267 = arith.constant 0 : index
    %501 = vector.load %arg10[%c0_266, %c0_267] : memref<8x128xf32, #tpu.memory_space<vmem>>, vector<8x128xf32>
    %c8_i32_268 = arith.constant 8 : i32
    %502 = arith.muli %c4_i32_263, %c8_i32_268 : i32
    %503 = tpu.assume_multiple %502, 8 : i32
    %504 = arith.index_cast %503 : i32 to index
    %c0_269 = arith.constant 0 : index
    %505 = vector.load %arg8[%504, %c0_269] : memref<64x512xf32, #tpu.memory_space<vmem>>, vector<8x512xf32>
    %c1_270 = arith.constant 1 : index
    %c0_271 = arith.constant 0 : index
    %c0_272 = arith.constant 0 : index
    %506 = vector.load %arg3[%c1_270, %c0_271, %c0_272] : memref<2x128x512xf32, #tpu.memory_space<vmem>>, vector<1x128x512xf32>
    %507 = vector.shape_cast %506 : vector<1x128x512xf32> to vector<128x512xf32>
    %cst_273 = arith.constant dense<0.000000e+00> : vector<8x512xf32>
    %508 = tpu.matmul %500, %507, %cst_273 {dimension_numbers = #tpu.dot_dimension_numbers<[1], [0], [0], [1], [0, 0, 1, 1], [], []>} : vector<8x128xf32>, vector<128x512xf32>, vector<8x512xf32> -> vector<8x512xf32>
    %509 = arith.addf %505, %508 : vector<8x512xf32>
    %510 = vector.extract_strided_slice %509 {offsets = [0, 0], sizes = [8, 128], strides = [1, 1]} : vector<8x512xf32> to vector<8x128xf32>
    %511 = arith.negf %510 : vector<8x128xf32>
    %512 = math.exp %511 : vector<8x128xf32>
    %cst_274 = arith.constant 1.000000e+00 : f32
    %513 = vector.broadcast %cst_274 : f32 to vector<8x128xf32>
    %514 = arith.addf %513, %512 : vector<8x128xf32>
    %515 = arith.divf %513, %514 : vector<8x128xf32>
    %516 = vector.extract_strided_slice %509 {offsets = [0, 128], sizes = [8, 128], strides = [1, 1]} : vector<8x512xf32> to vector<8x128xf32>
    %517 = arith.negf %516 : vector<8x128xf32>
    %518 = math.exp %517 : vector<8x128xf32>
    %cst_275 = arith.constant 1.000000e+00 : f32
    %519 = vector.broadcast %cst_275 : f32 to vector<8x128xf32>
    %520 = arith.addf %519, %518 : vector<8x128xf32>
    %521 = arith.divf %519, %520 : vector<8x128xf32>
    %522 = vector.extract_strided_slice %509 {offsets = [0, 256], sizes = [8, 128], strides = [1, 1]} : vector<8x512xf32> to vector<8x128xf32>
    %523 = math.tanh %522 : vector<8x128xf32>
    %524 = vector.extract_strided_slice %509 {offsets = [0, 384], sizes = [8, 128], strides = [1, 1]} : vector<8x512xf32> to vector<8x128xf32>
    %525 = arith.negf %524 : vector<8x128xf32>
    %526 = math.exp %525 : vector<8x128xf32>
    %cst_276 = arith.constant 1.000000e+00 : f32
    %527 = vector.broadcast %cst_276 : f32 to vector<8x128xf32>
    %528 = arith.addf %527, %526 : vector<8x128xf32>
    %529 = arith.divf %527, %528 : vector<8x128xf32>
    %530 = arith.mulf %521, %501 : vector<8x128xf32>
    %531 = arith.mulf %515, %523 : vector<8x128xf32>
    %532 = arith.addf %530, %531 : vector<8x128xf32>
    %533 = math.tanh %532 : vector<8x128xf32>
    %534 = arith.mulf %529, %533 : vector<8x128xf32>
    %c0_277 = arith.constant 0 : index
    %c0_278 = arith.constant 0 : index
    %535 = vector.load %arg9[%c0_277, %c0_278] : memref<8x128xf32, #tpu.memory_space<vmem>>, vector<8x128xf32>
    tpu.vector_store %arg9[%c0_277, %c0_278], %534 {strides = array<i32>} : memref<8x128xf32, #tpu.memory_space<vmem>>, vector<8x128xf32>,
    %c0_279 = arith.constant 0 : index
    %c0_280 = arith.constant 0 : index
    %536 = vector.load %arg10[%c0_279, %c0_280] : memref<8x128xf32, #tpu.memory_space<vmem>>, vector<8x128xf32>
    tpu.vector_store %arg10[%c0_279, %c0_280], %532 {strides = array<i32>} : memref<8x128xf32, #tpu.memory_space<vmem>>, vector<8x128xf32>,
    %537 = arith.index_cast %503 : i32 to index
    %c0_281 = arith.constant 0 : index
    %538 = vector.load %arg7[%537, %c0_281] : memref<64x128xf32, #tpu.memory_space<vmem>>, vector<8x128xf32>
    tpu.vector_store %arg7[%537, %c0_281], %534 {strides = array<i32>} : memref<64x128xf32, #tpu.memory_space<vmem>>, vector<8x128xf32>,
    %c5_i32_282 = arith.constant 5 : i32
    %c0_283 = arith.constant 0 : index
    %c0_284 = arith.constant 0 : index
    %539 = vector.load %arg9[%c0_283, %c0_284] : memref<8x128xf32, #tpu.memory_space<vmem>>, vector<8x128xf32>
    %c0_285 = arith.constant 0 : index
    %c0_286 = arith.constant 0 : index
    %540 = vector.load %arg10[%c0_285, %c0_286] : memref<8x128xf32, #tpu.memory_space<vmem>>, vector<8x128xf32>
    %c8_i32_287 = arith.constant 8 : i32
    %541 = arith.muli %c5_i32_282, %c8_i32_287 : i32
    %542 = tpu.assume_multiple %541, 8 : i32
    %543 = arith.index_cast %542 : i32 to index
    %c0_288 = arith.constant 0 : index
    %544 = vector.load %arg8[%543, %c0_288] : memref<64x512xf32, #tpu.memory_space<vmem>>, vector<8x512xf32>
    %c1_289 = arith.constant 1 : index
    %c0_290 = arith.constant 0 : index
    %c0_291 = arith.constant 0 : index
    %545 = vector.load %arg3[%c1_289, %c0_290, %c0_291] : memref<2x128x512xf32, #tpu.memory_space<vmem>>, vector<1x128x512xf32>
    %546 = vector.shape_cast %545 : vector<1x128x512xf32> to vector<128x512xf32>
    %cst_292 = arith.constant dense<0.000000e+00> : vector<8x512xf32>
    %547 = tpu.matmul %539, %546, %cst_292 {dimension_numbers = #tpu.dot_dimension_numbers<[1], [0], [0], [1], [0, 0, 1, 1], [], []>} : vector<8x128xf32>, vector<128x512xf32>, vector<8x512xf32> -> vector<8x512xf32>
    %548 = arith.addf %544, %547 : vector<8x512xf32>
    %549 = vector.extract_strided_slice %548 {offsets = [0, 0], sizes = [8, 128], strides = [1, 1]} : vector<8x512xf32> to vector<8x128xf32>
    %550 = arith.negf %549 : vector<8x128xf32>
    %551 = math.exp %550 : vector<8x128xf32>
    %cst_293 = arith.constant 1.000000e+00 : f32
    %552 = vector.broadcast %cst_293 : f32 to vector<8x128xf32>
    %553 = arith.addf %552, %551 : vector<8x128xf32>
    %554 = arith.divf %552, %553 : vector<8x128xf32>
    %555 = vector.extract_strided_slice %548 {offsets = [0, 128], sizes = [8, 128], strides = [1, 1]} : vector<8x512xf32> to vector<8x128xf32>
    %556 = arith.negf %555 : vector<8x128xf32>
    %557 = math.exp %556 : vector<8x128xf32>
    %cst_294 = arith.constant 1.000000e+00 : f32
    %558 = vector.broadcast %cst_294 : f32 to vector<8x128xf32>
    %559 = arith.addf %558, %557 : vector<8x128xf32>
    %560 = arith.divf %558, %559 : vector<8x128xf32>
    %561 = vector.extract_strided_slice %548 {offsets = [0, 256], sizes = [8, 128], strides = [1, 1]} : vector<8x512xf32> to vector<8x128xf32>
    %562 = math.tanh %561 : vector<8x128xf32>
    %563 = vector.extract_strided_slice %548 {offsets = [0, 384], sizes = [8, 128], strides = [1, 1]} : vector<8x512xf32> to vector<8x128xf32>
    %564 = arith.negf %563 : vector<8x128xf32>
    %565 = math.exp %564 : vector<8x128xf32>
    %cst_295 = arith.constant 1.000000e+00 : f32
    %566 = vector.broadcast %cst_295 : f32 to vector<8x128xf32>
    %567 = arith.addf %566, %565 : vector<8x128xf32>
    %568 = arith.divf %566, %567 : vector<8x128xf32>
    %569 = arith.mulf %560, %540 : vector<8x128xf32>
    %570 = arith.mulf %554, %562 : vector<8x128xf32>
    %571 = arith.addf %569, %570 : vector<8x128xf32>
    %572 = math.tanh %571 : vector<8x128xf32>
    %573 = arith.mulf %568, %572 : vector<8x128xf32>
    %c0_296 = arith.constant 0 : index
    %c0_297 = arith.constant 0 : index
    %574 = vector.load %arg9[%c0_296, %c0_297] : memref<8x128xf32, #tpu.memory_space<vmem>>, vector<8x128xf32>
    tpu.vector_store %arg9[%c0_296, %c0_297], %573 {strides = array<i32>} : memref<8x128xf32, #tpu.memory_space<vmem>>, vector<8x128xf32>,
    %c0_298 = arith.constant 0 : index
    %c0_299 = arith.constant 0 : index
    %575 = vector.load %arg10[%c0_298, %c0_299] : memref<8x128xf32, #tpu.memory_space<vmem>>, vector<8x128xf32>
    tpu.vector_store %arg10[%c0_298, %c0_299], %571 {strides = array<i32>} : memref<8x128xf32, #tpu.memory_space<vmem>>, vector<8x128xf32>,
    %576 = arith.index_cast %542 : i32 to index
    %c0_300 = arith.constant 0 : index
    %577 = vector.load %arg7[%576, %c0_300] : memref<64x128xf32, #tpu.memory_space<vmem>>, vector<8x128xf32>
    tpu.vector_store %arg7[%576, %c0_300], %573 {strides = array<i32>} : memref<64x128xf32, #tpu.memory_space<vmem>>, vector<8x128xf32>,
    %c6_i32_301 = arith.constant 6 : i32
    %c0_302 = arith.constant 0 : index
    %c0_303 = arith.constant 0 : index
    %578 = vector.load %arg9[%c0_302, %c0_303] : memref<8x128xf32, #tpu.memory_space<vmem>>, vector<8x128xf32>
    %c0_304 = arith.constant 0 : index
    %c0_305 = arith.constant 0 : index
    %579 = vector.load %arg10[%c0_304, %c0_305] : memref<8x128xf32, #tpu.memory_space<vmem>>, vector<8x128xf32>
    %c8_i32_306 = arith.constant 8 : i32
    %580 = arith.muli %c6_i32_301, %c8_i32_306 : i32
    %581 = tpu.assume_multiple %580, 8 : i32
    %582 = arith.index_cast %581 : i32 to index
    %c0_307 = arith.constant 0 : index
    %583 = vector.load %arg8[%582, %c0_307] : memref<64x512xf32, #tpu.memory_space<vmem>>, vector<8x512xf32>
    %c1_308 = arith.constant 1 : index
    %c0_309 = arith.constant 0 : index
    %c0_310 = arith.constant 0 : index
    %584 = vector.load %arg3[%c1_308, %c0_309, %c0_310] : memref<2x128x512xf32, #tpu.memory_space<vmem>>, vector<1x128x512xf32>
    %585 = vector.shape_cast %584 : vector<1x128x512xf32> to vector<128x512xf32>
    %cst_311 = arith.constant dense<0.000000e+00> : vector<8x512xf32>
    %586 = tpu.matmul %578, %585, %cst_311 {dimension_numbers = #tpu.dot_dimension_numbers<[1], [0], [0], [1], [0, 0, 1, 1], [], []>} : vector<8x128xf32>, vector<128x512xf32>, vector<8x512xf32> -> vector<8x512xf32>
    %587 = arith.addf %583, %586 : vector<8x512xf32>
    %588 = vector.extract_strided_slice %587 {offsets = [0, 0], sizes = [8, 128], strides = [1, 1]} : vector<8x512xf32> to vector<8x128xf32>
    %589 = arith.negf %588 : vector<8x128xf32>
    %590 = math.exp %589 : vector<8x128xf32>
    %cst_312 = arith.constant 1.000000e+00 : f32
    %591 = vector.broadcast %cst_312 : f32 to vector<8x128xf32>
    %592 = arith.addf %591, %590 : vector<8x128xf32>
    %593 = arith.divf %591, %592 : vector<8x128xf32>
    %594 = vector.extract_strided_slice %587 {offsets = [0, 128], sizes = [8, 128], strides = [1, 1]} : vector<8x512xf32> to vector<8x128xf32>
    %595 = arith.negf %594 : vector<8x128xf32>
    %596 = math.exp %595 : vector<8x128xf32>
    %cst_313 = arith.constant 1.000000e+00 : f32
    %597 = vector.broadcast %cst_313 : f32 to vector<8x128xf32>
    %598 = arith.addf %597, %596 : vector<8x128xf32>
    %599 = arith.divf %597, %598 : vector<8x128xf32>
    %600 = vector.extract_strided_slice %587 {offsets = [0, 256], sizes = [8, 128], strides = [1, 1]} : vector<8x512xf32> to vector<8x128xf32>
    %601 = math.tanh %600 : vector<8x128xf32>
    %602 = vector.extract_strided_slice %587 {offsets = [0, 384], sizes = [8, 128], strides = [1, 1]} : vector<8x512xf32> to vector<8x128xf32>
    %603 = arith.negf %602 : vector<8x128xf32>
    %604 = math.exp %603 : vector<8x128xf32>
    %cst_314 = arith.constant 1.000000e+00 : f32
    %605 = vector.broadcast %cst_314 : f32 to vector<8x128xf32>
    %606 = arith.addf %605, %604 : vector<8x128xf32>
    %607 = arith.divf %605, %606 : vector<8x128xf32>
    %608 = arith.mulf %599, %579 : vector<8x128xf32>
    %609 = arith.mulf %593, %601 : vector<8x128xf32>
    %610 = arith.addf %608, %609 : vector<8x128xf32>
    %611 = math.tanh %610 : vector<8x128xf32>
    %612 = arith.mulf %607, %611 : vector<8x128xf32>
    %c0_315 = arith.constant 0 : index
    %c0_316 = arith.constant 0 : index
    %613 = vector.load %arg9[%c0_315, %c0_316] : memref<8x128xf32, #tpu.memory_space<vmem>>, vector<8x128xf32>
    tpu.vector_store %arg9[%c0_315, %c0_316], %612 {strides = array<i32>} : memref<8x128xf32, #tpu.memory_space<vmem>>, vector<8x128xf32>,
    %c0_317 = arith.constant 0 : index
    %c0_318 = arith.constant 0 : index
    %614 = vector.load %arg10[%c0_317, %c0_318] : memref<8x128xf32, #tpu.memory_space<vmem>>, vector<8x128xf32>
    tpu.vector_store %arg10[%c0_317, %c0_318], %610 {strides = array<i32>} : memref<8x128xf32, #tpu.memory_space<vmem>>, vector<8x128xf32>,
    %615 = arith.index_cast %581 : i32 to index
    %c0_319 = arith.constant 0 : index
    %616 = vector.load %arg7[%615, %c0_319] : memref<64x128xf32, #tpu.memory_space<vmem>>, vector<8x128xf32>
    tpu.vector_store %arg7[%615, %c0_319], %612 {strides = array<i32>} : memref<64x128xf32, #tpu.memory_space<vmem>>, vector<8x128xf32>,
    %c7_i32_320 = arith.constant 7 : i32
    %c0_321 = arith.constant 0 : index
    %c0_322 = arith.constant 0 : index
    %617 = vector.load %arg9[%c0_321, %c0_322] : memref<8x128xf32, #tpu.memory_space<vmem>>, vector<8x128xf32>
    %c0_323 = arith.constant 0 : index
    %c0_324 = arith.constant 0 : index
    %618 = vector.load %arg10[%c0_323, %c0_324] : memref<8x128xf32, #tpu.memory_space<vmem>>, vector<8x128xf32>
    %c8_i32_325 = arith.constant 8 : i32
    %619 = arith.muli %c7_i32_320, %c8_i32_325 : i32
    %620 = tpu.assume_multiple %619, 8 : i32
    %621 = arith.index_cast %620 : i32 to index
    %c0_326 = arith.constant 0 : index
    %622 = vector.load %arg8[%621, %c0_326] : memref<64x512xf32, #tpu.memory_space<vmem>>, vector<8x512xf32>
    %c1_327 = arith.constant 1 : index
    %c0_328 = arith.constant 0 : index
    %c0_329 = arith.constant 0 : index
    %623 = vector.load %arg3[%c1_327, %c0_328, %c0_329] : memref<2x128x512xf32, #tpu.memory_space<vmem>>, vector<1x128x512xf32>
    %624 = vector.shape_cast %623 : vector<1x128x512xf32> to vector<128x512xf32>
    %cst_330 = arith.constant dense<0.000000e+00> : vector<8x512xf32>
    %625 = tpu.matmul %617, %624, %cst_330 {dimension_numbers = #tpu.dot_dimension_numbers<[1], [0], [0], [1], [0, 0, 1, 1], [], []>} : vector<8x128xf32>, vector<128x512xf32>, vector<8x512xf32> -> vector<8x512xf32>
    %626 = arith.addf %622, %625 : vector<8x512xf32>
    %627 = vector.extract_strided_slice %626 {offsets = [0, 0], sizes = [8, 128], strides = [1, 1]} : vector<8x512xf32> to vector<8x128xf32>
    %628 = arith.negf %627 : vector<8x128xf32>
    %629 = math.exp %628 : vector<8x128xf32>
    %cst_331 = arith.constant 1.000000e+00 : f32
    %630 = vector.broadcast %cst_331 : f32 to vector<8x128xf32>
    %631 = arith.addf %630, %629 : vector<8x128xf32>
    %632 = arith.divf %630, %631 : vector<8x128xf32>
    %633 = vector.extract_strided_slice %626 {offsets = [0, 128], sizes = [8, 128], strides = [1, 1]} : vector<8x512xf32> to vector<8x128xf32>
    %634 = arith.negf %633 : vector<8x128xf32>
    %635 = math.exp %634 : vector<8x128xf32>
    %cst_332 = arith.constant 1.000000e+00 : f32
    %636 = vector.broadcast %cst_332 : f32 to vector<8x128xf32>
    %637 = arith.addf %636, %635 : vector<8x128xf32>
    %638 = arith.divf %636, %637 : vector<8x128xf32>
    %639 = vector.extract_strided_slice %626 {offsets = [0, 256], sizes = [8, 128], strides = [1, 1]} : vector<8x512xf32> to vector<8x128xf32>
    %640 = math.tanh %639 : vector<8x128xf32>
    %641 = vector.extract_strided_slice %626 {offsets = [0, 384], sizes = [8, 128], strides = [1, 1]} : vector<8x512xf32> to vector<8x128xf32>
    %642 = arith.negf %641 : vector<8x128xf32>
    %643 = math.exp %642 : vector<8x128xf32>
    %cst_333 = arith.constant 1.000000e+00 : f32
    %644 = vector.broadcast %cst_333 : f32 to vector<8x128xf32>
    %645 = arith.addf %644, %643 : vector<8x128xf32>
    %646 = arith.divf %644, %645 : vector<8x128xf32>
    %647 = arith.mulf %638, %618 : vector<8x128xf32>
    %648 = arith.mulf %632, %640 : vector<8x128xf32>
    %649 = arith.addf %647, %648 : vector<8x128xf32>
    %650 = math.tanh %649 : vector<8x128xf32>
    %651 = arith.mulf %646, %650 : vector<8x128xf32>
    %c0_334 = arith.constant 0 : index
    %c0_335 = arith.constant 0 : index
    %652 = vector.load %arg9[%c0_334, %c0_335] : memref<8x128xf32, #tpu.memory_space<vmem>>, vector<8x128xf32>
    tpu.vector_store %arg9[%c0_334, %c0_335], %651 {strides = array<i32>} : memref<8x128xf32, #tpu.memory_space<vmem>>, vector<8x128xf32>,
    %c0_336 = arith.constant 0 : index
    %c0_337 = arith.constant 0 : index
    %653 = vector.load %arg10[%c0_336, %c0_337] : memref<8x128xf32, #tpu.memory_space<vmem>>, vector<8x128xf32>
    tpu.vector_store %arg10[%c0_336, %c0_337], %649 {strides = array<i32>} : memref<8x128xf32, #tpu.memory_space<vmem>>, vector<8x128xf32>,
    %654 = arith.index_cast %620 : i32 to index
    %c0_338 = arith.constant 0 : index
    %655 = vector.load %arg7[%654, %c0_338] : memref<64x128xf32, #tpu.memory_space<vmem>>, vector<8x128xf32>
    tpu.vector_store %arg7[%654, %c0_338], %651 {strides = array<i32>} : memref<64x128xf32, #tpu.memory_space<vmem>>, vector<8x128xf32>,
    %c8_i32_339 = arith.constant 8 : i32
    return
  }
  func.func @transform_0(%arg0: i32) -> (i32, i32) {
    %c0_i32 = arith.constant 0 : i32
    %c0_i32_0 = arith.constant 0 : i32
    %c0_i32_1 = arith.constant 0 : i32
    return %c0_i32, %c0_i32_0 : i32, i32
  }
  func.func @transform_1(%arg0: i32) -> (i32, i32, i32) {
    %c0_i32 = arith.constant 0 : i32
    %c0_i32_0 = arith.constant 0 : i32
    %c0_i32_1 = arith.constant 0 : i32
    %c0_i32_2 = arith.constant 0 : i32
    return %c0_i32, %c0_i32_0, %c0_i32_1 : i32, i32, i32
  }
  func.func @transform_2(%arg0: i32) -> (i32, i32, i32) {
    %c0_i32 = arith.constant 0 : i32
    %c0_i32_0 = arith.constant 0 : i32
    %c0_i32_1 = arith.constant 0 : i32
    %c0_i32_2 = arith.constant 0 : i32
    return %c0_i32, %c0_i32_0, %c0_i32_1 : i32, i32, i32
  }
  func.func @transform_3(%arg0: i32) -> (i32, i32, i32) {
    %c0_i32 = arith.constant 0 : i32
    %c0_i32_0 = arith.constant 0 : i32
    %c0_i32_1 = arith.constant 0 : i32
    %c0_i32_2 = arith.constant 0 : i32
    return %c0_i32, %c0_i32_0, %c0_i32_1 : i32, i32, i32
  }
  func.func @transform_4(%arg0: i32) -> (i32, i32, i32) {
    %c0_i32 = arith.constant 0 : i32
    %c0_i32_0 = arith.constant 0 : i32
    %c0_i32_1 = arith.constant 0 : i32
    %c0_i32_2 = arith.constant 0 : i32
    return %c0_i32, %c0_i32_0, %c0_i32_1 : i32, i32, i32
  }
  func.func @transform_5(%arg0: i32) -> (i32, i32, i32) {
    %c0_i32 = arith.constant 0 : i32
    %c0_i32_0 = arith.constant 0 : i32
    %c0_i32_1 = arith.constant 0 : i32
    %c0_i32_2 = arith.constant 0 : i32
    return %c0_i32, %c0_i32_0, %c0_i32_1 : i32, i32, i32
  }
  func.func @transform_6(%arg0: i32) -> (i32, i32) {
    %c0_i32 = arith.constant 0 : i32
    %c0_i32_0 = arith.constant 0 : i32
    %c0_i32_1 = arith.constant 0 : i32
    return %c0_i32, %c0_i32_0 : i32, i32
  }
}

</mosaic_0001>

<bundles_post_ra>
// kernel: tpu_custom_call.1
= control target key start
LH: loop header
LB: loop body
LE: loop exit
PB: predicated region body
PF: predicated region fallthrough
CT: control target
= control target key end

     0   :  { %11 = vsyncpa [#allocation6], 0  ;;  %s7637_s0 = inlined_call_operand.hbm [shape: f32[64,128], index: 0, kind: input, shape index: {}]   ;;  %s7638_s1 = inlined_call_operand.hbm [shape: f32[2,128,512], index: 1, kind: input, shape index: {}]   ;;  %s7639_s2 = inlined_call_operand.hbm [shape: f32[2,128,512], index: 2, kind: input, shape index: {}]   ;;  %s7640_s3 = inlined_call_operand.hbm [shape: f32[2,1,512], index: 3, kind: input, shape index: {}]   ;;  %s7641_s4 = inlined_call_operand.hbm [shape: f32[2,8,128], index: 4, kind: input, shape index: {}]   ;;  %s7642_s5 = inlined_call_operand.vmem [shape: f32[2,8,128], index: 5, kind: input, shape index: {}]   ;;  %s7643_s6 = inlined_call_operand.hbm [shape: f32[64,128], index: 6, kind: output, shape index: {}]  }
   0x1   :  { %12 = vsyncpa [#allocation9], 0 }
   0x2   :  { %13 = vsyncpa [#allocation12], 0 }
   0x3   :  { %14 = vsyncpa [#allocation7], 0  ;;  %s6508_s21 = smov [#allocation8]   ;;  %s6368_s25 = scalar_lea.hbm %s7638_s1, 16384 }
   0x4   :  { %s32_s22 = sshll.u32 %s6508_s21, 4  ;;  %p6369_p0 = scmp.ne.s32.totalorder %s7638_s1, %s6368_s25  ;;  %s33_s22 = int_to_ptr.vmem [resolvable:$true] %s32_s22 }
   0x5   :  { %p6372_p1 = scmp.lt.u32.totalorder %s6368_s25, %s7638_s1 }
   0x7   :  { %p6374_p2 = pnand %p6372_p1, %p6369_p0 }
   0x9   :  { %6377 = shalt.err (!%p6374_p2)
}
   0xa   :  { %s6378_s30 = scalar_lea.vmem %s33_s22, 16384  ;;  %p6383_p4 = scmp.lt.s32.totalorder %s33_s22, %s33_s22 }
   0xb   :  { %p6379_p3 = scmp.ne.s32.totalorder %s33_s22, %s6378_s30  ;;  %p6384_p5 = scmp.lt.s32.totalorder %s6378_s30, %s6378_s30 }
   0xd   :  { %p6385_p6 = por %p6384_p5, %p6383_p4 }
   0xf   :  { %p6386_p7 = pnand %p6385_p6, %p6379_p3 }
  0x11   :  { %6389 = shalt.err (!%p6386_p7)
}
  0x12   :  { %s6509_s7 = smov 512   ;;  %s6510_s8 = smov 32  }
  0x13   :  { %38 = dma.hbm_to_vmem [thread:$0]  %s7638_s1, 16384, %s33_s22, [#allocation9], %s6509_s7, %s6509_s7, %s6510_s8  }
  0x14   :  { %s6511_s11 = smov [#allocation11]   ;;  %s6390_s15 = scalar_lea.hbm %s7640_s3, 128 }
  0x15   :  { %s56_s12 = sshll.u32 %s6511_s11, 4  ;;  %p6391_p8 = scmp.ne.s32.totalorder %s7640_s3, %s6390_s15  ;;  %s57_s12 = int_to_ptr.vmem [resolvable:$true] %s56_s12 }
  0x16   :  { %p6394_p9 = scmp.lt.u32.totalorder %s6390_s15, %s7640_s3 }
  0x18   :  { %p6396_p10 = pnand %p6394_p9, %p6391_p8 }
  0x1a   :  { %6399 = shalt.err (!%p6396_p10)
}
  0x1b   :  { %s6400_s20 = scalar_lea.vmem %s57_s12, 128  ;;  %p6405_p12 = scmp.lt.s32.totalorder %s57_s12, %s57_s12 }
  0x1c   :  { %p6401_p11 = scmp.ne.s32.totalorder %s57_s12, %s6400_s20  ;;  %p6406_p13 = scmp.lt.s32.totalorder %s6400_s20, %s6400_s20 }
  0x1e   :  { %p6407_p0 = por %p6406_p13, %p6405_p12 }
  0x20   :  { %p6408_p1 = pnand %p6407_p0, %p6401_p11 }
  0x22   :  { %6411 = shalt.err (!%p6408_p1)
}
  0x23   :  { %s6512_s1 = smov 64   ;;  %s6513_s21 = smov 4  }
  0x24   :  { %62 = dma.hbm_to_vmem [thread:$0]  %s7640_s3, 128, %s57_s12, [#allocation12], %s6512_s1, %s6512_s1, %s6513_s21  }
  0x25   :  { %s6514_s24 = smov [#allocation5]   ;;  %s6412_s28 = scalar_lea.hbm %s7637_s0, 1024 }
  0x26   :  { %s20_s25 = sshll.u32 %s6514_s24, 4  ;;  %p6413_p2 = scmp.ne.s32.totalorder %s7637_s0, %s6412_s28  ;;  %s21_s25 = int_to_ptr.vmem [resolvable:$true] %s20_s25 }
  0x27   :  { %p6416_p3 = scmp.lt.u32.totalorder %s6412_s28, %s7637_s0 }
  0x29   :  { %p6418_p4 = pnand %p6416_p3, %p6413_p2 }
  0x2b   :  { %6421 = shalt.err (!%p6418_p4)
}
  0x2c   :  { %s6422_s11 = scalar_lea.vmem %s21_s25, 1024  ;;  %p6427_p6 = scmp.lt.s32.totalorder %s21_s25, %s21_s25 }
  0x2d   :  { %p6423_p5 = scmp.ne.s32.totalorder %s21_s25, %s6422_s11  ;;  %p6428_p7 = scmp.lt.s32.totalorder %s6422_s11, %s6422_s11 }
  0x2f   :  { %p6429_p8 = por %p6428_p7, %p6427_p6 }
  0x31   :  { %p6430_p9 = pnand %p6429_p8, %p6423_p5 }
  0x33   :  { %6433 = shalt.err (!%p6430_p9)
}
  0x34   :  { %s6515_s3 = smov 128   ;;  %s6516_s12 = smov 8  }
  0x35   :  { %26 = dma.hbm_to_vmem [thread:$0]  %s7637_s0, 1024, %s21_s25, [#allocation6], %s6515_s3, %s6515_s3, %s6516_s12  }
  0x36   :  { %s6517_s15 = smov [#allocation10]   ;;  %s6518_s17 = smov [#allocation13]  }
  0x37   :  { %s44_s16 = sshll.u32 %s6517_s15, 4  ;;  %s68_s18 = sshll.u32 %s6518_s17, 4  ;;  %s45_s16 = int_to_ptr.vmem [resolvable:$true] %s44_s16  ;;  %s69_s18 = int_to_ptr.vmem [resolvable:$true] %s68_s18 }
  0x38   :  { %s6434_s1 = scalar_lea.hbm %s7639_s2, 16384 }
  0x39   :  { %p6435_p10 = scmp.ne.s32.totalorder %s7639_s2, %s6434_s1  ;;  %p6438_p11 = scmp.lt.u32.totalorder %s6434_s1, %s7639_s2 }
  0x3b   :  { %p6440_p12 = pnand %p6438_p11, %p6435_p10 }
  0x3d   :  { %6443 = shalt.err (!%p6440_p12)
}
  0x3e   :  { %s6444_s0 = scalar_lea.vmem %s45_s16, 16384  ;;  %p6449_p0 = scmp.lt.s32.totalorder %s45_s16, %s45_s16 }
  0x3f   :  { %p6445_p13 = scmp.ne.s32.totalorder %s45_s16, %s6444_s0  ;;  %p6450_p1 = scmp.lt.s32.totalorder %s6444_s0, %s6444_s0 }
  0x41   :  { %p6451_p2 = por %p6450_p1, %p6449_p0 }
  0x43   :  { %p6452_p3 = pnand %p6451_p2, %p6445_p13 }
  0x45   :  { %6455 = shalt.err (!%p6452_p3)
}
  0x46   :  { %50 = dma.hbm_to_vmem [thread:$0]  %s7639_s2, 16384, %s45_s16, [#allocation9], %s6509_s7, %s6509_s7, %s6510_s8  }
  0x47   :  { %s6456_s29 = scalar_lea.hbm %s7641_s4, 256 }
  0x48   :  { %p6457_p4 = scmp.ne.s32.totalorder %s7641_s4, %s6456_s29  ;;  %p6460_p5 = scmp.lt.u32.totalorder %s6456_s29, %s7641_s4 }
  0x4a   :  { %p6462_p6 = pnand %p6460_p5, %p6457_p4 }
  0x4c   :  { %6465 = shalt.err (!%p6462_p6)
}
  0x4d   :  { %s6466_s13 = scalar_lea.vmem %s69_s18, 256  ;;  %p6471_p8 = scmp.lt.s32.totalorder %s69_s18, %s69_s18 }
  0x4e   :  { %p6467_p7 = scmp.ne.s32.totalorder %s69_s18, %s6466_s13  ;;  %p6472_p9 = scmp.lt.s32.totalorder %s6466_s13, %s6466_s13 }
  0x50   :  { %p6473_p10 = por %p6472_p9, %p6471_p8 }
  0x52   :  { %p6474_p11 = pnand %p6473_p10, %p6467_p7 }
  0x54   :  { %6477 = shalt.err (!%p6474_p11)
}
  0x55   :  { %74 = dma.hbm_to_vmem [thread:$0]  %s7641_s4, 256, %s69_s18, [#allocation12], %s6515_s3, %s6515_s3, %s6516_s12  }
  0x56   :  { %6500 = dma.done.wait [#allocation6], 1024  }
  0x57   :  { %6501 = vsyncadd [#allocation6], 4294966272 }
  0x58   :  { %6502 = dma.done.wait [#allocation9], 32768  }
  0x59   :  { %6503 = vsyncadd [#allocation9], 4294934528 }
  0x5a   :  { %6504 = dma.done.wait [#allocation12], 384  }
  0x5b   :  { %6505 = vsyncadd [#allocation12], 4294966912  ;;  %v6519_v0 = vmov 0.0   ;;  %v117_v1 = vld [vmem:[#allocation8 + $0x8] sm:$0xff]  ;;  %v119_v3 = vld [vmem:[#allocation8 + $0x18] sm:$0xff] }
  0x5c   :  { %266 = vmatprep.mubr.f32.mxu0 %v6519_v0  ;;  %379 = vmatprep.mubr.f32.mxu1 %v6519_v0  ;;  %v121_v2 = vld [vmem:[#allocation8 + $0x28] sm:$0xff]  ;;  %v123_v5 = vld [vmem:[#allocation8 + $0x38] sm:$0xff]  ;;  %v116_v6 = vld [vmem:[#allocation8] sm:$0xff] }
  0x5d   :  { %v4819_v4 = vpack.c.bf16 %v121_v2, %v117_v1  ;;  %v120_v7 = vld [vmem:[#allocation8 + $0x20] sm:$0xff]  ;;  %v4851_v8 = vpack.c.bf16 %v123_v5, %v119_v3  ;;  %v118_v10 = vld [vmem:[#allocation8 + $0x10] sm:$0xff]  ;;  %v125_v12 = vld [vmem:[#allocation8 + $0x48] sm:$0xff] }
  0x5e   :  { %v4821_v9 = vpack.c.bf16 %v120_v7, %v116_v6  ;;  %v122_v11 = vld [vmem:[#allocation8 + $0x30] sm:$0xff]  ;;  %v129_v14 = vld [vmem:[#allocation8 + $0x68] sm:$0xff]  ;;  %v127_v15 = vld [vmem:[#allocation8 + $0x58] sm:$0xff] }
  0x5f   :  { %4820 = vmatprep.subr.bf16.mxu0 %v4819_v4  ;;  %v4853_v13 = vpack.c.bf16 %v122_v11, %v118_v10  ;;  %v131_v16 = vld [vmem:[#allocation8 + $0x78] sm:$0xff]  ;;  %4852 = vmatprep.subr.bf16.mxu1 %v4851_v8  ;;  %v4823_v17 = vpack.c.bf16 %v129_v14, %v125_v12  ;;  %v124_v19 = vld [vmem:[#allocation8 + $0x40] sm:$0xff]  ;;  %v126_v21 = vld [vmem:[#allocation8 + $0x50] sm:$0xff] }
  0x60   :  { %4822 = vmatpush1.bf16.msra.mxu0 %v4821_v9  ;;  %v4855_v18 = vpack.c.bf16 %v131_v16, %v127_v15  ;;  %v128_v20 = vld [vmem:[#allocation8 + $0x60] sm:$0xff]  ;;  %v130_v23 = vld [vmem:[#allocation8 + $0x70] sm:$0xff]  ;;  %v133_v24 = vld [vmem:[#allocation8 + $0x88] sm:$0xff] }
  0x61   :  { %4854 = vmatpush1.bf16.msra.mxu1 %v4853_v13  ;;  %v4825_v22 = vpack.c.bf16 %v128_v20, %v124_v19  ;;  %v137_v25 = vld [vmem:[#allocation8 + $0xa8] sm:$0xff]  ;;  %4824 = vmatprep.subr.bf16.mxu0 %v4823_v17  ;;  %v4857_v26 = vpack.c.bf16 %v130_v23, %v126_v21  ;;  %v135_v28 = vld [vmem:[#allocation8 + $0x98] sm:$0xff]  ;;  %v132_v30 = vld [vmem:[#allocation8 + $0x80] sm:$0xff] }
  0x62   :  { %4856 = vmatprep.subr.bf16.mxu1 %v4855_v18  ;;  %v4827_v27 = vpack.c.bf16 %v137_v25, %v133_v24  ;;  %v139_v29 = vld [vmem:[#allocation8 + $0xb8] sm:$0xff]  ;;  %v136_v32 = vld [vmem:[#allocation8 + $0xa0] sm:$0xff]  ;;  %v134_v33 = vld [vmem:[#allocation8 + $0x90] sm:$0xff] }
  0x63   :  { %v4859_v31 = vpack.c.bf16 %v139_v29, %v135_v28  ;;  %v138_v34 = vld [vmem:[#allocation8 + $0xb0] sm:$0xff]  ;;  %v4829_v35 = vpack.c.bf16 %v136_v32, %v132_v30  ;;  %v141_v36 = vld [vmem:[#allocation8 + $0xc8] sm:$0xff]  ;;  %v143_v38 = vld [vmem:[#allocation8 + $0xd8] sm:$0xff] }
  0x64   :  { %4826 = vmatpush1.bf16.msra.mxu0 %v4825_v22  ;;  %v145_v37 = vld [vmem:[#allocation8 + $0xe8] sm:$0xff]  ;;  %v4861_v39 = vpack.c.bf16 %v138_v34, %v134_v33  ;;  %v147_v41 = vld [vmem:[#allocation8 + $0xf8] sm:$0xff]  ;;  %v140_v42 = vld [vmem:[#allocation8 + $0xc0] sm:$0xff] }
  0x65   :  { %4858 = vmatpush1.bf16.msra.mxu1 %v4857_v26  ;;  %4828 = vmatprep.subr.bf16.mxu0 %v4827_v27  ;;  %v4831_v40 = vpack.c.bf16 %v145_v37, %v141_v36  ;;  %v144_v43 = vld [vmem:[#allocation8 + $0xe0] sm:$0xff]  ;;  %v4863_v44 = vpack.c.bf16 %v147_v41, %v143_v38  ;;  %v142_v45 = vld [vmem:[#allocation8 + $0xd0] sm:$0xff]  ;;  %v149_v47 = vld [vmem:[#allocation8 + $0x108] sm:$0xff] }
  0x66   :  { %4860 = vmatprep.subr.bf16.mxu1 %v4859_v31  ;;  %v146_v46 = vld [vmem:[#allocation8 + $0xf0] sm:$0xff]  ;;  %v153_v48 = vld [vmem:[#allocation8 + $0x128] sm:$0xff]  ;;  %v151_v49 = vld [vmem:[#allocation8 + $0x118] sm:$0xff]  ;;  %v4833_v51 = vpack.c.bf16 %v144_v43, %v140_v42 }
  0x67   :  { %v155_v50 = vld [vmem:[#allocation8 + $0x138] sm:$0xff]  ;;  %v4865_v52 = vpack.c.bf16 %v146_v46, %v142_v45  ;;  %v4835_v53 = vpack.c.bf16 %v153_v48, %v149_v47  ;;  %v148_v54 = vld [vmem:[#allocation8 + $0x100] sm:$0xff]  ;;  %v150_v56 = vld [vmem:[#allocation8 + $0x110] sm:$0xff] }
  0x68   :  { %4830 = vmatpush1.bf16.msra.mxu0 %v4829_v35  ;;  %v152_v55 = vld [vmem:[#allocation8 + $0x120] sm:$0xff]  ;;  %v4867_v57 = vpack.c.bf16 %v155_v50, %v151_v49  ;;  %v154_v58 = vld [vmem:[#allocation8 + $0x130] sm:$0xff]  ;;  %v157_v59 = vld [vmem:[#allocation8 + $0x148] sm:$0xff] }
  0x69   :  { %4862 = vmatpush1.bf16.msra.mxu1 %v4861_v39  ;;  %4832 = vmatprep.subr.bf16.mxu0 %v4831_v40  ;;  %v161_v60 = vld [vmem:[#allocation8 + $0x168] sm:$0xff]  ;;  %v159_v61 = vld [vmem:[#allocation8 + $0x158] sm:$0xff]  ;;  %v4837_v63 = vpack.c.bf16 %v152_v55, %v148_v54  ;;  %v4869_v1 = vpack.c.bf16 %v154_v58, %v150_v56  ;;  %v156_v3 = vld [vmem:[#allocation8 + $0x140] sm:$0xff] }
  0x6a   :  { %4864 = vmatprep.subr.bf16.mxu1 %v4863_v44  ;;  %v163_v62 = vld [vmem:[#allocation8 + $0x178] sm:$0xff]  ;;  %v4839_v2 = vpack.c.bf16 %v161_v60, %v157_v59  ;;  %v160_v4 = vld [vmem:[#allocation8 + $0x160] sm:$0xff]  ;;  %v158_v5 = vld [vmem:[#allocation8 + $0x150] sm:$0xff] }
  0x6b   :  { %v4871_v6 = vpack.c.bf16 %v163_v62, %v159_v61  ;;  %v162_v7 = vld [vmem:[#allocation8 + $0x170] sm:$0xff]  ;;  %v165_v8 = vld [vmem:[#allocation8 + $0x188] sm:$0xff]  ;;  %v167_v10 = vld [vmem:[#allocation8 + $0x198] sm:$0xff]  ;;  %v4841_v12 = vpack.c.bf16 %v160_v4, %v156_v3 }
  0x6c   :  { %4834 = vmatpush1.bf16.msra.mxu0 %v4833_v51  ;;  %v169_v9 = vld [vmem:[#allocation8 + $0x1a8] sm:$0xff]  ;;  %v171_v11 = vld [vmem:[#allocation8 + $0x1b8] sm:$0xff]  ;;  %v4873_v13 = vpack.c.bf16 %v162_v7, %v158_v5  ;;  %v164_v15 = vld [vmem:[#allocation8 + $0x180] sm:$0xff] }
  0x6d   :  { %4866 = vmatpush1.bf16.msra.mxu1 %v4865_v52  ;;  %4836 = vmatprep.subr.bf16.mxu0 %v4835_v53  ;;  %v4843_v14 = vpack.c.bf16 %v169_v9, %v165_v8  ;;  %v168_v16 = vld [vmem:[#allocation8 + $0x1a0] sm:$0xff]  ;;  %v166_v17 = vld [vmem:[#allocation8 + $0x190] sm:$0xff]  ;;  %v4875_v18 = vpack.c.bf16 %v171_v11, %v167_v10  ;;  %v173_v20 = vld [vmem:[#allocation8 + $0x1c8] sm:$0xff] }
  0x6e   :  { %4868 = vmatprep.subr.bf16.mxu1 %v4867_v57  ;;  %v170_v19 = vld [vmem:[#allocation8 + $0x1b0] sm:$0xff]  ;;  %v177_v21 = vld [vmem:[#allocation8 + $0x1e8] sm:$0xff]  ;;  %v175_v22 = vld [vmem:[#allocation8 + $0x1d8] sm:$0xff]  ;;  %v4845_v24 = vpack.c.bf16 %v168_v16, %v164_v15 }
  0x6f   :  { %v179_v23 = vld [vmem:[#allocation8 + $0x1f8] sm:$0xff]  ;;  %v4877_v25 = vpack.c.bf16 %v170_v19, %v166_v17  ;;  %v4847_v26 = vpack.c.bf16 %v177_v21, %v173_v20  ;;  %v172_v27 = vld [vmem:[#allocation8 + $0x1c0] sm:$0xff]  ;;  %v174_v29 = vld [vmem:[#allocation8 + $0x1d0] sm:$0xff] }
  0x70   :  { %4838 = vmatpush1.bf16.msra.mxu0 %v4837_v63  ;;  %v176_v28 = vld [vmem:[#allocation8 + $0x1e0] sm:$0xff]  ;;  %v4879_v30 = vpack.c.bf16 %v179_v23, %v175_v22  ;;  %v178_v31 = vld [vmem:[#allocation8 + $0x1f0] sm:$0xff]  ;;  %v474_v32 = vld [vmem:[#allocation10 + $0x8] sm:$0xff] }
  0x71   :  { %4870 = vmatpush1.bf16.msra.mxu1 %v4869_v1  ;;  %4840 = vmatprep.subr.bf16.mxu0 %v4839_v2  ;;  %v478_v33 = vld [vmem:[#allocation10 + $0x28] sm:$0xff]  ;;  %v476_v34 = vld [vmem:[#allocation10 + $0x18] sm:$0xff]  ;;  %v4849_v36 = vpack.c.bf16 %v176_v28, %v172_v27  ;;  %v4881_v37 = vpack.c.bf16 %v178_v31, %v174_v29  ;;  %v473_v39 = vld [vmem:[#allocation10] sm:$0xff] }
  0x72   :  { %4872 = vmatprep.subr.bf16.mxu1 %v4871_v6  ;;  %v480_v35 = vld [vmem:[#allocation10 + $0x38] sm:$0xff]  ;;  %v6630_v38 = vpack.c.bf16 %v478_v33, %v474_v32  ;;  %v477_v40 = vld [vmem:[#allocation10 + $0x20] sm:$0xff]  ;;  %v475_v42 = vld [vmem:[#allocation10 + $0x10] sm:$0xff] }
  0x73   :  { %v6632_v41 = vpack.c.bf16 %v480_v35, %v476_v34  ;;  %v479_v43 = vld [vmem:[#allocation10 + $0x30] sm:$0xff]  ;;  %v482_v44 = vld [vmem:[#allocation10 + $0x48] sm:$0xff]  ;;  %v92_v46 = vld [vmem:[#allocation5] sm:$0xff]  ;;  %v6634_v47 = vpack.c.bf16 %v477_v40, %v473_v39 }
  0x74   :  { %4842 = vmatpush1.bf16.msra.mxu0 %v4841_v12  ;;  %v486_v45 = vld [vmem:[#allocation10 + $0x68] sm:$0xff]  ;;  %v484_v48 = vld [vmem:[#allocation10 + $0x58] sm:$0xff]  ;;  %v6637_v50 = vpack.c.bf16 %v479_v43, %v475_v42  ;;  %v481_v51 = vld [vmem:[#allocation10 + $0x40] sm:$0xff] }
  0x75   :  { %4874 = vmatpush1.bf16.msra.mxu1 %v4873_v13  ;;  %4844 = vmatprep.subr.bf16.mxu0 %v4843_v14  ;;  %v488_v49 = vld [vmem:[#allocation10 + $0x78] sm:$0xff]  ;;  %v485_v52 = vld [vmem:[#allocation10 + $0x60] sm:$0xff]  ;;  %v6640_v53 = vpack.c.bf16 %v486_v45, %v482_v44  ;;  %v483_v54 = vld [vmem:[#allocation10 + $0x50] sm:$0xff] }
  0x76   :  { %4876 = vmatprep.subr.bf16.mxu1 %v4875_v18  ;;  %v487_v55 = vld [vmem:[#allocation10 + $0x70] sm:$0xff]  ;;  %v6642_v56 = vpack.c.bf16 %v488_v49, %v484_v48  ;;  %v490_v57 = vld [vmem:[#allocation10 + $0x88] sm:$0xff]  ;;  %v6645_v60 = vpack.c.bf16 %v485_v52, %v481_v51  ;;  %v492_v61 = vld [vmem:[#allocation10 + $0x98] sm:$0xff] }
  0x77   :  { %v494_v58 = vld [vmem:[#allocation10 + $0xa8] sm:$0xff]  ;;  %v496_v62 = vld [vmem:[#allocation10 + $0xb8] sm:$0xff]  ;;  %v6649_v63 = vpack.c.bf16 %v487_v55, %v483_v54  ;;  %v489_v1 = vld [vmem:[#allocation10 + $0x80] sm:$0xff] }
  0x78   :  { %4846 = vmatpush1.bf16.msra.mxu0 %v4845_v24  ;;  %v93_v59 = vld [vmem:[#allocation5 + $0x8] sm:$0xff]  ;;  %v493_v2 = vld [vmem:[#allocation10 + $0xa0] sm:$0xff]  ;;  %v6653_v3 = vpack.c.bf16 %v494_v58, %v490_v57  ;;  %v491_v4 = vld [vmem:[#allocation10 + $0x90] sm:$0xff]  ;;  %v6656_v6 = vpack.c.bf16 %v496_v62, %v492_v61 }
  0x79   :  { %4878 = vmatpush1.bf16.msra.mxu1 %v4877_v25  ;;  %4848 = vmatprep.subr.bf16.mxu0 %v4847_v26  ;;  %v495_v5 = vld [vmem:[#allocation10 + $0xb0] sm:$0xff]  ;;  %v498_v7 = vld [vmem:[#allocation10 + $0xc8] sm:$0xff]  ;;  %v6659_v10 = vpack.c.bf16 %v493_v2, %v489_v1  ;;  %v500_v11 = vld [vmem:[#allocation10 + $0xd8] sm:$0xff] }
  0x7a   :  { %4880 = vmatprep.subr.bf16.mxu1 %v4879_v30  ;;  %v502_v8 = vld [vmem:[#allocation10 + $0xe8] sm:$0xff]  ;;  %v94_v9 = vld [vmem:[#allocation5 + $0x10] sm:$0xff]  ;;  %v504_v12 = vld [vmem:[#allocation10 + $0xf8] sm:$0xff]  ;;  %v6663_v13 = vpack.c.bf16 %v495_v5, %v491_v4 }
  0x7b   :  { %v497_v14 = vld [vmem:[#allocation10 + $0xc0] sm:$0xff]  ;;  %v6667_v16 = vpack.c.bf16 %v502_v8, %v498_v7  ;;  %v499_v17 = vld [vmem:[#allocation10 + $0xd0] sm:$0xff]  ;;  %v6670_v19 = vpack.c.bf16 %v504_v12, %v500_v11  ;;  %v506_v20 = vld [vmem:[#allocation10 + $0x108] sm:$0xff] }
  0x7c   :  { %4850 = vmatpush1.bf16.msra.mxu0 %v4849_v36  ;;  %v501_v15 = vld [vmem:[#allocation10 + $0xe0] sm:$0xff]  ;;  %v503_v18 = vld [vmem:[#allocation10 + $0xf0] sm:$0xff]  ;;  %v510_v21 = vld [vmem:[#allocation10 + $0x128] sm:$0xff] }
  0x7d   :  { %4882 = vmatpush1.bf16.msra.mxu1 %v4881_v37  ;;  %4884 = vmatprep.subr.bf16.mxu0 %v6630_v38  ;;  %v95_v22 = vld [vmem:[#allocation5 + $0x18] sm:$0xff]  ;;  %v6673_v23 = vpack.c.bf16 %v501_v15, %v497_v14  ;;  %v6677_v26 = vpack.c.bf16 %v503_v18, %v499_v17  ;;  %v505_v27 = vld [vmem:[#allocation10 + $0x100] sm:$0xff]  ;;  %v6681_v29 = vpack.c.bf16 %v510_v21, %v506_v20  ;;  %v507_v30 = vld [vmem:[#allocation10 + $0x110] sm:$0xff] }
  0x7e   :  { %4916 = vmatprep.subr.bf16.mxu1 %v6632_v41  ;;  %v508_v24 = vld [vmem:[#allocation10 + $0x118] sm:$0xff]  ;;  %v509_v28 = vld [vmem:[#allocation10 + $0x120] sm:$0xff]  ;;  %v511_v31 = vld [vmem:[#allocation10 + $0x130] sm:$0xff] }
  0x7f   :  { %267 = vmatmul.mubr.f32.vlgmr.msra.gmra.mrb[0].mxu0 %v92_v46  ;;  %v512_v25 = vld [vmem:[#allocation10 + $0x138] sm:$0xff]  ;;  %v514_v33 = vld [vmem:[#allocation10 + $0x148] sm:$0xff]  ;;  %v96_v35 = vld [vmem:[#allocation5 + $0x20] sm:$0xff]  ;;  %v6687_v36 = vpack.c.bf16 %v509_v28, %v505_v27  ;;  %v6691_v40 = vpack.c.bf16 %v511_v31, %v507_v30  ;;  %v182_v30 = vlaneseq }
  0x80   :  { %380 = vmatmul.mubr.f32.vlgmr.msra.gmra.mrb[0].mxu1 %v92_v46  ;;  %4886 = vmatpush1.bf16.msra.mxu0 %v6634_v47  ;;  %v6684_v32 = vpack.c.bf16 %v512_v25, %v508_v24  ;;  %v518_v34 = vld [vmem:[#allocation10 + $0x168] sm:$0xff]  ;;  %v516_v37 = vld [vmem:[#allocation10 + $0x158] sm:$0xff]  ;;  %v513_v42 = vld [vmem:[#allocation10 + $0x140] sm:$0xff] }
  0x81   :  { %4918 = vmatpush1.bf16.msra.mxu1 %v6637_v50  ;;  %272 = vmatprep.mubr.f32.mxu0 %v6519_v0  ;;  %v520_v39 = vld [vmem:[#allocation10 + $0x178] sm:$0xff]  ;;  %v517_v43 = vld [vmem:[#allocation10 + $0x160] sm:$0xff]  ;;  %v6695_v44 = vpack.c.bf16 %v518_v34, %v514_v33  ;;  %v515_v45 = vld [vmem:[#allocation10 + $0x150] sm:$0xff]  ;;  %v6778_v31 = vshrl.u32 %v182_v30, 7 }
  0x82   :  { %385 = vmatprep.mubr.f32.mxu1 %v6519_v0  ;;  %4888 = vmatprep.subr.bf16.mxu0 %v6640_v53  ;;  %v519_v46 = vld [vmem:[#allocation10 + $0x170] sm:$0xff]  ;;  %v6698_v48 = vpack.c.bf16 %v520_v39, %v516_v37  ;;  %v522_v49 = vld [vmem:[#allocation10 + $0x188] sm:$0xff]  ;;  %v6701_v54 = vpack.c.bf16 %v517_v43, %v513_v42  ;;  %v524_v55 = vld [vmem:[#allocation10 + $0x198] sm:$0xff] }
  0x83   :  { %273 = vmatmul.mubr.f32.gmra.mrb[2].mxu0 %v93_v59  ;;  %4920 = vmatprep.subr.bf16.mxu1 %v6642_v56  ;;  %v526_v51 = vld [vmem:[#allocation10 + $0x1a8] sm:$0xff]  ;;  %v528_v57 = vld [vmem:[#allocation10 + $0x1b8] sm:$0xff]  ;;  %v6705_v58 = vpack.c.bf16 %v519_v46, %v515_v45  ;;  %v525_v61 = vld [vmem:[#allocation10 + $0x1a0] sm:$0xff]  ;;  %v184_v33 = vsub.s32 0, %v6778_v31 }
  0x84   :  { %386 = vmatmul.mubr.f32.gmra.mrb[2].mxu1 %v93_v59  ;;  %4890 = vmatpush1.bf16.msra.mxu0 %v6645_v60  ;;  %v97_v52 = vld [vmem:[#allocation5 + $0x28] sm:$0xff]  ;;  %v521_v59 = vld [vmem:[#allocation10 + $0x180] sm:$0xff]  ;;  %v6709_v62 = vpack.c.bf16 %v526_v51, %v522_v49  ;;  %v523_v1 = vld [vmem:[#allocation10 + $0x190] sm:$0xff]  ;;  %v6712_v4 = vpack.c.bf16 %v528_v57, %v524_v55  ;;  %v192_v57 = vsub.s32 2, %v6778_v31 }
  0x85   :  { %4922 = vmatpush1.bf16.msra.mxu1 %v6649_v63  ;;  %278 = vmatprep.mubr.f32.mxu0 %v6519_v0  ;;  %v527_v2 = vld [vmem:[#allocation10 + $0x1b0] sm:$0xff]  ;;  %v530_v5 = vld [vmem:[#allocation10 + $0x1c8] sm:$0xff]  ;;  %v532_v11 = vld [vmem:[#allocation10 + $0x1d8] sm:$0xff] }
  0x86   :  { %391 = vmatprep.mubr.f32.mxu1 %v6519_v0  ;;  %4892 = vmatprep.subr.bf16.mxu0 %v6653_v3  ;;  %v534_v7 = vld [vmem:[#allocation10 + $0x1e8] sm:$0xff]  ;;  %v98_v8 = vld [vmem:[#allocation5 + $0x30] sm:$0xff]  ;;  %v536_v12 = vld [vmem:[#allocation10 + $0x1f8] sm:$0xff]  ;;  %v6719_v14 = vpack.c.bf16 %v527_v2, %v523_v1 }
  0x87   :  { %279 = vmatmul.mubr.f32.gmra.mrb[4].mxu0 %v94_v9  ;;  %4924 = vmatprep.subr.bf16.mxu1 %v6656_v6  ;;  %v529_v15 = vld [vmem:[#allocation10 + $0x1c0] sm:$0xff]  ;;  %v6723_v18 = vpack.c.bf16 %v534_v7, %v530_v5  ;;  %v531_v20 = vld [vmem:[#allocation10 + $0x1d0] sm:$0xff]  ;;  %v99_v24 = vld [vmem:[#allocation5 + $0x38] sm:$0xff] }
  0x88   :  { %392 = vmatmul.mubr.f32.gmra.mrb[4].mxu1 %v94_v9  ;;  %4894 = vmatpush1.bf16.msra.mxu0 %v6659_v10  ;;  %v6715_v9 = vpack.c.bf16 %v525_v61, %v521_v59  ;;  %v533_v17 = vld [vmem:[#allocation10 + $0x1e0] sm:$0xff]  ;;  %v535_v21 = vld [vmem:[#allocation10 + $0x1f0] sm:$0xff]  ;;  %v460_v28 = vld [vmem:[#allocation13] sm:$0xff] }
  0x89   :  { %4926 = vmatpush1.bf16.msra.mxu1 %v6663_v13  ;;  %284 = vmatprep.mubr.f32.mxu0 %v6519_v0  ;;  %v6729_v25 = vpack.c.bf16 %v533_v17, %v529_v15  ;;  %v6733_v27 = vpack.c.bf16 %v535_v21, %v531_v20  ;;  %v180_v34 = vld [vmem:[#allocation11] sm:$0xf] }
  0x8a   :  { %397 = vmatprep.mubr.f32.mxu1 %v6519_v0  ;;  %4896 = vmatprep.subr.bf16.mxu0 %v6667_v16  ;;  %v6784_v37 = vrot.slane %v180_v34, %v184_v33  ;;  %v6801_v61 = vrot.slane %v180_v34, %v192_v57  ;;  %v462_v17 = vld [vmem:[%s7642_s5] sm:$0xff] }
  0x8b   :  { %285 = vmatmul.mubr.f32.gmra.mrb[6].mxu0 %v95_v22  ;;  %4928 = vmatprep.subr.bf16.mxu1 %v6670_v19 }
  0x8c   :  { %398 = vmatmul.mubr.f32.gmra.mrb[6].mxu1 %v95_v22  ;;  %4898 = vmatpush1.bf16.msra.mxu0 %v6673_v23  ;;  %v6726_v22 = vpack.c.bf16 %v536_v12, %v532_v11 }
  0x8d   :  { %4930 = vmatpush1.bf16.msra.mxu1 %v6677_v26  ;;  %290 = vmatprep.mubr.f32.mxu0 %v6519_v0 }
  0x8e   :  { %403 = vmatprep.mubr.f32.mxu1 %v6519_v0  ;;  %4900 = vmatprep.subr.bf16.mxu0 %v6681_v29 }
  0x8f   :  { %291 = vmatmul.mubr.f32.gmra.mrb[8].mxu0 %v96_v35  ;;  %4932 = vmatprep.subr.bf16.mxu1 %v6684_v32 }
  0x90   :  { %404 = vmatmul.mubr.f32.gmra.mrb[8].mxu1 %v96_v35  ;;  %4902 = vmatpush1.bf16.msra.mxu0 %v6687_v36  ;;  %v188_v35 = vsub.s32 1, %v6778_v31 }
  0x91   :  { %4934 = vmatpush1.bf16.msra.mxu1 %v6691_v40  ;;  %296 = vmatprep.mubr.f32.mxu0 %v6519_v0 }
  0x92   :  { %409 = vmatprep.mubr.f32.mxu1 %v6519_v0  ;;  %4904 = vmatprep.subr.bf16.mxu0 %v6695_v44  ;;  %v6788_v39 = vrot.slane %v180_v34, %v188_v35 }
  0x93   :  { %297 = vmatmul.mubr.f32.gmra.mrb[10].mxu0 %v97_v52  ;;  %4936 = vmatprep.subr.bf16.mxu1 %v6698_v48 }
  0x94   :  { %410 = vmatmul.mubr.f32.gmra.mrb[10].mxu1 %v97_v52  ;;  %4906 = vmatpush1.bf16.msra.mxu0 %v6701_v54 }
  0x95   :  { %4938 = vmatpush1.bf16.msra.mxu1 %v6705_v58  ;;  %302 = vmatprep.mubr.f32.mxu0 %v6519_v0 }
  0x96   :  { %415 = vmatprep.mubr.f32.mxu1 %v6519_v0  ;;  %4908 = vmatprep.subr.bf16.mxu0 %v6709_v62 }
  0x97   :  { %303 = vmatmul.mubr.f32.gmra.mrb[12].mxu0 %v98_v8  ;;  %4940 = vmatprep.subr.bf16.mxu1 %v6712_v4 }
  0x98   :  { %416 = vmatmul.mubr.f32.gmra.mrb[12].mxu1 %v98_v8  ;;  %4910 = vmatpush1.bf16.msra.mxu0 %v6715_v9 }
  0x99   :  { %4942 = vmatpush1.bf16.msra.mxu1 %v6719_v14  ;;  %308 = vmatprep.mubr.f32.mxu0 %v6519_v0 }
  0x9a   :  { %421 = vmatprep.mubr.f32.mxu1 %v6519_v0  ;;  %4912 = vmatprep.subr.bf16.mxu0 %v6723_v18 }
  0x9b   :  { %309 = vmatmul.mubr.f32.gmra.mrb[14].mxu0 %v99_v24  ;;  %4944 = vmatprep.subr.bf16.mxu1 %v6726_v22 }
  0x9c   :  { %422 = vmatmul.mubr.f32.gmra.mrb[14].mxu1 %v99_v24  ;;  %4914 = vmatpush1.bf16.msra.mxu0 %v6729_v25 }
  0x9d   :  { %4946 = vmatpush1.bf16.msra.mxu1 %v6733_v27  ;;  %601 = vmatprep.mubr.f32.mxu0 %v6519_v0 }
  0x9e   :  { %672 = vmatprep.mubr.f32.mxu1 %v6519_v0  ;;  %4948 = vmatprep.subr.bf16.mxu0 %v6630_v38 }
  0x9f   :  { %602 = vmatmul.mubr.f32.vlgmr.msra.gmra.mrb[0].mxu0 %v460_v28  ;;  %4980 = vmatprep.subr.bf16.mxu1 %v6632_v41 }
  0xa0   :  { %673 = vmatmul.mubr.f32.vlgmr.msra.gmra.mrb[0].mxu1 %v460_v28  ;;  %4950 = vmatpush1.bf16.msra.mxu0 %v6634_v47 }
  0xa1   :  { %4982 = vmatpush1.bf16.msra.mxu1 %v6637_v50  ;;  %4952 = vmatprep.subr.bf16.mxu0 %v6640_v53 }
  0xa2   :  { %4984 = vmatprep.subr.bf16.mxu1 %v6642_v56  ;;  %847 = vmatprep.mubr.f32.mxu0 %v6519_v0 }
  0xa3   :  { %918 = vmatprep.mubr.f32.mxu1 %v6519_v0 }
  0xa4   :  { %4954 = vmatpush1.bf16.msra.mxu0 %v6645_v60 }
  0xa5   :  { %4986 = vmatpush1.bf16.msra.mxu1 %v6649_v63  ;;  %4956 = vmatprep.subr.bf16.mxu0 %v6653_v3 }
  0xa6   :  { %4988 = vmatprep.subr.bf16.mxu1 %v6656_v6 }
  0xa8   :  { %4958 = vmatpush1.bf16.msra.mxu0 %v6659_v10 }
  0xa9   :  { %4990 = vmatpush1.bf16.msra.mxu1 %v6663_v13  ;;  %4960 = vmatprep.subr.bf16.mxu0 %v6667_v16 }
  0xaa   :  { %4992 = vmatprep.subr.bf16.mxu1 %v6670_v19 }
  0xac   :  { %4962 = vmatpush1.bf16.msra.mxu0 %v6673_v23 }
  0xad   :  { %4994 = vmatpush1.bf16.msra.mxu1 %v6677_v26  ;;  %4964 = vmatprep.subr.bf16.mxu0 %v6681_v29 }
  0xae   :  { %4996 = vmatprep.subr.bf16.mxu1 %v6684_v32 }
  0xb0   :  { %4966 = vmatpush1.bf16.msra.mxu0 %v6687_v36 }
  0xb1   :  { %4998 = vmatpush1.bf16.msra.mxu1 %v6691_v40  ;;  %4968 = vmatprep.subr.bf16.mxu0 %v6695_v44 }
  0xb2   :  { %5000 = vmatprep.subr.bf16.mxu1 %v6698_v48 }
  0xb4   :  { %4970 = vmatpush1.bf16.msra.mxu0 %v6701_v54 }
  0xb5   :  { %5002 = vmatpush1.bf16.msra.mxu1 %v6705_v58  ;;  %4972 = vmatprep.subr.bf16.mxu0 %v6709_v62 }
  0xb6   :  { %5004 = vmatprep.subr.bf16.mxu1 %v6712_v4 }
  0xb8   :  { %4974 = vmatpush1.bf16.msra.mxu0 %v6715_v9 }
  0xb9   :  { %5006 = vmatpush1.bf16.msra.mxu1 %v6719_v14  ;;  %4976 = vmatprep.subr.bf16.mxu0 %v6723_v18 }
  0xba   :  { %5008 = vmatprep.subr.bf16.mxu1 %v6726_v22 }
  0xbc   :  { %4978 = vmatpush1.bf16.msra.mxu0 %v6729_v25 }
  0xbd   :  { %5010 = vmatpush1.bf16.msra.mxu1 %v6733_v27  ;;  %5012 = vmatprep.subr.bf16.mxu0 %v6630_v38  ;;  %v196_v38 = vsub.s32 3, %v6778_v31 }
  0xbe   :  { %5044 = vmatprep.subr.bf16.mxu1 %v6632_v41 }
  0xbf   :  { %v6795_v55 = vrot.slane %v180_v34, %v196_v38 }
 0x172   :  { %v603_v42 = vpop.f32.mrb[0].mxu0 }
 0x173   :  { %v5971_v41 = vadd.f32 %v603_v42, %v6784_v37  ;;  %v674_v43 = vpop.f32.mrb[0].mxu1  ;;  %v605_v45 = vpop.f32.mrb[1].mxu0 }
 0x174   :  { %v5972_v46 = vadd.f32 %v605_v45, %v6788_v39  ;;  %v676_v49 = vpop.f32.mrb[1].mxu1  ;;  %v5987_v2 = vadd.f32 %v674_v43, %v6801_v61 }
 0x175   :  { %v4770_v51 = vmul.f32 -1.442695, %v5971_v41  ;;  %v5988_v59 = vadd.f32 %v676_v49, %v6795_v55 }
 0x176   :  { %v4771_v52 = vmul.f32 -1.442695, %v5972_v46 }
 0x177   :  { %6112 = vpow2.f32 %v4770_v51  ;;  %v4772_v1 = vmul.f32 -1.442695, %v5988_v59 }
 0x178   :  { %6114 = vpow2.f32 %v4771_v52 }
 0x179   :  { %6116 = vpow2.f32 %v4772_v1 }
 0x17a   :  { %6118 = vtanh.f32 %v5987_v2 }
 0x181   :  { %v6113_v5 = vpop.eup %6112 }
 0x182   :  { %v6115_v7 = vpop.eup %6114  ;;  %v686_v8 = vadd.f32 1.0, %v6113_v5 }
 0x183   :  { %v692_v11 = vadd.f32 1.0, %v6115_v7  ;;  %v6117_v12 = vpop.eup %6116 }
 0x184   :  { %6120 = vrcp.f32 %v686_v8  ;;  %v6119_v15 = vpop.eup %6118  ;;  %v699_v28 = vadd.f32 1.0, %v6117_v12  ;;  %v1214_v12 = vld [vmem:[#allocation10 + $0x8] sm:$0xff] }
 0x185   :  { %6122 = vrcp.f32 %v692_v11 }
 0x186   :  { %6124 = vrcp.f32 %v699_v28  ;;  %v1217_v28 = vld [vmem:[#allocation10 + $0x20] sm:$0xff] }
 0x18e   :  { %v6121_v20 = vpop.eup %6120 }
 0x18f   :  { %v6123_v21 = vpop.eup %6122  ;;  %v703_v24 = vmul.f32 %v6121_v20, %v6119_v15  ;;  %v1218_v15 = vld [vmem:[#allocation10 + $0x28] sm:$0xff] }
 0x190   :  { %v702_v30 = vmul.f32 %v6123_v21, %v462_v17  ;;  %v6125_v42 = vpop.eup %6124  ;;  %v1216_v17 = vld [vmem:[#allocation10 + $0x18] sm:$0xff]  ;;  %v6852_v20 = vpack.c.bf16 %v1218_v15, %v1214_v12  ;;  %v1242_v12 = vld [vmem:[#allocation10 + $0xe8] sm:$0xff] }
 0x191   :  { %v1220_v21 = vld [vmem:[#allocation10 + $0x38] sm:$0xff] }
 0x192   :  { %v6807_v34 = vadd.f32 %v703_v24, %v702_v30  ;;  %v1213_v24 = vld [vmem:[#allocation10] sm:$0xff]  ;;  %v6854_v30 = vpack.c.bf16 %v1220_v21, %v1216_v17  ;;  %v1240_v15 = vld [vmem:[#allocation10 + $0xd8] sm:$0xff] }
 0x193   :  { %v1244_v21 = vld [vmem:[#allocation10 + $0xf8] sm:$0xff] }
 0x194   :  { %6126 = vtanh.f32 %v6807_v34 }
 0x19e   :  { %v6127_v41 = vpop.eup %6126 }
 0x19f   :  { %v706_v43 = vmul.f32 %v6127_v41, %v6125_v42  ;;  %v1215_v42 = vld [vmem:[#allocation10 + $0x10] sm:$0xff] }
 0x1a0   :  { %v1219_v41 = vld [vmem:[#allocation10 + $0x30] sm:$0xff] }
 0x1a1   :  { %709 = vst [vmem:[#allocation14] sm:$0xff] %v706_v43  ;;  %848 = vmatmul.mubr.f32.vlgmr.msra.gmra.mrb[2].mxu0 %v706_v43  ;;  %919 = vmatmul.mubr.f32.vlgmr.msra.gmra.mrb[2].mxu1 %v706_v43  ;;  %v6859_v43 = vpack.c.bf16 %v1219_v41, %v1215_v42  ;;  %v6890_v42 = vpack.c.bf16 %v1244_v21, %v1240_v15  ;;  %v1496_v15 = vld [vmem:[#allocation10 + $0x120] sm:$0xff] }
 0x1a2   :  { %5014 = vmatpush1.bf16.msra.mxu0 %v6634_v47  ;;  %5046 = vmatpush1.bf16.msra.mxu1 %v6637_v50 }
 0x1a3   :  { %5016 = vmatprep.subr.bf16.mxu0 %v6640_v53  ;;  %5048 = vmatprep.subr.bf16.mxu1 %v6642_v56 }
 0x1a4   :  { %1094 = vmatprep.mubr.f32.mxu0 %v6519_v0  ;;  %1165 = vmatprep.mubr.f32.mxu1 %v6519_v0 }
 0x1a6   :  { %5018 = vmatpush1.bf16.msra.mxu0 %v6645_v60  ;;  %5050 = vmatpush1.bf16.msra.mxu1 %v6649_v63 }
 0x1a7   :  { %5020 = vmatprep.subr.bf16.mxu0 %v6653_v3  ;;  %5052 = vmatprep.subr.bf16.mxu1 %v6656_v6 }
 0x1aa   :  { %5022 = vmatpush1.bf16.msra.mxu0 %v6659_v10  ;;  %5054 = vmatpush1.bf16.msra.mxu1 %v6663_v13 }
 0x1ab   :  { %5024 = vmatprep.subr.bf16.mxu0 %v6667_v16  ;;  %5056 = vmatprep.subr.bf16.mxu1 %v6670_v19 }
 0x1ae   :  { %5026 = vmatpush1.bf16.msra.mxu0 %v6673_v23  ;;  %5058 = vmatpush1.bf16.msra.mxu1 %v6677_v26 }
 0x1af   :  { %5028 = vmatprep.subr.bf16.mxu0 %v6681_v29  ;;  %5060 = vmatprep.subr.bf16.mxu1 %v6684_v32 }
 0x1b2   :  { %5030 = vmatpush1.bf16.msra.mxu0 %v6687_v36  ;;  %5062 = vmatpush1.bf16.msra.mxu1 %v6691_v40 }
 0x1b3   :  { %5032 = vmatprep.subr.bf16.mxu0 %v6695_v44  ;;  %5064 = vmatprep.subr.bf16.mxu1 %v6698_v48 }
 0x1b6   :  { %5034 = vmatpush1.bf16.msra.mxu0 %v6701_v54  ;;  %5066 = vmatpush1.bf16.msra.mxu1 %v6705_v58 }
 0x1b7   :  { %5036 = vmatprep.subr.bf16.mxu0 %v6709_v62  ;;  %5068 = vmatprep.subr.bf16.mxu1 %v6712_v4 }
 0x1ba   :  { %5038 = vmatpush1.bf16.msra.mxu0 %v6715_v9  ;;  %5070 = vmatpush1.bf16.msra.mxu1 %v6719_v14 }
 0x1bb   :  { %5040 = vmatprep.subr.bf16.mxu0 %v6723_v18  ;;  %5072 = vmatprep.subr.bf16.mxu1 %v6726_v22 }
 0x1be   :  { %5042 = vmatpush1.bf16.msra.mxu0 %v6729_v25  ;;  %5074 = vmatpush1.bf16.msra.mxu1 %v6733_v27 }
 0x1bf   :  { %5076 = vmatprep.subr.bf16.mxu0 %v6852_v20  ;;  %5108 = vmatprep.subr.bf16.mxu1 %v6854_v30 }
 0x274   :  { %v849_v47 = vpop.f32.mrb[2].mxu0  ;;  %v920_v50 = vpop.f32.mrb[2].mxu1 }
 0x275   :  { %v5973_v53 = vadd.f32 %v849_v47, %v6784_v37  ;;  %v851_v56 = vpop.f32.mrb[3].mxu0  ;;  %v922_v60 = vpop.f32.mrb[3].mxu1  ;;  %v5989_v16 = vadd.f32 %v920_v50, %v6801_v61  ;;  %v1222_v47 = vld [vmem:[#allocation10 + $0x48] sm:$0xff] }
 0x276   :  { %v5974_v63 = vadd.f32 %v851_v56, %v6788_v39  ;;  %v5990_v10 = vadd.f32 %v922_v60, %v6795_v55  ;;  %v1226_v50 = vld [vmem:[#allocation10 + $0x68] sm:$0xff]  ;;  %v1228_v60 = vld [vmem:[#allocation10 + $0x78] sm:$0xff] }
 0x277   :  { %v4773_v3 = vmul.f32 -1.442695, %v5973_v53  ;;  %v1224_v53 = vld [vmem:[#allocation10 + $0x58] sm:$0xff]  ;;  %v6864_v56 = vpack.c.bf16 %v1226_v50, %v1222_v47  ;;  %v1239_v47 = vld [vmem:[#allocation10 + $0xd0] sm:$0xff] }
 0x278   :  { %v4774_v6 = vmul.f32 -1.442695, %v5974_v63  ;;  %v4775_v13 = vmul.f32 -1.442695, %v5990_v10  ;;  %v1221_v63 = vld [vmem:[#allocation10 + $0x40] sm:$0xff]  ;;  %v1243_v50 = vld [vmem:[#allocation10 + $0xf0] sm:$0xff] }
 0x279   :  { %6128 = vpow2.f32 %v4773_v3  ;;  %v1225_v3 = vld [vmem:[#allocation10 + $0x60] sm:$0xff] }
 0x27a   :  { %6130 = vpow2.f32 %v4774_v6  ;;  %v6866_v6 = vpack.c.bf16 %v1228_v60, %v1224_v53  ;;  %v6868_v10 = vpack.c.bf16 %v1225_v3, %v1221_v63  ;;  %v6895_v53 = vpack.c.bf16 %v1243_v50, %v1239_v47  ;;  %v1498_v47 = vld [vmem:[#allocation10 + $0x130] sm:$0xff] }
 0x27b   :  { %6132 = vpow2.f32 %v4775_v13  ;;  %v1223_v13 = vld [vmem:[#allocation10 + $0x50] sm:$0xff] }
 0x27c   :  { %6134 = vtanh.f32 %v5989_v16  ;;  %v1227_v16 = vld [vmem:[#allocation10 + $0x70] sm:$0xff] }
 0x283   :  { %v6129_v19 = vpop.eup %6128 }
 0x284   :  { %v6131_v23 = vpop.eup %6130  ;;  %v932_v26 = vadd.f32 1.0, %v6129_v19  ;;  %v6871_v19 = vpack.c.bf16 %v1227_v16, %v1223_v13 }
 0x285   :  { %v938_v45 = vadd.f32 1.0, %v6131_v23  ;;  %v6133_v46 = vpop.eup %6132  ;;  %v1230_v23 = vld [vmem:[#allocation10 + $0x88] sm:$0xff] }
 0x286   :  { %6136 = vrcp.f32 %v932_v26  ;;  %v6135_v49 = vpop.eup %6134  ;;  %v945_v1 = vadd.f32 1.0, %v6133_v46  ;;  %v1234_v26 = vld [vmem:[#allocation10 + $0xa8] sm:$0xff] }
 0x287   :  { %6138 = vrcp.f32 %v938_v45  ;;  %v1232_v45 = vld [vmem:[#allocation10 + $0x98] sm:$0xff]  ;;  %v6876_v46 = vpack.c.bf16 %v1234_v26, %v1230_v23 }
 0x288   :  { %6140 = vrcp.f32 %v945_v1 }
 0x290   :  { %v6137_v51 = vpop.eup %6136 }
 0x291   :  { %v6139_v52 = vpop.eup %6138  ;;  %v949_v59 = vmul.f32 %v6137_v51, %v6135_v49  ;;  %v1236_v49 = vld [vmem:[#allocation10 + $0xb8] sm:$0xff]  ;;  %v1229_v51 = vld [vmem:[#allocation10 + $0x80] sm:$0xff] }
 0x292   :  { %v948_v2 = vmul.f32 %v6139_v52, %v6807_v34  ;;  %v6141_v7 = vpop.eup %6140  ;;  %v6856_v34 = vpack.c.bf16 %v1217_v28, %v1213_v24  ;;  %v1233_v52 = vld [vmem:[#allocation10 + $0xa0] sm:$0xff] }
 0x293   :  { %v6880_v1 = vpack.c.bf16 %v1233_v52, %v1229_v51  ;;  %v1237_v24 = vld [vmem:[#allocation10 + $0xc0] sm:$0xff]  ;;  %v1497_v52 = vld [vmem:[#allocation10 + $0x128] sm:$0xff] }
 0x294   :  { %v6847_v5 = vadd.f32 %v949_v59, %v948_v2  ;;  %v6878_v59 = vpack.c.bf16 %v1236_v49, %v1232_v45  ;;  %v1231_v2 = vld [vmem:[#allocation10 + $0x90] sm:$0xff]  ;;  %v1241_v28 = vld [vmem:[#allocation10 + $0xe0] sm:$0xff] }
 0x295   :  { %v6892_v41 = vpack.c.bf16 %v1241_v28, %v1237_v24  ;;  %v1494_v28 = vld [vmem:[#allocation10 + $0x110] sm:$0xff] }
 0x296   :  { %6142 = vtanh.f32 %v6847_v5  ;;  %v6949_v50 = vpack.c.bf16 %v1498_v47, %v1494_v28  ;;  %v1520_v28 = vld [vmem:[#allocation10 + $0x1e0] sm:$0xff]  ;;  %v1518_v47 = vld [vmem:[#allocation10 + $0x1d0] sm:$0xff] }
 0x2a0   :  { %v6143_v8 = vpop.eup %6142 }
 0x2a1   :  { %v952_v11 = vmul.f32 %v6143_v8, %v6141_v7  ;;  %v1235_v7 = vld [vmem:[#allocation10 + $0xb0] sm:$0xff] }
 0x2a2   :  { %v6883_v8 = vpack.c.bf16 %v1235_v7, %v1231_v2  ;;  %v1495_v2 = vld [vmem:[#allocation10 + $0x118] sm:$0xff] }
 0x2a3   :  { %956 = vst [vmem:[#allocation14 + $0x8] sm:$0xff] %v952_v11  ;;  %1095 = vmatmul.mubr.f32.vlgmr.msra.gmra.mrb[4].mxu0 %v952_v11  ;;  %1166 = vmatmul.mubr.f32.vlgmr.msra.gmra.mrb[4].mxu1 %v952_v11  ;;  %v1238_v11 = vld [vmem:[#allocation10 + $0xc8] sm:$0xff] }
 0x2a4   :  { %1341 = vmatprep.mubr.f32.mxu0 %v6519_v0  ;;  %1412 = vmatprep.mubr.f32.mxu1 %v6519_v0  ;;  %v6888_v17 = vpack.c.bf16 %v1242_v12, %v1238_v11  ;;  %v1499_v11 = vld [vmem:[#allocation10 + $0x138] sm:$0xff]  ;;  %v1492_v12 = vld [vmem:[#allocation10 + $0x100] sm:$0xff] }
 0x2a5   :  { %5078 = vmatpush1.bf16.msra.mxu0 %v6856_v34  ;;  %5110 = vmatpush1.bf16.msra.mxu1 %v6859_v43  ;;  %v6944_v21 = vpack.c.bf16 %v1499_v11, %v1495_v2  ;;  %v6946_v24 = vpack.c.bf16 %v1496_v15, %v1492_v12  ;;  %v1519_v2 = vld [vmem:[#allocation10 + $0x1d8] sm:$0xff]  ;;  %v1516_v12 = vld [vmem:[#allocation10 + $0x1c0] sm:$0xff] }
 0x2a6   :  { %5080 = vmatprep.subr.bf16.mxu0 %v6864_v56  ;;  %5112 = vmatprep.subr.bf16.mxu1 %v6866_v6  ;;  %v1523_v11 = vld [vmem:[#allocation10 + $0x1f8] sm:$0xff] }
 0x2a7   :  { %v6978_v15 = vpack.c.bf16 %v1523_v11, %v1519_v2 }
 0x2a9   :  { %5082 = vmatpush1.bf16.msra.mxu0 %v6868_v10  ;;  %5114 = vmatpush1.bf16.msra.mxu1 %v6871_v19 }
 0x2aa   :  { %5084 = vmatprep.subr.bf16.mxu0 %v6876_v46  ;;  %5116 = vmatprep.subr.bf16.mxu1 %v6878_v59 }
 0x2ad   :  { %5086 = vmatpush1.bf16.msra.mxu0 %v6880_v1  ;;  %5118 = vmatpush1.bf16.msra.mxu1 %v6883_v8 }
 0x2ae   :  { %5088 = vmatprep.subr.bf16.mxu0 %v6888_v17  ;;  %5120 = vmatprep.subr.bf16.mxu1 %v6890_v42 }
 0x2b1   :  { %5090 = vmatpush1.bf16.msra.mxu0 %v6892_v41  ;;  %5122 = vmatpush1.bf16.msra.mxu1 %v6895_v53 }
 0x2b2   :  { %5092 = vmatprep.subr.bf16.mxu0 %v6681_v29  ;;  %5124 = vmatprep.subr.bf16.mxu1 %v6684_v32 }
 0x2b5   :  { %5094 = vmatpush1.bf16.msra.mxu0 %v6687_v36  ;;  %5126 = vmatpush1.bf16.msra.mxu1 %v6691_v40 }
 0x2b6   :  { %5096 = vmatprep.subr.bf16.mxu0 %v6695_v44  ;;  %5128 = vmatprep.subr.bf16.mxu1 %v6698_v48 }
 0x2b9   :  { %5098 = vmatpush1.bf16.msra.mxu0 %v6701_v54  ;;  %5130 = vmatpush1.bf16.msra.mxu1 %v6705_v58 }
 0x2ba   :  { %5100 = vmatprep.subr.bf16.mxu0 %v6709_v62  ;;  %5132 = vmatprep.subr.bf16.mxu1 %v6712_v4 }
 0x2bd   :  { %5102 = vmatpush1.bf16.msra.mxu0 %v6715_v9  ;;  %5134 = vmatpush1.bf16.msra.mxu1 %v6719_v14 }
 0x2be   :  { %5104 = vmatprep.subr.bf16.mxu0 %v6723_v18  ;;  %5136 = vmatprep.subr.bf16.mxu1 %v6726_v22 }
 0x2c1   :  { %5106 = vmatpush1.bf16.msra.mxu0 %v6729_v25  ;;  %5138 = vmatpush1.bf16.msra.mxu1 %v6733_v27 }
 0x2c2   :  { %5140 = vmatprep.subr.bf16.mxu0 %v6852_v20  ;;  %5172 = vmatprep.subr.bf16.mxu1 %v6854_v30 }
 0x376   :  { %v1096_v29 = vpop.f32.mrb[4].mxu0  ;;  %v1167_v32 = vpop.f32.mrb[4].mxu1 }
 0x377   :  { %v5975_v36 = vadd.f32 %v1096_v29, %v6784_v37  ;;  %v1098_v40 = vpop.f32.mrb[5].mxu0  ;;  %v1169_v44 = vpop.f32.mrb[5].mxu1  ;;  %v5991_v9 = vadd.f32 %v1167_v32, %v6801_v61  ;;  %v1501_v29 = vld [vmem:[#allocation10 + $0x148] sm:$0xff] }
 0x378   :  { %v5976_v48 = vadd.f32 %v1098_v40, %v6788_v39  ;;  %v5992_v62 = vadd.f32 %v1169_v44, %v6795_v55  ;;  %v1505_v32 = vld [vmem:[#allocation10 + $0x168] sm:$0xff]  ;;  %v1507_v44 = vld [vmem:[#allocation10 + $0x178] sm:$0xff] }
 0x379   :  { %v4776_v54 = vmul.f32 -1.442695, %v5975_v36  ;;  %v1503_v36 = vld [vmem:[#allocation10 + $0x158] sm:$0xff]  ;;  %v6953_v40 = vpack.c.bf16 %v1505_v32, %v1501_v29  ;;  %v1522_v29 = vld [vmem:[#allocation10 + $0x1f0] sm:$0xff]  ;;  %v6981_v32 = vpack.c.bf16 %v1520_v28, %v1516_v12 }
 0x37a   :  { %v4777_v58 = vmul.f32 -1.442695, %v5976_v48  ;;  %v4778_v4 = vmul.f32 -1.442695, %v5992_v62  ;;  %v1500_v48 = vld [vmem:[#allocation10 + $0x140] sm:$0xff] }
 0x37b   :  { %6144 = vpow2.f32 %v4776_v54  ;;  %v1504_v54 = vld [vmem:[#allocation10 + $0x160] sm:$0xff] }
 0x37c   :  { %6146 = vpow2.f32 %v4777_v58  ;;  %v6956_v58 = vpack.c.bf16 %v1507_v44, %v1503_v36  ;;  %v6958_v62 = vpack.c.bf16 %v1504_v54, %v1500_v48  ;;  %v6985_v36 = vpack.c.bf16 %v1522_v29, %v1518_v47 }
 0x37d   :  { %6148 = vpow2.f32 %v4778_v4  ;;  %v1502_v4 = vld [vmem:[#allocation10 + $0x150] sm:$0xff] }
 0x37e   :  { %6150 = vtanh.f32 %v5991_v9  ;;  %v1506_v9 = vld [vmem:[#allocation10 + $0x170] sm:$0xff] }
 0x385   :  { %v6145_v14 = vpop.eup %6144 }
 0x386   :  { %v6147_v18 = vpop.eup %6146  ;;  %v1179_v22 = vadd.f32 1.0, %v6145_v14  ;;  %v1509_v14 = vld [vmem:[#allocation10 + $0x188] sm:$0xff] }
 0x387   :  { %v1185_v25 = vadd.f32 1.0, %v6147_v18  ;;  %v6149_v27 = vpop.eup %6148  ;;  %v6961_v18 = vpack.c.bf16 %v1506_v9, %v1502_v4 }
 0x388   :  { %6152 = vrcp.f32 %v1179_v22  ;;  %v6151_v60 = vpop.eup %6150  ;;  %v1192_v16 = vadd.f32 1.0, %v6149_v27  ;;  %v1513_v22 = vld [vmem:[#allocation10 + $0x1a8] sm:$0xff]  ;;  %v1515_v27 = vld [vmem:[#allocation10 + $0x1b8] sm:$0xff] }
 0x389   :  { %6154 = vrcp.f32 %v1185_v25  ;;  %v1511_v25 = vld [vmem:[#allocation10 + $0x198] sm:$0xff] }
 0x38a   :  { %6156 = vrcp.f32 %v1192_v16  ;;  %v1510_v16 = vld [vmem:[#allocation10 + $0x190] sm:$0xff] }
 0x392   :  { %v6153_v63 = vpop.eup %6152 }
 0x393   :  { %v6155_v3 = vpop.eup %6154  ;;  %v1196_v13 = vmul.f32 %v6153_v63, %v6151_v60  ;;  %v6964_v60 = vpack.c.bf16 %v1513_v22, %v1509_v14  ;;  %v6966_v63 = vpack.c.bf16 %v1515_v27, %v1511_v25 }
 0x394   :  { %v1195_v23 = vmul.f32 %v6155_v3, %v6847_v5  ;;  %v6157_v45 = vpop.eup %6156  ;;  %v1493_v5 = vld [vmem:[#allocation10 + $0x108] sm:$0xff]  ;;  %v1508_v3 = vld [vmem:[#allocation10 + $0x180] sm:$0xff] }
 0x395   :  { %v6942_v7 = vpack.c.bf16 %v1497_v52, %v1493_v5 }
 0x396   :  { %v6923_v26 = vadd.f32 %v1196_v13, %v1195_v23  ;;  %v1512_v13 = vld [vmem:[#allocation10 + $0x1a0] sm:$0xff] }
 0x397   :  { %v6969_v23 = vpack.c.bf16 %v1512_v13, %v1508_v3 }
 0x398   :  { %6158 = vtanh.f32 %v6923_v26 }
 0x3a2   :  { %v6159_v49 = vpop.eup %6158 }
 0x3a3   :  { %v1199_v51 = vmul.f32 %v6159_v49, %v6157_v45  ;;  %v1514_v45 = vld [vmem:[#allocation10 + $0x1b0] sm:$0xff]  ;;  %v1517_v49 = vld [vmem:[#allocation10 + $0x1c8] sm:$0xff] }
 0x3a4   :  { %v6973_v5 = vpack.c.bf16 %v1514_v45, %v1510_v16 }
 0x3a5   :  { %1203 = vst [vmem:[#allocation14 + $0x10] sm:$0xff] %v1199_v51  ;;  %1342 = vmatmul.mubr.f32.vlgmr.msra.gmra.mrb[6].mxu0 %v1199_v51  ;;  %1413 = vmatmul.mubr.f32.vlgmr.msra.gmra.mrb[6].mxu1 %v1199_v51  ;;  %v1521_v51 = vld [vmem:[#allocation10 + $0x1e8] sm:$0xff] }
 0x3a6   :  { %5142 = vmatpush1.bf16.msra.mxu0 %v6856_v34  ;;  %5174 = vmatpush1.bf16.msra.mxu1 %v6859_v43  ;;  %v6975_v52 = vpack.c.bf16 %v1521_v51, %v1517_v49 }
 0x3a7   :  { %5144 = vmatprep.subr.bf16.mxu0 %v6864_v56  ;;  %5176 = vmatprep.subr.bf16.mxu1 %v6866_v6 }
 0x3a8   :  { %1588 = vmatprep.mubr.f32.mxu0 %v6519_v0  ;;  %1659 = vmatprep.mubr.f32.mxu1 %v6519_v0 }
 0x3aa   :  { %5146 = vmatpush1.bf16.msra.mxu0 %v6868_v10  ;;  %5178 = vmatpush1.bf16.msra.mxu1 %v6871_v19 }
 0x3ab   :  { %5148 = vmatprep.subr.bf16.mxu0 %v6876_v46  ;;  %5180 = vmatprep.subr.bf16.mxu1 %v6878_v59 }
 0x3ae   :  { %5150 = vmatpush1.bf16.msra.mxu0 %v6880_v1  ;;  %5182 = vmatpush1.bf16.msra.mxu1 %v6883_v8 }
 0x3af   :  { %5152 = vmatprep.subr.bf16.mxu0 %v6888_v17  ;;  %5184 = vmatprep.subr.bf16.mxu1 %v6890_v42 }
 0x3b2   :  { %5154 = vmatpush1.bf16.msra.mxu0 %v6892_v41  ;;  %5186 = vmatpush1.bf16.msra.mxu1 %v6895_v53 }
 0x3b3   :  { %5156 = vmatprep.subr.bf16.mxu0 %v6942_v7  ;;  %5188 = vmatprep.subr.bf16.mxu1 %v6944_v21 }
 0x3b6   :  { %5158 = vmatpush1.bf16.msra.mxu0 %v6946_v24  ;;  %5190 = vmatpush1.bf16.msra.mxu1 %v6949_v50 }
 0x3b7   :  { %5160 = vmatprep.subr.bf16.mxu0 %v6953_v40  ;;  %5192 = vmatprep.subr.bf16.mxu1 %v6956_v58 }
 0x3ba   :  { %5162 = vmatpush1.bf16.msra.mxu0 %v6958_v62  ;;  %5194 = vmatpush1.bf16.msra.mxu1 %v6961_v18 }
 0x3bb   :  { %5164 = vmatprep.subr.bf16.mxu0 %v6964_v60  ;;  %5196 = vmatprep.subr.bf16.mxu1 %v6966_v63 }
 0x3be   :  { %5166 = vmatpush1.bf16.msra.mxu0 %v6969_v23  ;;  %5198 = vmatpush1.bf16.msra.mxu1 %v6973_v5 }
 0x3bf   :  { %5168 = vmatprep.subr.bf16.mxu0 %v6975_v52  ;;  %5200 = vmatprep.subr.bf16.mxu1 %v6978_v15 }
 0x3c2   :  { %5170 = vmatpush1.bf16.msra.mxu0 %v6981_v32  ;;  %5202 = vmatpush1.bf16.msra.mxu1 %v6985_v36 }
 0x3c3   :  { %5204 = vmatprep.subr.bf16.mxu0 %v6852_v20  ;;  %5236 = vmatprep.subr.bf16.mxu1 %v6854_v30 }
 0x478   :  { %v1343_v44 = vpop.f32.mrb[6].mxu0  ;;  %v1414_v48 = vpop.f32.mrb[6].mxu1 }
 0x479   :  { %v5977_v54 = vadd.f32 %v1343_v44, %v6784_v37  ;;  %v1345_v4 = vpop.f32.mrb[7].mxu0  ;;  %v1416_v9 = vpop.f32.mrb[7].mxu1  ;;  %v5993_v13 = vadd.f32 %v1414_v48, %v6801_v61 }
 0x47a   :  { %v5978_v14 = vadd.f32 %v1345_v4, %v6788_v39  ;;  %v5994_v27 = vadd.f32 %v1416_v9, %v6795_v55 }
 0x47b   :  { %v4779_v22 = vmul.f32 -1.442695, %v5977_v54 }
 0x47c   :  { %v4780_v25 = vmul.f32 -1.442695, %v5978_v14  ;;  %v4781_v3 = vmul.f32 -1.442695, %v5994_v27 }
 0x47d   :  { %6160 = vpow2.f32 %v4779_v22 }
 0x47e   :  { %6162 = vpow2.f32 %v4780_v25 }
 0x47f   :  { %6164 = vpow2.f32 %v4781_v3 }
 0x480   :  { %6166 = vtanh.f32 %v5993_v13 }
 0x487   :  { %v6161_v16 = vpop.eup %6160 }
 0x488   :  { %v6163_v45 = vpop.eup %6162  ;;  %v1426_v49 = vadd.f32 1.0, %v6161_v16 }
 0x489   :  { %v1432_v51 = vadd.f32 1.0, %v6163_v45  ;;  %v6165_v2 = vpop.eup %6164 }
 0x48a   :  { %6168 = vrcp.f32 %v1426_v49  ;;  %v6167_v11 = vpop.eup %6166  ;;  %v1439_v29 = vadd.f32 1.0, %v6165_v2 }
 0x48b   :  { %6170 = vrcp.f32 %v1432_v51 }
 0x48c   :  { %6172 = vrcp.f32 %v1439_v29 }
 0x494   :  { %v6169_v12 = vpop.eup %6168 }
 0x495   :  { %v6171_v28 = vpop.eup %6170  ;;  %v1443_v47 = vmul.f32 %v6169_v12, %v6167_v11 }
 0x496   :  { %v1442_v44 = vmul.f32 %v6171_v28, %v6923_v26  ;;  %v6173_v48 = vpop.eup %6172 }
 0x498   :  { %v6997_v54 = vadd.f32 %v1443_v47, %v1442_v44 }
 0x49a   :  { %6174 = vtanh.f32 %v6997_v54 }
 0x4a4   :  { %v6175_v4 = vpop.eup %6174 }
 0x4a5   :  { %v1446_v9 = vmul.f32 %v6175_v4, %v6173_v48 }
 0x4a7   :  { %1450 = vst [vmem:[#allocation14 + $0x18] sm:$0xff] %v1446_v9  ;;  %1589 = vmatmul.mubr.f32.vlgmr.msra.gmra.mrb[8].mxu0 %v1446_v9  ;;  %1660 = vmatmul.mubr.f32.vlgmr.msra.gmra.mrb[8].mxu1 %v1446_v9 }
 0x4a8   :  { %5206 = vmatpush1.bf16.msra.mxu0 %v6856_v34  ;;  %5238 = vmatpush1.bf16.msra.mxu1 %v6859_v43 }
 0x4a9   :  { %5208 = vmatprep.subr.bf16.mxu0 %v6864_v56  ;;  %5240 = vmatprep.subr.bf16.mxu1 %v6866_v6 }
 0x4aa   :  { %1835 = vmatprep.mubr.f32.mxu0 %v6519_v0  ;;  %1906 = vmatprep.mubr.f32.mxu1 %v6519_v0 }
 0x4ac   :  { %5210 = vmatpush1.bf16.msra.mxu0 %v6868_v10  ;;  %5242 = vmatpush1.bf16.msra.mxu1 %v6871_v19 }
 0x4ad   :  { %5212 = vmatprep.subr.bf16.mxu0 %v6876_v46  ;;  %5244 = vmatprep.subr.bf16.mxu1 %v6878_v59 }
 0x4b0   :  { %5214 = vmatpush1.bf16.msra.mxu0 %v6880_v1  ;;  %5246 = vmatpush1.bf16.msra.mxu1 %v6883_v8 }
 0x4b1   :  { %5216 = vmatprep.subr.bf16.mxu0 %v6888_v17  ;;  %5248 = vmatprep.subr.bf16.mxu1 %v6890_v42 }
 0x4b4   :  { %5218 = vmatpush1.bf16.msra.mxu0 %v6892_v41  ;;  %5250 = vmatpush1.bf16.msra.mxu1 %v6895_v53 }
 0x4b5   :  { %5220 = vmatprep.subr.bf16.mxu0 %v6942_v7  ;;  %5252 = vmatprep.subr.bf16.mxu1 %v6944_v21 }
 0x4b8   :  { %5222 = vmatpush1.bf16.msra.mxu0 %v6946_v24  ;;  %5254 = vmatpush1.bf16.msra.mxu1 %v6949_v50 }
 0x4b9   :  { %5224 = vmatprep.subr.bf16.mxu0 %v6953_v40  ;;  %5256 = vmatprep.subr.bf16.mxu1 %v6956_v58 }
 0x4bc   :  { %5226 = vmatpush1.bf16.msra.mxu0 %v6958_v62  ;;  %5258 = vmatpush1.bf16.msra.mxu1 %v6961_v18 }
 0x4bd   :  { %5228 = vmatprep.subr.bf16.mxu0 %v6964_v60  ;;  %5260 = vmatprep.subr.bf16.mxu1 %v6966_v63 }
 0x4c0   :  { %5230 = vmatpush1.bf16.msra.mxu0 %v6969_v23  ;;  %5262 = vmatpush1.bf16.msra.mxu1 %v6973_v5 }
 0x4c1   :  { %5232 = vmatprep.subr.bf16.mxu0 %v6975_v52  ;;  %5264 = vmatprep.subr.bf16.mxu1 %v6978_v15 }
 0x4c4   :  { %5234 = vmatpush1.bf16.msra.mxu0 %v6981_v32  ;;  %5266 = vmatpush1.bf16.msra.mxu1 %v6985_v36 }
 0x4c5   :  { %5268 = vmatprep.subr.bf16.mxu0 %v6852_v20  ;;  %5300 = vmatprep.subr.bf16.mxu1 %v6854_v30 }
 0x57a   :  { %v1590_v26 = vpop.f32.mrb[8].mxu0  ;;  %v1661_v14 = vpop.f32.mrb[8].mxu1 }
 0x57b   :  { %v5979_v22 = vadd.f32 %v1590_v26, %v6784_v37  ;;  %v1592_v25 = vpop.f32.mrb[9].mxu0  ;;  %v1663_v27 = vpop.f32.mrb[9].mxu1  ;;  %v5995_v51 = vadd.f32 %v1661_v14, %v6801_v61 }
 0x57c   :  { %v5980_v3 = vadd.f32 %v1592_v25, %v6788_v39  ;;  %v5996_v45 = vadd.f32 %v1663_v27, %v6795_v55 }
 0x57d   :  { %v4782_v13 = vmul.f32 -1.442695, %v5979_v22 }
 0x57e   :  { %v4783_v16 = vmul.f32 -1.442695, %v5980_v3  ;;  %v4784_v49 = vmul.f32 -1.442695, %v5996_v45 }
 0x57f   :  { %6176 = vpow2.f32 %v4782_v13 }
 0x580   :  { %6178 = vpow2.f32 %v4783_v16 }
 0x581   :  { %6180 = vpow2.f32 %v4784_v49 }
 0x582   :  { %6182 = vtanh.f32 %v5995_v51 }
 0x589   :  { %v6177_v20 = vpop.eup %6176 }
 0x58a   :  { %v6179_v2 = vpop.eup %6178  ;;  %v1673_v30 = vadd.f32 1.0, %v6177_v20 }
 0x58b   :  { %v1679_v11 = vadd.f32 1.0, %v6179_v2  ;;  %v6181_v12 = vpop.eup %6180 }
 0x58c   :  { %6184 = vrcp.f32 %v1673_v30  ;;  %v6183_v28 = vpop.eup %6182  ;;  %v1686_v48 = vadd.f32 1.0, %v6181_v12  ;;  %v2206_v12 = vld [vmem:[#allocation10 + $0x28] sm:$0xff] }
 0x58d   :  { %6186 = vrcp.f32 %v1679_v11  ;;  %v2202_v11 = vld [vmem:[#allocation10 + $0x8] sm:$0xff] }
 0x58e   :  { %6188 = vrcp.f32 %v1686_v48  ;;  %v2205_v48 = vld [vmem:[#allocation10 + $0x20] sm:$0xff] }
 0x596   :  { %v6185_v47 = vpop.eup %6184 }
 0x597   :  { %v6187_v29 = vpop.eup %6186  ;;  %v1690_v44 = vmul.f32 %v6185_v47, %v6183_v28  ;;  %v2204_v28 = vld [vmem:[#allocation10 + $0x18] sm:$0xff]  ;;  %v5331_v47 = vpack.c.bf16 %v2206_v12, %v2202_v11  ;;  %v2226_v12 = vld [vmem:[#allocation10 + $0xc8] sm:$0xff] }
 0x598   :  { %v1689_v4 = vmul.f32 %v6187_v29, %v6997_v54  ;;  %v6189_v26 = vpop.eup %6188  ;;  %v2208_v29 = vld [vmem:[#allocation10 + $0x38] sm:$0xff] }
 0x59a   :  { %v7039_v9 = vadd.f32 %v1690_v44, %v1689_v4  ;;  %v2201_v44 = vld [vmem:[#allocation10] sm:$0xff]  ;;  %v5363_v4 = vpack.c.bf16 %v2208_v29, %v2204_v28  ;;  %v2230_v28 = vld [vmem:[#allocation10 + $0xe8] sm:$0xff] }
 0x59b   :  { %v5343_v29 = vpack.c.bf16 %v2230_v28, %v2226_v12 }
 0x59c   :  { %6190 = vtanh.f32 %v7039_v9 }
 0x5a6   :  { %v6191_v14 = vpop.eup %6190 }
 0x5a7   :  { %v7042_v22 = vmul.f32 %v6191_v14, %v6189_v26  ;;  %v2203_v26 = vld [vmem:[#allocation10 + $0x10] sm:$0xff] }
 0x5a8   :  { %v2207_v14 = vld [vmem:[#allocation10 + $0x30] sm:$0xff] }
 0x5a9   :  { %1836 = vmatmul.mubr.f32.vlgmr.msra.gmra.mrb[10].mxu0 %v7042_v22  ;;  %1907 = vmatmul.mubr.f32.vlgmr.msra.gmra.mrb[10].mxu1 %v7042_v22 }
 0x5aa   :  { %5270 = vmatpush1.bf16.msra.mxu0 %v6856_v34  ;;  %5302 = vmatpush1.bf16.msra.mxu1 %v6859_v43 }
 0x5ab   :  { %5272 = vmatprep.subr.bf16.mxu0 %v6864_v56  ;;  %5304 = vmatprep.subr.bf16.mxu1 %v6866_v6 }
 0x5ac   :  { %2082 = vmatprep.mubr.f32.mxu0 %v6519_v0  ;;  %2153 = vmatprep.mubr.f32.mxu1 %v6519_v0 }
 0x5ae   :  { %5274 = vmatpush1.bf16.msra.mxu0 %v6868_v10  ;;  %5306 = vmatpush1.bf16.msra.mxu1 %v6871_v19 }
 0x5af   :  { %5276 = vmatprep.subr.bf16.mxu0 %v6876_v46  ;;  %5308 = vmatprep.subr.bf16.mxu1 %v6878_v59 }
 0x5b2   :  { %5278 = vmatpush1.bf16.msra.mxu0 %v6880_v1  ;;  %5310 = vmatpush1.bf16.msra.mxu1 %v6883_v8 }
 0x5b3   :  { %5280 = vmatprep.subr.bf16.mxu0 %v6888_v17  ;;  %5312 = vmatprep.subr.bf16.mxu1 %v6890_v42 }
 0x5b6   :  { %5282 = vmatpush1.bf16.msra.mxu0 %v6892_v41  ;;  %5314 = vmatpush1.bf16.msra.mxu1 %v6895_v53 }
 0x5b7   :  { %5284 = vmatprep.subr.bf16.mxu0 %v6942_v7  ;;  %5316 = vmatprep.subr.bf16.mxu1 %v6944_v21 }
 0x5ba   :  { %5286 = vmatpush1.bf16.msra.mxu0 %v6946_v24  ;;  %5318 = vmatpush1.bf16.msra.mxu1 %v6949_v50 }
 0x5bb   :  { %5288 = vmatprep.subr.bf16.mxu0 %v6953_v40  ;;  %5320 = vmatprep.subr.bf16.mxu1 %v6956_v58 }
 0x5be   :  { %5290 = vmatpush1.bf16.msra.mxu0 %v6958_v62  ;;  %5322 = vmatpush1.bf16.msra.mxu1 %v6961_v18 }
 0x5bf   :  { %5292 = vmatprep.subr.bf16.mxu0 %v6964_v60  ;;  %5324 = vmatprep.subr.bf16.mxu1 %v6966_v63 }
 0x5c2   :  { %5294 = vmatpush1.bf16.msra.mxu0 %v6969_v23  ;;  %5326 = vmatpush1.bf16.msra.mxu1 %v6973_v5 }
 0x5c3   :  { %5296 = vmatprep.subr.bf16.mxu0 %v6975_v52  ;;  %5328 = vmatprep.subr.bf16.mxu1 %v6978_v15 }
 0x5c6   :  { %5298 = vmatpush1.bf16.msra.mxu0 %v6981_v32  ;;  %5330 = vmatpush1.bf16.msra.mxu1 %v6985_v36 }
 0x5c7   :  { %5332 = vmatprep.subr.bf16.mxu0 %v5331_v47  ;;  %5364 = vmatprep.subr.bf16.mxu1 %v5363_v4  ;;  %v2228_v47 = vld [vmem:[#allocation10 + $0xd8] sm:$0xff]  ;;  %v2229_v4 = vld [vmem:[#allocation10 + $0xe0] sm:$0xff] }
 0x67c   :  { %v1837_v34 = vpop.f32.mrb[10].mxu0  ;;  %v1908_v43 = vpop.f32.mrb[10].mxu1 }
 0x67d   :  { %v5981_v56 = vadd.f32 %v1837_v34, %v6784_v37  ;;  %v1839_v6 = vpop.f32.mrb[11].mxu0  ;;  %v1910_v10 = vpop.f32.mrb[11].mxu1  ;;  %v5997_v17 = vadd.f32 %v1908_v43, %v6801_v61  ;;  %v5365_v34 = vpack.c.bf16 %v2207_v14, %v2203_v26  ;;  %v2210_v43 = vld [vmem:[#allocation10 + $0x48] sm:$0xff]  ;;  %v2227_v14 = vld [vmem:[#allocation10 + $0xd0] sm:$0xff] }
 0x67e   :  { %v5982_v19 = vadd.f32 %v1839_v6, %v6788_v39  ;;  %v5998_v1 = vadd.f32 %v1910_v10, %v6795_v55  ;;  %v2212_v6 = vld [vmem:[#allocation10 + $0x58] sm:$0xff] }
 0x67f   :  { %v4785_v46 = vmul.f32 -1.442695, %v5981_v56  ;;  %v2214_v56 = vld [vmem:[#allocation10 + $0x68] sm:$0xff] }
 0x680   :  { %v4786_v59 = vmul.f32 -1.442695, %v5982_v19  ;;  %v4787_v8 = vmul.f32 -1.442695, %v5998_v1  ;;  %v5335_v10 = vpack.c.bf16 %v2214_v56, %v2210_v43  ;;  %v2216_v19 = vld [vmem:[#allocation10 + $0x78] sm:$0xff]  ;;  %v2449_v56 = vld [vmem:[#allocation8 + $0x208] sm:$0xff] }
 0x681   :  { %6192 = vpow2.f32 %v4785_v46  ;;  %v2209_v46 = vld [vmem:[#allocation10 + $0x40] sm:$0xff]  ;;  %v5367_v1 = vpack.c.bf16 %v2216_v19, %v2212_v6  ;;  %v2451_v6 = vld [vmem:[#allocation8 + $0x218] sm:$0xff] }
 0x682   :  { %6194 = vpow2.f32 %v4786_v59  ;;  %v2213_v59 = vld [vmem:[#allocation10 + $0x60] sm:$0xff] }
 0x683   :  { %6196 = vpow2.f32 %v4787_v8  ;;  %v5337_v8 = vpack.c.bf16 %v2213_v59, %v2209_v46 }
 0x684   :  { %6198 = vtanh.f32 %v5997_v17  ;;  %v2211_v17 = vld [vmem:[#allocation10 + $0x50] sm:$0xff] }
 0x68b   :  { %v6193_v42 = vpop.eup %6192 }
 0x68c   :  { %v6195_v41 = vpop.eup %6194  ;;  %v1920_v53 = vadd.f32 1.0, %v6193_v42  ;;  %v2215_v42 = vld [vmem:[#allocation10 + $0x70] sm:$0xff] }
 0x68d   :  { %v1926_v54 = vadd.f32 1.0, %v6195_v41  ;;  %v6197_v25 = vpop.eup %6196  ;;  %v5369_v41 = vpack.c.bf16 %v2215_v42, %v2211_v17 }
 0x68e   :  { %6200 = vrcp.f32 %v1920_v53  ;;  %v6199_v27 = vpop.eup %6198  ;;  %v1933_v45 = vadd.f32 1.0, %v6197_v25  ;;  %v2218_v53 = vld [vmem:[#allocation10 + $0x88] sm:$0xff]  ;;  %v2220_v25 = vld [vmem:[#allocation10 + $0x98] sm:$0xff] }
 0x68f   :  { %6202 = vrcp.f32 %v1926_v54  ;;  %v2222_v54 = vld [vmem:[#allocation10 + $0xa8] sm:$0xff] }
 0x690   :  { %6204 = vrcp.f32 %v1933_v45 }
 0x698   :  { %v6201_v3 = vpop.eup %6200 }
 0x699   :  { %v6203_v13 = vpop.eup %6202  ;;  %v1937_v16 = vmul.f32 %v6201_v3, %v6199_v27  ;;  %v5339_v27 = vpack.c.bf16 %v2222_v54, %v2218_v53  ;;  %v2224_v3 = vld [vmem:[#allocation10 + $0xb8] sm:$0xff] }
 0x69a   :  { %v1936_v49 = vmul.f32 %v6203_v13, %v7039_v9  ;;  %v6205_v20 = vpop.eup %6204  ;;  %v5333_v9 = vpack.c.bf16 %v2205_v48, %v2201_v44  ;;  %v2217_v13 = vld [vmem:[#allocation10 + $0x80] sm:$0xff]  ;;  %v5371_v45 = vpack.c.bf16 %v2224_v3, %v2220_v25  ;;  %v2232_v44 = vld [vmem:[#allocation10 + $0xf8] sm:$0xff]  ;;  %v2450_v3 = vld [vmem:[#allocation8 + $0x210] sm:$0xff] }
 0x69b   :  { %v2225_v48 = vld [vmem:[#allocation10 + $0xc0] sm:$0xff] }
 0x69c   :  { %v7083_v51 = vadd.f32 %v1937_v16, %v1936_v49  ;;  %v2221_v16 = vld [vmem:[#allocation10 + $0xa0] sm:$0xff]  ;;  %v5345_v26 = vpack.c.bf16 %v2229_v4, %v2225_v48  ;;  %v2458_v4 = vld [vmem:[#allocation8 + $0x250] sm:$0xff] }
 0x69d   :  { %v5341_v49 = vpack.c.bf16 %v2221_v16, %v2217_v13  ;;  %v2448_v25 = vld [vmem:[#allocation8 + $0x200] sm:$0xff]  ;;  %v2454_v13 = vld [vmem:[#allocation8 + $0x230] sm:$0xff]  ;;  %v2457_v16 = vld [vmem:[#allocation8 + $0x248] sm:$0xff] }
 0x69e   :  { %6206 = vtanh.f32 %v7083_v51  ;;  %v5429_v28 = vpack.c.bf16 %v2454_v13, %v2450_v3  ;;  %v2482_v3 = vld [vmem:[#allocation8 + $0x310] sm:$0xff] }
 0x69f   :  { %v2486_v13 = vld [vmem:[#allocation8 + $0x330] sm:$0xff] }
 0x6a8   :  { %v6207_v2 = vpop.eup %6206 }
 0x6a9   :  { %v7086_v30 = vmul.f32 %v6207_v2, %v6205_v20  ;;  %v2219_v20 = vld [vmem:[#allocation10 + $0x90] sm:$0xff] }
 0x6aa   :  { %v2223_v2 = vld [vmem:[#allocation10 + $0xb0] sm:$0xff] }
 0x6ab   :  { %2083 = vmatmul.mubr.f32.vlgmr.msra.gmra.mrb[12].mxu0 %v7086_v30  ;;  %2154 = vmatmul.mubr.f32.vlgmr.msra.gmra.mrb[12].mxu1 %v7086_v30  ;;  %v5373_v11 = vpack.c.bf16 %v2223_v2, %v2219_v20  ;;  %v2463_v20 = vld [vmem:[#allocation8 + $0x278] sm:$0xff] }
 0x6ac   :  { %2329 = vmatprep.mubr.f32.mxu0 %v6519_v0  ;;  %2400 = vmatprep.mubr.f32.mxu1 %v6519_v0 }
 0x6ad   :  { %5334 = vmatpush1.bf16.msra.mxu0 %v5333_v9  ;;  %5366 = vmatpush1.bf16.msra.mxu1 %v5365_v34  ;;  %v5375_v9 = vpack.c.bf16 %v2232_v44, %v2228_v47  ;;  %v2231_v34 = vld [vmem:[#allocation10 + $0xf0] sm:$0xff]  ;;  %v2456_v47 = vld [vmem:[#allocation8 + $0x240] sm:$0xff] }
 0x6ae   :  { %5336 = vmatprep.subr.bf16.mxu0 %v5335_v10  ;;  %5368 = vmatprep.subr.bf16.mxu1 %v5367_v1  ;;  %v5377_v43 = vpack.c.bf16 %v2231_v34, %v2227_v14  ;;  %v2469_v14 = vld [vmem:[#allocation8 + $0x2a8] sm:$0xff]  ;;  %v2467_v34 = vld [vmem:[#allocation8 + $0x298] sm:$0xff] }
 0x6b1   :  { %5338 = vmatpush1.bf16.msra.mxu0 %v5337_v8  ;;  %5370 = vmatpush1.bf16.msra.mxu1 %v5369_v41 }
 0x6b2   :  { %5340 = vmatprep.subr.bf16.mxu0 %v5339_v27  ;;  %5372 = vmatprep.subr.bf16.mxu1 %v5371_v45  ;;  %v2452_v27 = vld [vmem:[#allocation8 + $0x220] sm:$0xff]  ;;  %v2461_v45 = vld [vmem:[#allocation8 + $0x268] sm:$0xff] }
 0x6b3   :  { %v5397_v12 = vpack.c.bf16 %v2452_v27, %v2448_v25  ;;  %v5399_v44 = vpack.c.bf16 %v2461_v45, %v2457_v16  ;;  %v2489_v16 = vld [vmem:[#allocation8 + $0x348] sm:$0xff] }
 0x6b4   :  { %v2493_v45 = vld [vmem:[#allocation8 + $0x368] sm:$0xff] }
 0x6b5   :  { %5342 = vmatpush1.bf16.msra.mxu0 %v5341_v49  ;;  %5374 = vmatpush1.bf16.msra.mxu1 %v5373_v11  ;;  %v2459_v49 = vld [vmem:[#allocation8 + $0x258] sm:$0xff] }
 0x6b6   :  { %5344 = vmatprep.subr.bf16.mxu0 %v5343_v29  ;;  %5376 = vmatprep.subr.bf16.mxu1 %v5375_v9  ;;  %v2460_v29 = vld [vmem:[#allocation8 + $0x260] sm:$0xff]  ;;  %v5431_v48 = vpack.c.bf16 %v2463_v20, %v2459_v49  ;;  %v2462_v9 = vld [vmem:[#allocation8 + $0x270] sm:$0xff]  ;;  %v2491_v49 = vld [vmem:[#allocation8 + $0x358] sm:$0xff] }
 0x6b7   :  { %v2495_v20 = vld [vmem:[#allocation8 + $0x378] sm:$0xff] }
 0x6b9   :  { %5346 = vmatpush1.bf16.msra.mxu0 %v5345_v26  ;;  %5378 = vmatpush1.bf16.msra.mxu1 %v5377_v43  ;;  %v2465_v26 = vld [vmem:[#allocation8 + $0x288] sm:$0xff]  ;;  %v2471_v43 = vld [vmem:[#allocation8 + $0x2b8] sm:$0xff] }
 0x6ba   :  { %5348 = vmatprep.subr.bf16.mxu0 %v6942_v7  ;;  %5380 = vmatprep.subr.bf16.mxu1 %v6944_v21  ;;  %v2453_v7 = vld [vmem:[#allocation8 + $0x228] sm:$0xff]  ;;  %v2455_v21 = vld [vmem:[#allocation8 + $0x238] sm:$0xff] }
 0x6bd   :  { %5350 = vmatpush1.bf16.msra.mxu0 %v6946_v24  ;;  %5382 = vmatpush1.bf16.msra.mxu1 %v6949_v50  ;;  %v5395_v24 = vpack.c.bf16 %v2453_v7, %v2449_v56  ;;  %v5427_v50 = vpack.c.bf16 %v2455_v21, %v2451_v6  ;;  %v5401_v56 = vpack.c.bf16 %v2460_v29, %v2456_v47  ;;  %v2464_v6 = vld [vmem:[#allocation8 + $0x280] sm:$0xff] }
 0x6be   :  { %5352 = vmatprep.subr.bf16.mxu0 %v6953_v40  ;;  %5384 = vmatprep.subr.bf16.mxu1 %v6956_v58  ;;  %v5433_v7 = vpack.c.bf16 %v2462_v9, %v2458_v4  ;;  %v2468_v21 = vld [vmem:[#allocation8 + $0x2a0] sm:$0xff]  ;;  %v5415_v47 = vpack.c.bf16 %v2493_v45, %v2489_v16  ;;  %v5447_v29 = vpack.c.bf16 %v2495_v20, %v2491_v49  ;;  %v2497_v4 = vld [vmem:[#allocation8 + $0x388] sm:$0xff]  ;;  %v2812_v16 = vld [vmem:[#allocation10 + $0x230] sm:$0xff] }
 0x6bf   :  { %v2501_v9 = vld [vmem:[#allocation8 + $0x3a8] sm:$0xff]  ;;  %v2817_v20 = vld [vmem:[#allocation10 + $0x258] sm:$0xff] }
 0x6c0   :  { %v2815_v45 = vld [vmem:[#allocation10 + $0x248] sm:$0xff] }
 0x6c1   :  { %5354 = vmatpush1.bf16.msra.mxu0 %v6958_v62  ;;  %5386 = vmatpush1.bf16.msra.mxu1 %v6961_v18  ;;  %v2819_v49 = vld [vmem:[#allocation10 + $0x268] sm:$0xff] }
 0x6c2   :  { %5356 = vmatprep.subr.bf16.mxu0 %v6964_v60  ;;  %5388 = vmatprep.subr.bf16.mxu1 %v6966_v63 }
 0x6c5   :  { %5358 = vmatpush1.bf16.msra.mxu0 %v6969_v23  ;;  %5390 = vmatpush1.bf16.msra.mxu1 %v6973_v5 }
 0x6c6   :  { %5360 = vmatprep.subr.bf16.mxu0 %v6975_v52  ;;  %5392 = vmatprep.subr.bf16.mxu1 %v6978_v15 }
 0x6c9   :  { %5362 = vmatpush1.bf16.msra.mxu0 %v6981_v32  ;;  %5394 = vmatpush1.bf16.msra.mxu1 %v6985_v36 }
 0x6ca   :  { %5396 = vmatprep.subr.bf16.mxu0 %v5395_v24  ;;  %5428 = vmatprep.subr.bf16.mxu1 %v5427_v50  ;;  %v5403_v24 = vpack.c.bf16 %v2469_v14, %v2465_v26  ;;  %v5435_v50 = vpack.c.bf16 %v2471_v43, %v2467_v34  ;;  %v2499_v26 = vld [vmem:[#allocation8 + $0x398] sm:$0xff] }
 0x6cb   :  { %v2503_v14 = vld [vmem:[#allocation8 + $0x3b8] sm:$0xff] }
 0x77e   :  { %v2084_v40 = vpop.f32.mrb[12].mxu0  ;;  %v2155_v58 = vpop.f32.mrb[12].mxu1 }
 0x77f   :  { %v5983_v62 = vadd.f32 %v2084_v40, %v6784_v37  ;;  %v2086_v18 = vpop.f32.mrb[13].mxu0  ;;  %v2157_v60 = vpop.f32.mrb[13].mxu1  ;;  %v5999_v32 = vadd.f32 %v2155_v58, %v6801_v61  ;;  %v2466_v40 = vld [vmem:[#allocation8 + $0x290] sm:$0xff] }
 0x780   :  { %v5984_v63 = vadd.f32 %v2086_v18, %v6788_v39  ;;  %v6000_v52 = vadd.f32 %v2157_v60, %v6795_v55  ;;  %v2470_v58 = vld [vmem:[#allocation8 + $0x2b0] sm:$0xff]  ;;  %v2477_v18 = vld [vmem:[#allocation8 + $0x2e8] sm:$0xff]  ;;  %v2475_v60 = vld [vmem:[#allocation8 + $0x2d8] sm:$0xff] }
 0x781   :  { %v4788_v23 = vmul.f32 -1.442695, %v5983_v62  ;;  %v2473_v62 = vld [vmem:[#allocation8 + $0x2c8] sm:$0xff] }
 0x782   :  { %v4789_v5 = vmul.f32 -1.442695, %v5984_v63  ;;  %v4790_v15 = vmul.f32 -1.442695, %v6000_v52  ;;  %v2479_v63 = vld [vmem:[#allocation8 + $0x2f8] sm:$0xff]  ;;  %v2472_v52 = vld [vmem:[#allocation8 + $0x2c0] sm:$0xff] }
 0x783   :  { %6208 = vpow2.f32 %v4788_v23  ;;  %v5405_v23 = vpack.c.bf16 %v2468_v21, %v2464_v6  ;;  %v5419_v6 = vpack.c.bf16 %v2501_v9, %v2497_v4  ;;  %v5451_v21 = vpack.c.bf16 %v2503_v14, %v2499_v26  ;;  %v2823_v9 = vld [vmem:[#allocation10 + $0x288] sm:$0xff]  ;;  %v2825_v14 = vld [vmem:[#allocation10 + $0x298] sm:$0xff] }
 0x784   :  { %6210 = vpow2.f32 %v4789_v5  ;;  %v5437_v5 = vpack.c.bf16 %v2470_v58, %v2466_v40  ;;  %v2505_v40 = vld [vmem:[#allocation8 + $0x3c8] sm:$0xff] }
 0x785   :  { %6212 = vpow2.f32 %v4790_v15  ;;  %v2476_v15 = vld [vmem:[#allocation8 + $0x2e0] sm:$0xff]  ;;  %v2509_v58 = vld [vmem:[#allocation8 + $0x3e8] sm:$0xff] }
 0x786   :  { %6214 = vtanh.f32 %v5999_v32  ;;  %v5407_v32 = vpack.c.bf16 %v2477_v18, %v2473_v62  ;;  %v2507_v62 = vld [vmem:[#allocation8 + $0x3d8] sm:$0xff]  ;;  %v2827_v26 = vld [vmem:[#allocation10 + $0x2a8] sm:$0xff] }
 0x787   :  { %v2511_v18 = vld [vmem:[#allocation8 + $0x3f8] sm:$0xff] }
 0x78d   :  { %v6209_v36 = vpop.eup %6208 }
 0x78e   :  { %v6211_v10 = vpop.eup %6210  ;;  %v2167_v19 = vadd.f32 1.0, %v6209_v36  ;;  %v5439_v36 = vpack.c.bf16 %v2479_v63, %v2475_v60 }
 0x78f   :  { %v2173_v46 = vadd.f32 1.0, %v6211_v10  ;;  %v6213_v59 = vpop.eup %6212  ;;  %v2474_v10 = vld [vmem:[#allocation8 + $0x2d0] sm:$0xff] }
 0x790   :  { %6216 = vrcp.f32 %v2167_v19  ;;  %v6215_v1 = vpop.eup %6214  ;;  %v2180_v41 = vadd.f32 1.0, %v6213_v59  ;;  %v2478_v19 = vld [vmem:[#allocation8 + $0x2f0] sm:$0xff]  ;;  %v2485_v59 = vld [vmem:[#allocation8 + $0x328] sm:$0xff] }
 0x791   :  { %6218 = vrcp.f32 %v2173_v46  ;;  %v2481_v46 = vld [vmem:[#allocation8 + $0x308] sm:$0xff] }
 0x792   :  { %6220 = vrcp.f32 %v2180_v41  ;;  %v2480_v41 = vld [vmem:[#allocation8 + $0x300] sm:$0xff]  ;;  %v5411_v25 = vpack.c.bf16 %v2485_v59, %v2481_v46  ;;  %v2439_v46 = vld [vmem:[#allocation14] sm:$0xff] }
 0x793   :  { %v2440_v59 = vld [vmem:[#allocation14 + $0x8] sm:$0xff] }
 0x79a   :  { %v6217_v8 = vpop.eup %6216 }
 0x79b   :  { %v6219_v17 = vpop.eup %6218  ;;  %v2184_v42 = vmul.f32 %v6217_v8, %v6215_v1  ;;  %v2483_v1 = vld [vmem:[#allocation8 + $0x318] sm:$0xff] }
 0x79c   :  { %v2183_v53 = vmul.f32 %v6219_v17, %v7083_v51  ;;  %v6221_v2 = vpop.eup %6220  ;;  %v2487_v8 = vld [vmem:[#allocation8 + $0x338] sm:$0xff]  ;;  %v5409_v17 = vpack.c.bf16 %v2476_v15, %v2472_v52  ;;  %v5455_v52 = vpack.c.bf16 %v2511_v18, %v2507_v62  ;;  %v2508_v15 = vld [vmem:[#allocation8 + $0x3e0] sm:$0xff]  ;;  %v2835_v62 = vld [vmem:[#allocation10 + $0x2e8] sm:$0xff] }
 0x79d   :  { %v5443_v27 = vpack.c.bf16 %v2487_v8, %v2483_v1  ;;  %v2441_v1 = vld [vmem:[#allocation14 + $0x10] sm:$0xff]  ;;  %v2442_v8 = vld [vmem:[#allocation14 + $0x18] sm:$0xff]  ;;  %v2833_v18 = vld [vmem:[#allocation10 + $0x2d8] sm:$0xff] }
 0x79e   :  { %v7113_v54 = vadd.f32 %v2184_v42, %v2183_v53  ;;  %v5441_v42 = vpack.c.bf16 %v2478_v19, %v2474_v10  ;;  %v2484_v53 = vld [vmem:[#allocation8 + $0x320] sm:$0xff] }
 0x7a0   :  { %6222 = vtanh.f32 %v7113_v54 }
 0x7aa   :  { %v6223_v11 = vpop.eup %6222 }
 0x7ab   :  { %v7116_v51 = vmul.f32 %v6223_v11, %v6221_v2  ;;  %v5413_v2 = vpack.c.bf16 %v2484_v53, %v2480_v41  ;;  %v5445_v11 = vpack.c.bf16 %v2486_v13, %v2482_v3  ;;  %v2813_v53 = vld [vmem:[#allocation10 + $0x238] sm:$0xff]  ;;  %v2808_v13 = vld [vmem:[#allocation10 + $0x210] sm:$0xff] }
 0x7ad   :  { %2330 = vmatmul.mubr.f32.vlgmr.msra.gmra.mrb[14].mxu0 %v7116_v51  ;;  %2401 = vmatmul.mubr.f32.vlgmr.msra.gmra.mrb[14].mxu1 %v7116_v51 }
 0x7ae   :  { %5398 = vmatpush1.bf16.msra.mxu0 %v5397_v12  ;;  %5430 = vmatpush1.bf16.msra.mxu1 %v5429_v28  ;;  %v2488_v12 = vld [vmem:[#allocation8 + $0x340] sm:$0xff] }
 0x7af   :  { %5400 = vmatprep.subr.bf16.mxu0 %v5399_v44  ;;  %5432 = vmatprep.subr.bf16.mxu1 %v5431_v48  ;;  %v2492_v28 = vld [vmem:[#allocation8 + $0x360] sm:$0xff]  ;;  %v2490_v44 = vld [vmem:[#allocation8 + $0x350] sm:$0xff] }
 0x7b0   :  { %2599 = vmatprep.mubr.f32.mxu0 %v6519_v0  ;;  %2712 = vmatprep.mubr.f32.mxu1 %v6519_v0  ;;  %v2494_v48 = vld [vmem:[#allocation8 + $0x370] sm:$0xff]  ;;  %v5417_v34 = vpack.c.bf16 %v2492_v28, %v2488_v12  ;;  %v2814_v12 = vld [vmem:[#allocation10 + $0x240] sm:$0xff] }
 0x7b1   :  { %v5449_v43 = vpack.c.bf16 %v2494_v48, %v2490_v44  ;;  %v2818_v28 = vld [vmem:[#allocation10 + $0x260] sm:$0xff]  ;;  %v2816_v44 = vld [vmem:[#allocation10 + $0x250] sm:$0xff] }
 0x7b2   :  { %5402 = vmatpush1.bf16.msra.mxu0 %v5401_v56  ;;  %5434 = vmatpush1.bf16.msra.mxu1 %v5433_v7  ;;  %v2496_v56 = vld [vmem:[#allocation8 + $0x380] sm:$0xff]  ;;  %v2820_v48 = vld [vmem:[#allocation10 + $0x270] sm:$0xff] }
 0x7b3   :  { %5404 = vmatprep.subr.bf16.mxu0 %v5403_v24  ;;  %5436 = vmatprep.subr.bf16.mxu1 %v5435_v50  ;;  %v2500_v7 = vld [vmem:[#allocation8 + $0x3a0] sm:$0xff]  ;;  %v2498_v24 = vld [vmem:[#allocation8 + $0x390] sm:$0xff]  ;;  %v7161_v4 = vpack.c.bf16 %v2820_v48, %v2816_v44 }
 0x7b4   :  { %v2502_v50 = vld [vmem:[#allocation8 + $0x3b0] sm:$0xff]  ;;  %v5421_v60 = vpack.c.bf16 %v2500_v7, %v2496_v56  ;;  %v2822_v56 = vld [vmem:[#allocation10 + $0x280] sm:$0xff] }
 0x7b5   :  { %v5453_v63 = vpack.c.bf16 %v2502_v50, %v2498_v24  ;;  %v2826_v7 = vld [vmem:[#allocation10 + $0x2a0] sm:$0xff]  ;;  %v2824_v24 = vld [vmem:[#allocation10 + $0x290] sm:$0xff] }
 0x7b6   :  { %5406 = vmatpush1.bf16.msra.mxu0 %v5405_v23  ;;  %5438 = vmatpush1.bf16.msra.mxu1 %v5437_v5  ;;  %v2504_v23 = vld [vmem:[#allocation8 + $0x3c0] sm:$0xff]  ;;  %v5423_v5 = vpack.c.bf16 %v2509_v58, %v2505_v40  ;;  %v2828_v50 = vld [vmem:[#allocation10 + $0x2b0] sm:$0xff]  ;;  %v2831_v58 = vld [vmem:[#allocation10 + $0x2c8] sm:$0xff] }
 0x7b7   :  { %5408 = vmatprep.subr.bf16.mxu0 %v5407_v32  ;;  %5440 = vmatprep.subr.bf16.mxu1 %v5439_v36  ;;  %v2506_v32 = vld [vmem:[#allocation8 + $0x3d0] sm:$0xff]  ;;  %v5425_v10 = vpack.c.bf16 %v2508_v15, %v2504_v23  ;;  %v7173_v40 = vpack.c.bf16 %v2828_v50, %v2824_v24  ;;  %v2830_v23 = vld [vmem:[#allocation10 + $0x2c0] sm:$0xff]  ;;  %v2861_v50 = vld [vmem:[#allocation10 + $0x3b8] sm:$0xff] }
 0x7b8   :  { %v2510_v36 = vld [vmem:[#allocation8 + $0x3f0] sm:$0xff] }
 0x7b9   :  { %v5457_v19 = vpack.c.bf16 %v2510_v36, %v2506_v32  ;;  %v2832_v32 = vld [vmem:[#allocation10 + $0x2d0] sm:$0xff] }
 0x7ba   :  { %5410 = vmatpush1.bf16.msra.mxu0 %v5409_v17  ;;  %5442 = vmatpush1.bf16.msra.mxu1 %v5441_v42  ;;  %v2811_v17 = vld [vmem:[#allocation10 + $0x228] sm:$0xff]  ;;  %v2809_v42 = vld [vmem:[#allocation10 + $0x218] sm:$0xff]  ;;  %v2836_v36 = vld [vmem:[#allocation10 + $0x2f0] sm:$0xff] }
 0x7bb   :  { %5412 = vmatprep.subr.bf16.mxu0 %v5411_v25  ;;  %5444 = vmatprep.subr.bf16.mxu1 %v5443_v27  ;;  %v2806_v25 = vld [vmem:[#allocation10 + $0x200] sm:$0xff]  ;;  %v7144_v27 = vpack.c.bf16 %v2813_v53, %v2809_v42 }
 0x7be   :  { %5414 = vmatpush1.bf16.msra.mxu0 %v5413_v2  ;;  %5446 = vmatpush1.bf16.msra.mxu1 %v5445_v11  ;;  %v7154_v2 = vpack.c.bf16 %v2819_v49, %v2815_v45  ;;  %v2821_v11 = vld [vmem:[#allocation10 + $0x278] sm:$0xff]  ;;  %v2851_v45 = vld [vmem:[#allocation10 + $0x368] sm:$0xff] }
 0x7bf   :  { %5416 = vmatprep.subr.bf16.mxu0 %v5415_v47  ;;  %5448 = vmatprep.subr.bf16.mxu1 %v5447_v29  ;;  %v7156_v47 = vpack.c.bf16 %v2821_v11, %v2817_v20  ;;  %v7158_v29 = vpack.c.bf16 %v2818_v28, %v2814_v12  ;;  %v2849_v49 = vld [vmem:[#allocation10 + $0x358] sm:$0xff]  ;;  %v2846_v12 = vld [vmem:[#allocation10 + $0x340] sm:$0xff] }
 0x7c0   :  { %v2853_v11 = vld [vmem:[#allocation10 + $0x378] sm:$0xff]  ;;  %v2850_v28 = vld [vmem:[#allocation10 + $0x360] sm:$0xff] }
 0x7c1   :  { %v7204_v44 = vpack.c.bf16 %v2853_v11, %v2849_v49  ;;  %v7206_v48 = vpack.c.bf16 %v2850_v28, %v2846_v12 }
 0x7c2   :  { %5418 = vmatpush1.bf16.msra.mxu0 %v5417_v34  ;;  %5450 = vmatpush1.bf16.msra.mxu1 %v5449_v43  ;;  %v7166_v34 = vpack.c.bf16 %v2827_v26, %v2823_v9  ;;  %v2829_v43 = vld [vmem:[#allocation10 + $0x2b8] sm:$0xff]  ;;  %v2848_v9 = vld [vmem:[#allocation10 + $0x350] sm:$0xff] }
 0x7c3   :  { %5420 = vmatprep.subr.bf16.mxu0 %v5419_v6  ;;  %5452 = vmatprep.subr.bf16.mxu1 %v5451_v21  ;;  %v7168_v6 = vpack.c.bf16 %v2829_v43, %v2825_v14  ;;  %v7170_v21 = vpack.c.bf16 %v2826_v7, %v2822_v56  ;;  %v2852_v26 = vld [vmem:[#allocation10 + $0x370] sm:$0xff]  ;;  %v2855_v43 = vld [vmem:[#allocation10 + $0x388] sm:$0xff]  ;;  %v2857_v7 = vld [vmem:[#allocation10 + $0x398] sm:$0xff] }
 0x7c4   :  { %v7209_v14 = vpack.c.bf16 %v2852_v26, %v2848_v9  ;;  %v2859_v56 = vld [vmem:[#allocation10 + $0x3a8] sm:$0xff] }
 0x7c5   :  { %v7214_v24 = vpack.c.bf16 %v2859_v56, %v2855_v43 }
 0x7c6   :  { %5422 = vmatpush1.bf16.msra.mxu0 %v5421_v60  ;;  %5454 = vmatpush1.bf16.msra.mxu1 %v5453_v63  ;;  %v7178_v60 = vpack.c.bf16 %v2835_v62, %v2831_v58  ;;  %v2837_v63 = vld [vmem:[#allocation10 + $0x2f8] sm:$0xff]  ;;  %v2854_v58 = vld [vmem:[#allocation10 + $0x380] sm:$0xff] }
 0x7c7   :  { %5424 = vmatprep.subr.bf16.mxu0 %v5423_v5  ;;  %5456 = vmatprep.subr.bf16.mxu1 %v5455_v52  ;;  %v2834_v5 = vld [vmem:[#allocation10 + $0x2e0] sm:$0xff]  ;;  %v7180_v52 = vpack.c.bf16 %v2837_v63, %v2833_v18  ;;  %v7216_v18 = vpack.c.bf16 %v2861_v50, %v2857_v7 }
 0x7c8   :  { %v7182_v15 = vpack.c.bf16 %v2834_v5, %v2830_v23  ;;  %v2858_v62 = vld [vmem:[#allocation10 + $0x3a0] sm:$0xff]  ;;  %v2856_v23 = vld [vmem:[#allocation10 + $0x390] sm:$0xff] }
 0x7c9   :  { %v7218_v63 = vpack.c.bf16 %v2858_v62, %v2854_v58  ;;  %v2860_v5 = vld [vmem:[#allocation10 + $0x3b0] sm:$0xff] }
 0x7ca   :  { %5426 = vmatpush1.bf16.msra.mxu0 %v5425_v10  ;;  %5458 = vmatpush1.bf16.msra.mxu1 %v5457_v19  ;;  %v7185_v10 = vpack.c.bf16 %v2836_v36, %v2832_v32  ;;  %v2839_v19 = vld [vmem:[#allocation10 + $0x308] sm:$0xff]  ;;  %v7221_v32 = vpack.c.bf16 %v2860_v5, %v2856_v23 }
 0x7cb   :  { %5492 = vmatprep.subr.bf16.mxu1 %v7144_v27  ;;  %v2863_v36 = vld [vmem:[#allocation10 + $0x3c8] sm:$0xff] }
 0x7cd   :  { %2600 = vmatmul.mubr.f32.vlgmr.msra.gmra.mrb[16].mxu0 %v2439_v46  ;;  %2713 = vmatmul.mubr.f32.vlgmr.msra.gmra.mrb[16].mxu1 %v2439_v46  ;;  %v2843_v46 = vld [vmem:[#allocation10 + $0x328] sm:$0xff] }
 0x7ce   :  { %2605 = vmatprep.mubr.f32.mxu0 %v6519_v0  ;;  %2718 = vmatprep.mubr.f32.mxu1 %v6519_v0 }
 0x7d1   :  { %2606 = vmatmul.mubr.f32.gmra.mrb[18].mxu0 %v2440_v59  ;;  %2719 = vmatmul.mubr.f32.gmra.mrb[18].mxu1 %v2440_v59  ;;  %v2841_v59 = vld [vmem:[#allocation10 + $0x318] sm:$0xff] }
 0x7d2   :  { %2611 = vmatprep.mubr.f32.mxu0 %v6519_v0  ;;  %2724 = vmatprep.mubr.f32.mxu1 %v6519_v0 }
 0x7d5   :  { %2612 = vmatmul.mubr.f32.gmra.mrb[20].mxu0 %v2441_v1  ;;  %2725 = vmatmul.mubr.f32.gmra.mrb[20].mxu1 %v2441_v1  ;;  %v7190_v1 = vpack.c.bf16 %v2843_v46, %v2839_v19  ;;  %v2867_v19 = vld [vmem:[#allocation10 + $0x3e8] sm:$0xff]  ;;  %v2865_v46 = vld [vmem:[#allocation10 + $0x3d8] sm:$0xff] }
 0x7d6   :  { %2617 = vmatprep.mubr.f32.mxu0 %v6519_v0  ;;  %2730 = vmatprep.mubr.f32.mxu1 %v6519_v0 }
 0x7d9   :  { %2618 = vmatmul.mubr.f32.gmra.mrb[22].mxu0 %v2442_v8  ;;  %2731 = vmatmul.mubr.f32.gmra.mrb[22].mxu1 %v2442_v8  ;;  %v2845_v8 = vld [vmem:[#allocation10 + $0x338] sm:$0xff] }
 0x7da   :  { %2623 = vmatprep.mubr.f32.mxu0 %v6519_v0  ;;  %2736 = vmatprep.mubr.f32.mxu1 %v6519_v0  ;;  %v7192_v42 = vpack.c.bf16 %v2845_v8, %v2841_v59  ;;  %v7226_v59 = vpack.c.bf16 %v2867_v19, %v2863_v36  ;;  %v2869_v8 = vld [vmem:[#allocation10 + $0x3f8] sm:$0xff] }
 0x7dd   :  { %2624 = vmatmul.mubr.f32.gmra.mrb[24].mxu0 %v7042_v22  ;;  %2737 = vmatmul.mubr.f32.gmra.mrb[24].mxu1 %v7042_v22  ;;  %v2807_v22 = vld [vmem:[#allocation10 + $0x208] sm:$0xff] }
 0x7de   :  { %2629 = vmatprep.mubr.f32.mxu0 %v6519_v0  ;;  %2742 = vmatprep.mubr.f32.mxu1 %v6519_v0  ;;  %v7142_v41 = vpack.c.bf16 %v2811_v17, %v2807_v22  ;;  %v2838_v22 = vld [vmem:[#allocation10 + $0x300] sm:$0xff] }
 0x7df   :  { %v2842_v17 = vld [vmem:[#allocation10 + $0x320] sm:$0xff] }
 0x7e0   :  { %5460 = vmatprep.subr.bf16.mxu0 %v7142_v41  ;;  %v7194_v53 = vpack.c.bf16 %v2842_v17, %v2838_v22  ;;  %v2862_v22 = vld [vmem:[#allocation10 + $0x3c0] sm:$0xff] }
 0x7e1   :  { %2630 = vmatmul.mubr.f32.gmra.mrb[26].mxu0 %v7086_v30  ;;  %2743 = vmatmul.mubr.f32.gmra.mrb[26].mxu1 %v7086_v30  ;;  %v2810_v30 = vld [vmem:[#allocation10 + $0x220] sm:$0xff] }
 0x7e2   :  { %2635 = vmatprep.mubr.f32.mxu0 %v6519_v0  ;;  %2748 = vmatprep.mubr.f32.mxu1 %v6519_v0  ;;  %v7146_v3 = vpack.c.bf16 %v2810_v30, %v2806_v25  ;;  %v2840_v25 = vld [vmem:[#allocation10 + $0x310] sm:$0xff]  ;;  %v2866_v17 = vld [vmem:[#allocation10 + $0x3e0] sm:$0xff] }
 0x7e3   :  { %v2844_v30 = vld [vmem:[#allocation10 + $0x330] sm:$0xff] }
 0x7e4   :  { %5462 = vmatpush1.bf16.msra.mxu0 %v7146_v3 }
 0x7e5   :  { %2636 = vmatmul.mubr.f32.gmra.mrb[28].mxu0 %v7116_v51  ;;  %2749 = vmatmul.mubr.f32.gmra.mrb[28].mxu1 %v7116_v51  ;;  %v7149_v51 = vpack.c.bf16 %v2812_v16, %v2808_v13  ;;  %v7197_v13 = vpack.c.bf16 %v2844_v30, %v2840_v25  ;;  %v2847_v16 = vld [vmem:[#allocation10 + $0x348] sm:$0xff]  ;;  %v7228_v25 = vpack.c.bf16 %v2869_v8, %v2865_v46 }
 0x7e6   :  { %2641 = vmatprep.mubr.f32.mxu0 %v6519_v0  ;;  %2754 = vmatprep.mubr.f32.mxu1 %v6519_v0  ;;  %v7202_v20 = vpack.c.bf16 %v2851_v45, %v2847_v16  ;;  %v7230_v30 = vpack.c.bf16 %v2866_v17, %v2862_v22  ;;  %v2864_v16 = vld [vmem:[#allocation10 + $0x3d0] sm:$0xff] }
 0x7e7   :  { %5494 = vmatpush1.bf16.msra.mxu1 %v7149_v51  ;;  %5464 = vmatprep.subr.bf16.mxu0 %v7154_v2  ;;  %v2868_v45 = vld [vmem:[#allocation10 + $0x3f0] sm:$0xff] }
 0x7e8   :  { %5496 = vmatprep.subr.bf16.mxu1 %v7156_v47  ;;  %5466 = vmatpush1.bf16.msra.mxu0 %v7158_v29  ;;  %v7233_v49 = vpack.c.bf16 %v2868_v45, %v2864_v16 }
 0x7e9   :  { %5468 = vmatprep.subr.bf16.mxu0 %v7166_v34 }
 0x7eb   :  { %5498 = vmatpush1.bf16.msra.mxu1 %v7161_v4 }
 0x7ec   :  { %5500 = vmatprep.subr.bf16.mxu1 %v7168_v6  ;;  %5470 = vmatpush1.bf16.msra.mxu0 %v7170_v21 }
 0x7ed   :  { %5472 = vmatprep.subr.bf16.mxu0 %v7178_v60 }
 0x7ef   :  { %5502 = vmatpush1.bf16.msra.mxu1 %v7173_v40 }
 0x7f0   :  { %5504 = vmatprep.subr.bf16.mxu1 %v7180_v52  ;;  %5474 = vmatpush1.bf16.msra.mxu0 %v7182_v15 }
 0x7f1   :  { %5476 = vmatprep.subr.bf16.mxu0 %v7190_v1 }
 0x7f3   :  { %5506 = vmatpush1.bf16.msra.mxu1 %v7185_v10 }
 0x7f4   :  { %5508 = vmatprep.subr.bf16.mxu1 %v7192_v42  ;;  %5478 = vmatpush1.bf16.msra.mxu0 %v7194_v53 }
 0x7f5   :  { %5480 = vmatprep.subr.bf16.mxu0 %v7202_v20 }
 0x7f7   :  { %5510 = vmatpush1.bf16.msra.mxu1 %v7197_v13 }
 0x7f8   :  { %5512 = vmatprep.subr.bf16.mxu1 %v7204_v44  ;;  %5482 = vmatpush1.bf16.msra.mxu0 %v7206_v48 }
 0x7f9   :  { %5484 = vmatprep.subr.bf16.mxu0 %v7214_v24 }
 0x7fb   :  { %5514 = vmatpush1.bf16.msra.mxu1 %v7209_v14 }
 0x7fc   :  { %5516 = vmatprep.subr.bf16.mxu1 %v7216_v18  ;;  %5486 = vmatpush1.bf16.msra.mxu0 %v7218_v63 }
 0x7fd   :  { %5488 = vmatprep.subr.bf16.mxu0 %v7226_v59 }
 0x7ff   :  { %5518 = vmatpush1.bf16.msra.mxu1 %v7221_v32 }
 0x800   :  { %5520 = vmatprep.subr.bf16.mxu1 %v7228_v25  ;;  %5490 = vmatpush1.bf16.msra.mxu0 %v7230_v30 }
 0x801   :  { %5524 = vmatprep.subr.bf16.mxu0 %v7142_v41 }
 0x803   :  { %5522 = vmatpush1.bf16.msra.mxu1 %v7233_v49 }
 0x804   :  { %5556 = vmatprep.subr.bf16.mxu1 %v7144_v27 }
 0x880   :  { %v2331_v11 = vpop.f32.mrb[14].mxu0  ;;  %v2402_v12 = vpop.f32.mrb[14].mxu1 }
 0x881   :  { %v5985_v28 = vadd.f32 %v2331_v11, %v6784_v37  ;;  %v2333_v9 = vpop.f32.mrb[15].mxu0  ;;  %v2404_v26 = vpop.f32.mrb[15].mxu1  ;;  %v6001_v62 = vadd.f32 %v2402_v12, %v6801_v61  ;;  %v2794_v12 = vld [vmem:[#allocation13 + $0x8] sm:$0xff] }
 0x882   :  { %v5986_v43 = vadd.f32 %v2333_v9, %v6788_v39  ;;  %v6002_v50 = vadd.f32 %v2404_v26, %v6795_v55 }
 0x883   :  { %v4791_v56 = vmul.f32 -1.442695, %v5985_v28 }
 0x884   :  { %v4792_v7 = vmul.f32 -1.442695, %v5986_v43  ;;  %v4793_v58 = vmul.f32 -1.442695, %v6002_v50 }
 0x885   :  { %6224 = vpow2.f32 %v4791_v56 }
 0x886   :  { %6226 = vpow2.f32 %v4792_v7 }
 0x887   :  { %6228 = vpow2.f32 %v4793_v58 }
 0x888   :  { %6230 = vtanh.f32 %v6001_v62 }
 0x88f   :  { %v6225_v23 = vpop.eup %6224 }
 0x890   :  { %v6227_v5 = vpop.eup %6226  ;;  %v2414_v36 = vadd.f32 1.0, %v6225_v23 }
 0x891   :  { %v2420_v19 = vadd.f32 1.0, %v6227_v5  ;;  %v6229_v37 = vpop.eup %6228 }
 0x892   :  { %6232 = vrcp.f32 %v2414_v36  ;;  %v6231_v46 = vpop.eup %6230  ;;  %v2427_v17 = vadd.f32 1.0, %v6229_v37 }
 0x893   :  { %6234 = vrcp.f32 %v2420_v19 }
 0x894   :  { %6236 = vrcp.f32 %v2427_v17  ;;  %v4794_v17 = vld [vmem:[%s7642_s5 + $0x8] sm:$0xff]  ;;  %s6520_s5 = smov [#allocation14]  }
 0x895   :  { %s4749_s16 = sshll.u32 %s6520_s5, 4  ;;  %s4750_s16 = int_to_ptr.vmem [resolvable:$true] %s4749_s16 }
 0x896   :  { %s6478_s17 = scalar_lea.vmem %s4750_s16, 1024  ;;  %p6483_p13 = scmp.lt.s32.totalorder %s4750_s16, %s4750_s16 }
 0x897   :  { %p6479_p12 = scmp.ne.s32.totalorder %s4750_s16, %s6478_s17  ;;  %p6484_p0 = scmp.lt.s32.totalorder %s6478_s17, %s6478_s17 }
 0x899   :  { %p6485_p1 = por %p6484_p0, %p6483_p13 }
 0x89b   :  { %p6486_p2 = pnand %p6485_p1, %p6479_p12 }
 0x89c   :  { %v6233_v39 = vpop.eup %6232 }
 0x89d   :  { %v6235_v8 = vpop.eup %6234  ;;  %v2431_v22 = vmul.f32 %v6233_v39, %v6231_v46 }
 0x89e   :  { %v2430_v16 = vmul.f32 %v6235_v8, %v7113_v54  ;;  %v6237_v61 = vpop.eup %6236  ;;  %v2513_v54 = vld [vmem:[#allocation11 + $0x4] sm:$0xf] }
 0x89f   :  { %v7283_v28 = vrot.slane %v2513_v54, %v184_v33  ;;  %v7287_v9 = vrot.slane %v2513_v54, %v188_v35  ;;  %v7293_v5 = vrot.slane %v2513_v54, %v196_v38  ;;  %v7298_v35 = vrot.slane %v2513_v54, %v192_v57 }
 0x8a0   :  { %v2432_v55 = vadd.f32 %v2431_v22, %v2430_v16 }
 0x8a2   :  { %6238 = vtanh.f32 %v2432_v55 }
 0x8ac   :  { %v6239_v45 = vpop.eup %6238 }
 0x8ad   :  { %v2434_v11 = vmul.f32 %v6239_v45, %v6237_v61 }
 0x8af   :  { %2642 = vmatmul.mubr.f32.gmra.mrb[30].mxu0 %v2434_v11  ;;  %2755 = vmatmul.mubr.f32.gmra.mrb[30].mxu1 %v2434_v11 }
 0x8b0   :  { %2934 = vmatprep.mubr.f32.mxu0 %v6519_v0  ;;  %3005 = vmatprep.mubr.f32.mxu1 %v6519_v0 }
 0x8b3   :  { %2935 = vmatmul.mubr.f32.vlgmr.msra.gmra.mrb[16].mxu0 %v2794_v12  ;;  %3006 = vmatmul.mubr.f32.vlgmr.msra.gmra.mrb[16].mxu1 %v2794_v12 }
 0x8b4   :  { %5526 = vmatpush1.bf16.msra.mxu0 %v7146_v3  ;;  %5558 = vmatpush1.bf16.msra.mxu1 %v7149_v51 }
 0x8b5   :  { %5528 = vmatprep.subr.bf16.mxu0 %v7154_v2  ;;  %5560 = vmatprep.subr.bf16.mxu1 %v7156_v47 }
 0x8b6   :  { %3177 = vmatprep.mubr.f32.mxu0 %v6519_v0  ;;  %3248 = vmatprep.mubr.f32.mxu1 %v6519_v0 }
 0x8b8   :  { %5530 = vmatpush1.bf16.msra.mxu0 %v7158_v29  ;;  %5562 = vmatpush1.bf16.msra.mxu1 %v7161_v4 }
 0x8b9   :  { %5532 = vmatprep.subr.bf16.mxu0 %v7166_v34  ;;  %5564 = vmatprep.subr.bf16.mxu1 %v7168_v6 }
 0x8bc   :  { %5534 = vmatpush1.bf16.msra.mxu0 %v7170_v21  ;;  %5566 = vmatpush1.bf16.msra.mxu1 %v7173_v40 }
 0x8bd   :  { %5536 = vmatprep.subr.bf16.mxu0 %v7178_v60  ;;  %5568 = vmatprep.subr.bf16.mxu1 %v7180_v52 }
 0x8c0   :  { %5538 = vmatpush1.bf16.msra.mxu0 %v7182_v15  ;;  %5570 = vmatpush1.bf16.msra.mxu1 %v7185_v10 }
 0x8c1   :  { %5540 = vmatprep.subr.bf16.mxu0 %v7190_v1  ;;  %5572 = vmatprep.subr.bf16.mxu1 %v7192_v42 }
 0x8c4   :  { %5542 = vmatpush1.bf16.msra.mxu0 %v7194_v53  ;;  %5574 = vmatpush1.bf16.msra.mxu1 %v7197_v13 }
 0x8c5   :  { %5544 = vmatprep.subr.bf16.mxu0 %v7202_v20  ;;  %5576 = vmatprep.subr.bf16.mxu1 %v7204_v44 }
 0x8c8   :  { %5546 = vmatpush1.bf16.msra.mxu0 %v7206_v48  ;;  %5578 = vmatpush1.bf16.msra.mxu1 %v7209_v14 }
 0x8c9   :  { %5548 = vmatprep.subr.bf16.mxu0 %v7214_v24  ;;  %5580 = vmatprep.subr.bf16.mxu1 %v7216_v18 }
 0x8cc   :  { %5550 = vmatpush1.bf16.msra.mxu0 %v7218_v63  ;;  %5582 = vmatpush1.bf16.msra.mxu1 %v7221_v32 }
 0x8cd   :  { %5552 = vmatprep.subr.bf16.mxu0 %v7226_v59  ;;  %5584 = vmatprep.subr.bf16.mxu1 %v7228_v25 }
 0x8d0   :  { %5554 = vmatpush1.bf16.msra.mxu0 %v7230_v30  ;;  %5586 = vmatpush1.bf16.msra.mxu1 %v7233_v49 }
 0x8d1   :  { %5588 = vmatprep.subr.bf16.mxu0 %v7142_v41  ;;  %5620 = vmatprep.subr.bf16.mxu1 %v7144_v27 }
 0x986   :  { %v2936_v26 = vpop.f32.mrb[16].mxu0  ;;  %v3007_v43 = vpop.f32.mrb[16].mxu1 }
 0x987   :  { %v6003_v56 = vadd.f32 %v2936_v26, %v7283_v28  ;;  %v2938_v7 = vpop.f32.mrb[17].mxu0  ;;  %v3009_v50 = vpop.f32.mrb[17].mxu1  ;;  %v6019_v19 = vadd.f32 %v3007_v43, %v7298_v35 }
 0x988   :  { %v6004_v58 = vadd.f32 %v2938_v7, %v7287_v9  ;;  %v6020_v33 = vadd.f32 %v3009_v50, %v7293_v5 }
 0x989   :  { %v4795_v62 = vmul.f32 -1.442695, %v6003_v56 }
 0x98a   :  { %v4796_v23 = vmul.f32 -1.442695, %v6004_v58  ;;  %v4797_v36 = vmul.f32 -1.442695, %v6020_v33 }
 0x98b   :  { %6240 = vpow2.f32 %v4795_v62 }
 0x98c   :  { %6242 = vpow2.f32 %v4796_v23 }
 0x98d   :  { %6244 = vpow2.f32 %v4797_v36 }
 0x98e   :  { %6246 = vtanh.f32 %v6019_v19 }
 0x995   :  { %v6241_v37 = vpop.eup %6240 }
 0x996   :  { %v6243_v46 = vpop.eup %6242  ;;  %v3019_v39 = vadd.f32 1.0, %v6241_v37 }
 0x997   :  { %v3025_v8 = vadd.f32 1.0, %v6243_v46  ;;  %v6245_v38 = vpop.eup %6244 }
 0x998   :  { %6248 = vrcp.f32 %v3019_v39  ;;  %v6247_v22 = vpop.eup %6246  ;;  %v3032_v55 = vadd.f32 1.0, %v6245_v38 }
 0x999   :  { %6250 = vrcp.f32 %v3025_v8 }
 0x99a   :  { %6252 = vrcp.f32 %v3032_v55 }
 0x9a2   :  { %v6249_v31 = vpop.eup %6248 }
 0x9a3   :  { %v6251_v57 = vpop.eup %6250  ;;  %v3036_v16 = vmul.f32 %v6249_v31, %v6247_v22 }
 0x9a4   :  { %v3035_v61 = vmul.f32 %v6251_v57, %v4794_v17  ;;  %v6253_v11 = vpop.eup %6252 }
 0x9a6   :  { %v7304_v45 = vadd.f32 %v3036_v16, %v3035_v61 }
 0x9a8   :  { %6254 = vtanh.f32 %v7304_v45 }
 0x9b2   :  { %v6255_v12 = vpop.eup %6254 }
 0x9b3   :  { %v3039_v54 = vmul.f32 %v6255_v12, %v6253_v11  ;;  %v3778_v12 = vld [vmem:[#allocation10 + $0x200] sm:$0xff] }
 0x9b5   :  { %3042 = vst [vmem:[#allocation14] sm:$0xff] %v3039_v54  ;;  %3178 = vmatmul.mubr.f32.vlgmr.msra.gmra.mrb[18].mxu0 %v3039_v54  ;;  %3249 = vmatmul.mubr.f32.vlgmr.msra.gmra.mrb[18].mxu1 %v3039_v54  ;;  %v3782_v54 = vld [vmem:[#allocation10 + $0x220] sm:$0xff] }
 0x9b6   :  { %5590 = vmatpush1.bf16.msra.mxu0 %v7146_v3  ;;  %5622 = vmatpush1.bf16.msra.mxu1 %v7149_v51 }
 0x9b7   :  { %5592 = vmatprep.subr.bf16.mxu0 %v7154_v2  ;;  %5624 = vmatprep.subr.bf16.mxu1 %v7156_v47 }
 0x9b8   :  { %3420 = vmatprep.mubr.f32.mxu0 %v6519_v0  ;;  %3491 = vmatprep.mubr.f32.mxu1 %v6519_v0 }
 0x9ba   :  { %5594 = vmatpush1.bf16.msra.mxu0 %v7158_v29  ;;  %5626 = vmatpush1.bf16.msra.mxu1 %v7161_v4 }
 0x9bb   :  { %5596 = vmatprep.subr.bf16.mxu0 %v7166_v34  ;;  %5628 = vmatprep.subr.bf16.mxu1 %v7168_v6 }
 0x9be   :  { %5598 = vmatpush1.bf16.msra.mxu0 %v7170_v21  ;;  %5630 = vmatpush1.bf16.msra.mxu1 %v7173_v40 }
 0x9bf   :  { %5600 = vmatprep.subr.bf16.mxu0 %v7178_v60  ;;  %5632 = vmatprep.subr.bf16.mxu1 %v7180_v52 }
 0x9c2   :  { %5602 = vmatpush1.bf16.msra.mxu0 %v7182_v15  ;;  %5634 = vmatpush1.bf16.msra.mxu1 %v7185_v10 }
 0x9c3   :  { %5604 = vmatprep.subr.bf16.mxu0 %v7190_v1  ;;  %5636 = vmatprep.subr.bf16.mxu1 %v7192_v42 }
 0x9c6   :  { %5606 = vmatpush1.bf16.msra.mxu0 %v7194_v53  ;;  %5638 = vmatpush1.bf16.msra.mxu1 %v7197_v13 }
 0x9c7   :  { %5608 = vmatprep.subr.bf16.mxu0 %v7202_v20  ;;  %5640 = vmatprep.subr.bf16.mxu1 %v7204_v44 }
 0x9ca   :  { %5610 = vmatpush1.bf16.msra.mxu0 %v7206_v48  ;;  %5642 = vmatpush1.bf16.msra.mxu1 %v7209_v14 }
 0x9cb   :  { %5612 = vmatprep.subr.bf16.mxu0 %v7214_v24  ;;  %5644 = vmatprep.subr.bf16.mxu1 %v7216_v18 }
 0x9ce   :  { %5614 = vmatpush1.bf16.msra.mxu0 %v7218_v63  ;;  %5646 = vmatpush1.bf16.msra.mxu1 %v7221_v32 }
 0x9cf   :  { %5616 = vmatprep.subr.bf16.mxu0 %v7226_v59  ;;  %5648 = vmatprep.subr.bf16.mxu1 %v7228_v25 }
 0x9d2   :  { %5618 = vmatpush1.bf16.msra.mxu0 %v7230_v30  ;;  %5650 = vmatpush1.bf16.msra.mxu1 %v7233_v49 }
 0x9d3   :  { %5652 = vmatprep.subr.bf16.mxu0 %v7142_v41  ;;  %5684 = vmatprep.subr.bf16.mxu1 %v7144_v27 }
 0xa88   :  { %v3179_v26 = vpop.f32.mrb[18].mxu0  ;;  %v3250_v43 = vpop.f32.mrb[18].mxu1 }
 0xa89   :  { %v6005_v56 = vadd.f32 %v3179_v26, %v7283_v28  ;;  %v3181_v7 = vpop.f32.mrb[19].mxu0  ;;  %v3252_v50 = vpop.f32.mrb[19].mxu1  ;;  %v6021_v19 = vadd.f32 %v3250_v43, %v7298_v35  ;;  %v7395_v43 = vpack.c.bf16 %v3782_v54, %v3778_v12  ;;  %v3821_v12 = vld [vmem:[#allocation10 + $0x358] sm:$0xff] }
 0xa8a   :  { %v6006_v58 = vadd.f32 %v3181_v7, %v7287_v9  ;;  %v6022_v33 = vadd.f32 %v3252_v50, %v7293_v5  ;;  %v3784_v7 = vld [vmem:[#allocation10 + $0x230] sm:$0xff] }
 0xa8b   :  { %v4798_v62 = vmul.f32 -1.442695, %v6005_v56  ;;  %v3780_v56 = vld [vmem:[#allocation10 + $0x210] sm:$0xff] }
 0xa8c   :  { %v4799_v23 = vmul.f32 -1.442695, %v6006_v58  ;;  %v4800_v36 = vmul.f32 -1.442695, %v6022_v33  ;;  %v7398_v50 = vpack.c.bf16 %v3784_v7, %v3780_v56  ;;  %v3787_v58 = vld [vmem:[#allocation10 + $0x248] sm:$0xff]  ;;  %v3825_v56 = vld [vmem:[#allocation10 + $0x378] sm:$0xff] }
 0xa8d   :  { %6256 = vpow2.f32 %v4798_v62  ;;  %v3791_v62 = vld [vmem:[#allocation10 + $0x268] sm:$0xff]  ;;  %v3818_v7 = vld [vmem:[#allocation10 + $0x340] sm:$0xff] }
 0xa8e   :  { %6258 = vpow2.f32 %v4799_v23  ;;  %v3789_v23 = vld [vmem:[#allocation10 + $0x258] sm:$0xff]  ;;  %v7403_v33 = vpack.c.bf16 %v3791_v62, %v3787_v58  ;;  %v3822_v58 = vld [vmem:[#allocation10 + $0x360] sm:$0xff]  ;;  %v7453_v62 = vpack.c.bf16 %v3825_v56, %v3821_v12 }
 0xa8f   :  { %6260 = vpow2.f32 %v4800_v36  ;;  %v3793_v36 = vld [vmem:[#allocation10 + $0x278] sm:$0xff] }
 0xa90   :  { %6262 = vtanh.f32 %v6021_v19  ;;  %v3786_v19 = vld [vmem:[#allocation10 + $0x240] sm:$0xff] }
 0xa97   :  { %v6257_v41 = vpop.eup %6256 }
 0xa98   :  { %v6259_v37 = vpop.eup %6258  ;;  %v3262_v27 = vadd.f32 1.0, %v6257_v41  ;;  %v3790_v41 = vld [vmem:[#allocation10 + $0x260] sm:$0xff] }
 0xa99   :  { %v3268_v46 = vadd.f32 1.0, %v6259_v37  ;;  %v6261_v39 = vpop.eup %6260  ;;  %v7405_v37 = vpack.c.bf16 %v3793_v36, %v3789_v23  ;;  %v7455_v23 = vpack.c.bf16 %v3822_v58, %v3818_v7  ;;  %v3820_v36 = vld [vmem:[#allocation10 + $0x350] sm:$0xff] }
 0xa9a   :  { %6264 = vrcp.f32 %v3262_v27  ;;  %v6263_v8 = vpop.eup %6262  ;;  %v3275_v31 = vadd.f32 1.0, %v6261_v39  ;;  %v7407_v27 = vpack.c.bf16 %v3790_v41, %v3786_v19  ;;  %v3792_v39 = vld [vmem:[#allocation10 + $0x270] sm:$0xff]  ;;  %v3827_v41 = vld [vmem:[#allocation10 + $0x388] sm:$0xff] }
 0xa9b   :  { %6266 = vrcp.f32 %v3268_v46  ;;  %v3788_v46 = vld [vmem:[#allocation10 + $0x250] sm:$0xff] }
 0xa9c   :  { %6268 = vrcp.f32 %v3275_v31  ;;  %v3824_v19 = vld [vmem:[#allocation10 + $0x370] sm:$0xff] }
 0xaa4   :  { %v6265_v38 = vpop.eup %6264 }
 0xaa5   :  { %v6267_v22 = vpop.eup %6266  ;;  %v3279_v17 = vmul.f32 %v6265_v38, %v6263_v8  ;;  %v7410_v8 = vpack.c.bf16 %v3792_v39, %v3788_v46  ;;  %v3795_v38 = vld [vmem:[#allocation10 + $0x288] sm:$0xff]  ;;  %v7458_v46 = vpack.c.bf16 %v3824_v19, %v3820_v36 }
 0xaa6   :  { %v3278_v57 = vmul.f32 %v6267_v22, %v7304_v45  ;;  %v6269_v55 = vpop.eup %6268  ;;  %v3785_v45 = vld [vmem:[#allocation10 + $0x238] sm:$0xff]  ;;  %v3799_v22 = vld [vmem:[#allocation10 + $0x2a8] sm:$0xff] }
 0xaa7   :  { %v7415_v31 = vpack.c.bf16 %v3799_v22, %v3795_v38  ;;  %v3831_v39 = vld [vmem:[#allocation10 + $0x3a8] sm:$0xff]  ;;  %v3829_v38 = vld [vmem:[#allocation10 + $0x398] sm:$0xff] }
 0xaa8   :  { %v7346_v16 = vadd.f32 %v3279_v17, %v3278_v57  ;;  %v3797_v17 = vld [vmem:[#allocation10 + $0x298] sm:$0xff] }
 0xaa9   :  { %v3801_v57 = vld [vmem:[#allocation10 + $0x2b8] sm:$0xff] }
 0xaaa   :  { %6270 = vtanh.f32 %v7346_v16  ;;  %v3833_v22 = vld [vmem:[#allocation10 + $0x3b8] sm:$0xff] }
 0xab4   :  { %v6271_v61 = vpop.eup %6270 }
 0xab5   :  { %v3282_v11 = vmul.f32 %v6271_v61, %v6269_v55  ;;  %v3798_v55 = vld [vmem:[#allocation10 + $0x2a0] sm:$0xff]  ;;  %v7417_v61 = vpack.c.bf16 %v3801_v57, %v3797_v17  ;;  %v7461_v17 = vpack.c.bf16 %v3831_v39, %v3827_v41  ;;  %v7463_v57 = vpack.c.bf16 %v3833_v22, %v3829_v38 }
 0xab7   :  { %3285 = vst [vmem:[#allocation14 + $0x8] sm:$0xff] %v3282_v11  ;;  %3421 = vmatmul.mubr.f32.vlgmr.msra.gmra.mrb[20].mxu0 %v3282_v11  ;;  %3492 = vmatmul.mubr.f32.vlgmr.msra.gmra.mrb[20].mxu1 %v3282_v11 }
 0xab8   :  { %5654 = vmatpush1.bf16.msra.mxu0 %v7146_v3  ;;  %5686 = vmatpush1.bf16.msra.mxu1 %v7149_v51 }
 0xab9   :  { %5656 = vmatprep.subr.bf16.mxu0 %v7154_v2  ;;  %5688 = vmatprep.subr.bf16.mxu1 %v7156_v47 }
 0xaba   :  { %3663 = vmatprep.mubr.f32.mxu0 %v6519_v0  ;;  %3734 = vmatprep.mubr.f32.mxu1 %v6519_v0 }
 0xabc   :  { %5658 = vmatpush1.bf16.msra.mxu0 %v7158_v29  ;;  %5690 = vmatpush1.bf16.msra.mxu1 %v7161_v4 }
 0xabd   :  { %5660 = vmatprep.subr.bf16.mxu0 %v7166_v34  ;;  %5692 = vmatprep.subr.bf16.mxu1 %v7168_v6 }
 0xac0   :  { %5662 = vmatpush1.bf16.msra.mxu0 %v7170_v21  ;;  %5694 = vmatpush1.bf16.msra.mxu1 %v7173_v40 }
 0xac1   :  { %5664 = vmatprep.subr.bf16.mxu0 %v7178_v60  ;;  %5696 = vmatprep.subr.bf16.mxu1 %v7180_v52 }
 0xac4   :  { %5666 = vmatpush1.bf16.msra.mxu0 %v7182_v15  ;;  %5698 = vmatpush1.bf16.msra.mxu1 %v7185_v10 }
 0xac5   :  { %5668 = vmatprep.subr.bf16.mxu0 %v7190_v1  ;;  %5700 = vmatprep.subr.bf16.mxu1 %v7192_v42 }
 0xac8   :  { %5670 = vmatpush1.bf16.msra.mxu0 %v7194_v53  ;;  %5702 = vmatpush1.bf16.msra.mxu1 %v7197_v13 }
 0xac9   :  { %5672 = vmatprep.subr.bf16.mxu0 %v7202_v20  ;;  %5704 = vmatprep.subr.bf16.mxu1 %v7204_v44 }
 0xacc   :  { %5674 = vmatpush1.bf16.msra.mxu0 %v7206_v48  ;;  %5706 = vmatpush1.bf16.msra.mxu1 %v7209_v14 }
 0xacd   :  { %5676 = vmatprep.subr.bf16.mxu0 %v7214_v24  ;;  %5708 = vmatprep.subr.bf16.mxu1 %v7216_v18 }
 0xad0   :  { %5678 = vmatpush1.bf16.msra.mxu0 %v7218_v63  ;;  %5710 = vmatpush1.bf16.msra.mxu1 %v7221_v32 }
 0xad1   :  { %5680 = vmatprep.subr.bf16.mxu0 %v7226_v59  ;;  %5712 = vmatprep.subr.bf16.mxu1 %v7228_v25  ;;  %v3779_v59 = vld [vmem:[#allocation10 + $0x208] sm:$0xff] }
 0xad2   :  { %v3783_v25 = vld [vmem:[#allocation10 + $0x228] sm:$0xff] }
 0xad4   :  { %5682 = vmatpush1.bf16.msra.mxu0 %v7230_v30  ;;  %5714 = vmatpush1.bf16.msra.mxu1 %v7233_v49  ;;  %v3781_v30 = vld [vmem:[#allocation10 + $0x218] sm:$0xff]  ;;  %v7391_v49 = vpack.c.bf16 %v3783_v25, %v3779_v59  ;;  %v3816_v59 = vld [vmem:[#allocation10 + $0x330] sm:$0xff] }
 0xad5   :  { %v7393_v26 = vpack.c.bf16 %v3785_v45, %v3781_v30  ;;  %v3819_v30 = vld [vmem:[#allocation10 + $0x348] sm:$0xff] }
 0xad6   :  { %5716 = vmatprep.subr.bf16.mxu0 %v7391_v49  ;;  %v3823_v45 = vld [vmem:[#allocation10 + $0x368] sm:$0xff] }
 0xad7   :  { %5748 = vmatprep.subr.bf16.mxu1 %v7393_v26  ;;  %v7450_v54 = vpack.c.bf16 %v3823_v45, %v3819_v30 }
 0xb8a   :  { %v3422_v3 = vpop.f32.mrb[20].mxu0  ;;  %v3493_v51 = vpop.f32.mrb[20].mxu1 }
 0xb8b   :  { %v6007_v2 = vadd.f32 %v3422_v3, %v7283_v28  ;;  %v3424_v47 = vpop.f32.mrb[21].mxu0  ;;  %v3495_v29 = vpop.f32.mrb[21].mxu1  ;;  %v6023_v60 = vadd.f32 %v3493_v51, %v7298_v35  ;;  %v3796_v3 = vld [vmem:[#allocation10 + $0x290] sm:$0xff] }
 0xb8c   :  { %v6008_v4 = vadd.f32 %v3424_v47, %v7287_v9  ;;  %v6024_v21 = vadd.f32 %v3495_v29, %v7293_v5  ;;  %v3800_v51 = vld [vmem:[#allocation10 + $0x2b0] sm:$0xff]  ;;  %v3803_v47 = vld [vmem:[#allocation10 + $0x2c8] sm:$0xff] }
 0xb8d   :  { %v4801_v34 = vmul.f32 -1.442695, %v6007_v2  ;;  %v7422_v2 = vpack.c.bf16 %v3800_v51, %v3796_v3  ;;  %v3807_v29 = vld [vmem:[#allocation10 + $0x2e8] sm:$0xff]  ;;  %v3828_v3 = vld [vmem:[#allocation10 + $0x390] sm:$0xff] }
 0xb8e   :  { %v4802_v6 = vmul.f32 -1.442695, %v6008_v4  ;;  %v4803_v40 = vmul.f32 -1.442695, %v6024_v21  ;;  %v3805_v4 = vld [vmem:[#allocation10 + $0x2d8] sm:$0xff]  ;;  %v3802_v21 = vld [vmem:[#allocation10 + $0x2c0] sm:$0xff] }
 0xb8f   :  { %6272 = vpow2.f32 %v4801_v34  ;;  %v7427_v34 = vpack.c.bf16 %v3807_v29, %v3803_v47  ;;  %v3832_v47 = vld [vmem:[#allocation10 + $0x3b0] sm:$0xff]  ;;  %v3835_v29 = vld [vmem:[#allocation10 + $0x3c8] sm:$0xff] }
 0xb90   :  { %6274 = vpow2.f32 %v4802_v6  ;;  %v3809_v6 = vld [vmem:[#allocation10 + $0x2f8] sm:$0xff] }
 0xb91   :  { %6276 = vpow2.f32 %v4803_v40  ;;  %v3806_v40 = vld [vmem:[#allocation10 + $0x2e0] sm:$0xff] }
 0xb92   :  { %6278 = vtanh.f32 %v6023_v60  ;;  %v7429_v60 = vpack.c.bf16 %v3809_v6, %v3805_v4  ;;  %v3839_v4 = vld [vmem:[#allocation10 + $0x3e8] sm:$0xff]  ;;  %v7470_v6 = vpack.c.bf16 %v3832_v47, %v3828_v3 }
 0xb99   :  { %v6273_v52 = vpop.eup %6272 }
 0xb9a   :  { %v6275_v15 = vpop.eup %6274  ;;  %v3505_v10 = vadd.f32 1.0, %v6273_v52  ;;  %v7431_v52 = vpack.c.bf16 %v3806_v40, %v3802_v21  ;;  %v7472_v21 = vpack.c.bf16 %v3839_v4, %v3835_v29  ;;  %v3837_v40 = vld [vmem:[#allocation10 + $0x3d8] sm:$0xff] }
 0xb9b   :  { %v3511_v1 = vadd.f32 1.0, %v6275_v15  ;;  %v6277_v42 = vpop.eup %6276  ;;  %v3804_v15 = vld [vmem:[#allocation10 + $0x2d0] sm:$0xff] }
 0xb9c   :  { %6280 = vrcp.f32 %v3505_v10  ;;  %v6279_v53 = vpop.eup %6278  ;;  %v3518_v48 = vadd.f32 1.0, %v6277_v42  ;;  %v3808_v10 = vld [vmem:[#allocation10 + $0x2f0] sm:$0xff]  ;;  %v3811_v42 = vld [vmem:[#allocation10 + $0x308] sm:$0xff] }
 0xb9d   :  { %6282 = vrcp.f32 %v3511_v1  ;;  %v7434_v1 = vpack.c.bf16 %v3808_v10, %v3804_v15  ;;  %v3841_v15 = vld [vmem:[#allocation10 + $0x3f8] sm:$0xff]  ;;  %v3834_v10 = vld [vmem:[#allocation10 + $0x3c0] sm:$0xff] }
 0xb9e   :  { %6284 = vrcp.f32 %v3518_v48  ;;  %v3810_v48 = vld [vmem:[#allocation10 + $0x300] sm:$0xff] }
 0xba6   :  { %v6281_v13 = vpop.eup %6280 }
 0xba7   :  { %v6283_v20 = vpop.eup %6282  ;;  %v3522_v44 = vmul.f32 %v6281_v13, %v6279_v53  ;;  %v3815_v53 = vld [vmem:[#allocation10 + $0x328] sm:$0xff]  ;;  %v3813_v13 = vld [vmem:[#allocation10 + $0x318] sm:$0xff] }
 0xba8   :  { %v3521_v14 = vmul.f32 %v6283_v20, %v7346_v16  ;;  %v6285_v18 = vpop.eup %6284  ;;  %v3794_v16 = vld [vmem:[#allocation10 + $0x280] sm:$0xff]  ;;  %v7439_v20 = vpack.c.bf16 %v3815_v53, %v3811_v42  ;;  %v7475_v42 = vpack.c.bf16 %v3841_v15, %v3837_v40 }
 0xba9   :  { %v7419_v11 = vpack.c.bf16 %v3798_v55, %v3794_v16  ;;  %v3826_v16 = vld [vmem:[#allocation10 + $0x380] sm:$0xff] }
 0xbaa   :  { %v7386_v24 = vadd.f32 %v3522_v44, %v3521_v14  ;;  %v3817_v44 = vld [vmem:[#allocation10 + $0x338] sm:$0xff]  ;;  %v3814_v14 = vld [vmem:[#allocation10 + $0x320] sm:$0xff] }
 0xbab   :  { %v3830_v55 = vld [vmem:[#allocation10 + $0x3a0] sm:$0xff] }
 0xbac   :  { %6286 = vtanh.f32 %v7386_v24  ;;  %v7466_v51 = vpack.c.bf16 %v3830_v55, %v3826_v16  ;;  %v3838_v53 = vld [vmem:[#allocation10 + $0x3e0] sm:$0xff] }
 0xbb6   :  { %v6287_v63 = vpop.eup %6286 }
 0xbb7   :  { %v3525_v32 = vmul.f32 %v6287_v63, %v6285_v18  ;;  %v7441_v18 = vpack.c.bf16 %v3817_v44, %v3813_v13  ;;  %v7443_v63 = vpack.c.bf16 %v3814_v14, %v3810_v48  ;;  %v3836_v13 = vld [vmem:[#allocation10 + $0x3d0] sm:$0xff]  ;;  %v7478_v48 = vpack.c.bf16 %v3838_v53, %v3834_v10 }
 0xbb8   :  { %v3840_v44 = vld [vmem:[#allocation10 + $0x3f0] sm:$0xff] }
 0xbb9   :  { %3528 = vst [vmem:[#allocation14 + $0x10] sm:$0xff] %v3525_v32  ;;  %3664 = vmatmul.mubr.f32.vlgmr.msra.gmra.mrb[22].mxu0 %v3525_v32  ;;  %3735 = vmatmul.mubr.f32.vlgmr.msra.gmra.mrb[22].mxu1 %v3525_v32  ;;  %v3812_v32 = vld [vmem:[#allocation10 + $0x310] sm:$0xff]  ;;  %v7482_v14 = vpack.c.bf16 %v3840_v44, %v3836_v13 }
 0xbba   :  { %3906 = vmatprep.mubr.f32.mxu0 %v6519_v0  ;;  %3977 = vmatprep.mubr.f32.mxu1 %v6519_v0  ;;  %v7446_v25 = vpack.c.bf16 %v3816_v59, %v3812_v32 }
 0xbbb   :  { %5718 = vmatpush1.bf16.msra.mxu0 %v7395_v43  ;;  %5750 = vmatpush1.bf16.msra.mxu1 %v7398_v50 }
 0xbbc   :  { %5720 = vmatprep.subr.bf16.mxu0 %v7403_v33  ;;  %5752 = vmatprep.subr.bf16.mxu1 %v7405_v37 }
 0xbbf   :  { %5722 = vmatpush1.bf16.msra.mxu0 %v7407_v27  ;;  %5754 = vmatpush1.bf16.msra.mxu1 %v7410_v8 }
 0xbc0   :  { %5724 = vmatprep.subr.bf16.mxu0 %v7415_v31  ;;  %5756 = vmatprep.subr.bf16.mxu1 %v7417_v61 }
 0xbc3   :  { %5726 = vmatpush1.bf16.msra.mxu0 %v7419_v11  ;;  %5758 = vmatpush1.bf16.msra.mxu1 %v7422_v2 }
 0xbc4   :  { %5728 = vmatprep.subr.bf16.mxu0 %v7427_v34  ;;  %5760 = vmatprep.subr.bf16.mxu1 %v7429_v60 }
 0xbc7   :  { %5730 = vmatpush1.bf16.msra.mxu0 %v7431_v52  ;;  %5762 = vmatpush1.bf16.msra.mxu1 %v7434_v1 }
 0xbc8   :  { %5732 = vmatprep.subr.bf16.mxu0 %v7439_v20  ;;  %5764 = vmatprep.subr.bf16.mxu1 %v7441_v18 }
 0xbcb   :  { %5734 = vmatpush1.bf16.msra.mxu0 %v7443_v63  ;;  %5766 = vmatpush1.bf16.msra.mxu1 %v7446_v25 }
 0xbcc   :  { %5736 = vmatprep.subr.bf16.mxu0 %v7450_v54  ;;  %5768 = vmatprep.subr.bf16.mxu1 %v7453_v62 }
 0xbcf   :  { %5738 = vmatpush1.bf16.msra.mxu0 %v7455_v23  ;;  %5770 = vmatpush1.bf16.msra.mxu1 %v7458_v46 }
 0xbd0   :  { %5740 = vmatprep.subr.bf16.mxu0 %v7461_v17  ;;  %5772 = vmatprep.subr.bf16.mxu1 %v7463_v57 }
 0xbd3   :  { %5742 = vmatpush1.bf16.msra.mxu0 %v7466_v51  ;;  %5774 = vmatpush1.bf16.msra.mxu1 %v7470_v6 }
 0xbd4   :  { %5744 = vmatprep.subr.bf16.mxu0 %v7472_v21  ;;  %5776 = vmatprep.subr.bf16.mxu1 %v7475_v42 }
 0xbd7   :  { %5746 = vmatpush1.bf16.msra.mxu0 %v7478_v48  ;;  %5778 = vmatpush1.bf16.msra.mxu1 %v7482_v14 }
 0xbd8   :  { %5780 = vmatprep.subr.bf16.mxu0 %v7391_v49  ;;  %5812 = vmatprep.subr.bf16.mxu1 %v7393_v26 }
 0xc8c   :  { %v3665_v32 = vpop.f32.mrb[22].mxu0  ;;  %v3736_v59 = vpop.f32.mrb[22].mxu1 }
 0xc8d   :  { %v6009_v30 = vadd.f32 %v3665_v32, %v7283_v28  ;;  %v3667_v45 = vpop.f32.mrb[23].mxu0  ;;  %v3738_v12 = vpop.f32.mrb[23].mxu1  ;;  %v6025_v41 = vadd.f32 %v3736_v59, %v7298_v35 }
 0xc8e   :  { %v6010_v56 = vadd.f32 %v3667_v45, %v7287_v9  ;;  %v6026_v36 = vadd.f32 %v3738_v12, %v7293_v5 }
 0xc8f   :  { %v4804_v7 = vmul.f32 -1.442695, %v6009_v30 }
 0xc90   :  { %v4805_v58 = vmul.f32 -1.442695, %v6010_v56  ;;  %v4806_v19 = vmul.f32 -1.442695, %v6026_v36 }
 0xc91   :  { %6288 = vpow2.f32 %v4804_v7 }
 0xc92   :  { %6290 = vpow2.f32 %v4805_v58 }
 0xc93   :  { %6292 = vpow2.f32 %v4806_v19 }
 0xc94   :  { %6294 = vtanh.f32 %v6025_v41 }
 0xc9b   :  { %v6289_v39 = vpop.eup %6288 }
 0xc9c   :  { %v6291_v38 = vpop.eup %6290  ;;  %v3748_v22 = vadd.f32 1.0, %v6289_v39 }
 0xc9d   :  { %v3754_v16 = vadd.f32 1.0, %v6291_v38  ;;  %v6293_v55 = vpop.eup %6292 }
 0xc9e   :  { %6296 = vrcp.f32 %v3748_v22  ;;  %v6295_v3 = vpop.eup %6294  ;;  %v3761_v40 = vadd.f32 1.0, %v6293_v55 }
 0xc9f   :  { %6298 = vrcp.f32 %v3754_v16 }
 0xca0   :  { %6300 = vrcp.f32 %v3761_v40 }
 0xca8   :  { %v6297_v47 = vpop.eup %6296 }
 0xca9   :  { %v6299_v29 = vpop.eup %6298  ;;  %v3765_v4 = vmul.f32 %v6297_v47, %v6295_v3 }
 0xcaa   :  { %v3764_v15 = vmul.f32 %v6299_v29, %v7386_v24  ;;  %v6301_v53 = vpop.eup %6300 }
 0xcac   :  { %v7494_v10 = vadd.f32 %v3765_v4, %v3764_v15 }
 0xcae   :  { %6302 = vtanh.f32 %v7494_v10 }
 0xcb8   :  { %v6303_v13 = vpop.eup %6302 }
 0xcb9   :  { %v3768_v44 = vmul.f32 %v6303_v13, %v6301_v53 }
 0xcbb   :  { %3771 = vst [vmem:[#allocation14 + $0x18] sm:$0xff] %v3768_v44  ;;  %3907 = vmatmul.mubr.f32.vlgmr.msra.gmra.mrb[24].mxu0 %v3768_v44  ;;  %3978 = vmatmul.mubr.f32.vlgmr.msra.gmra.mrb[24].mxu1 %v3768_v44 }
 0xcbc   :  { %5782 = vmatpush1.bf16.msra.mxu0 %v7395_v43  ;;  %5814 = vmatpush1.bf16.msra.mxu1 %v7398_v50 }
 0xcbd   :  { %5784 = vmatprep.subr.bf16.mxu0 %v7403_v33  ;;  %5816 = vmatprep.subr.bf16.mxu1 %v7405_v37 }
 0xcbe   :  { %4149 = vmatprep.mubr.f32.mxu0 %v6519_v0  ;;  %4220 = vmatprep.mubr.f32.mxu1 %v6519_v0 }
 0xcc0   :  { %5786 = vmatpush1.bf16.msra.mxu0 %v7407_v27  ;;  %5818 = vmatpush1.bf16.msra.mxu1 %v7410_v8 }
 0xcc1   :  { %5788 = vmatprep.subr.bf16.mxu0 %v7415_v31  ;;  %5820 = vmatprep.subr.bf16.mxu1 %v7417_v61 }
 0xcc4   :  { %5790 = vmatpush1.bf16.msra.mxu0 %v7419_v11  ;;  %5822 = vmatpush1.bf16.msra.mxu1 %v7422_v2 }
 0xcc5   :  { %5792 = vmatprep.subr.bf16.mxu0 %v7427_v34  ;;  %5824 = vmatprep.subr.bf16.mxu1 %v7429_v60 }
 0xcc8   :  { %5794 = vmatpush1.bf16.msra.mxu0 %v7431_v52  ;;  %5826 = vmatpush1.bf16.msra.mxu1 %v7434_v1 }
 0xcc9   :  { %5796 = vmatprep.subr.bf16.mxu0 %v7439_v20  ;;  %5828 = vmatprep.subr.bf16.mxu1 %v7441_v18 }
 0xccc   :  { %5798 = vmatpush1.bf16.msra.mxu0 %v7443_v63  ;;  %5830 = vmatpush1.bf16.msra.mxu1 %v7446_v25 }
 0xccd   :  { %5800 = vmatprep.subr.bf16.mxu0 %v7450_v54  ;;  %5832 = vmatprep.subr.bf16.mxu1 %v7453_v62 }
 0xcd0   :  { %5802 = vmatpush1.bf16.msra.mxu0 %v7455_v23  ;;  %5834 = vmatpush1.bf16.msra.mxu1 %v7458_v46 }
 0xcd1   :  { %5804 = vmatprep.subr.bf16.mxu0 %v7461_v17  ;;  %5836 = vmatprep.subr.bf16.mxu1 %v7463_v57 }
 0xcd4   :  { %5806 = vmatpush1.bf16.msra.mxu0 %v7466_v51  ;;  %5838 = vmatpush1.bf16.msra.mxu1 %v7470_v6 }
 0xcd5   :  { %5808 = vmatprep.subr.bf16.mxu0 %v7472_v21  ;;  %5840 = vmatprep.subr.bf16.mxu1 %v7475_v42 }
 0xcd8   :  { %5810 = vmatpush1.bf16.msra.mxu0 %v7478_v48  ;;  %5842 = vmatpush1.bf16.msra.mxu1 %v7482_v14 }
 0xcd9   :  { %5844 = vmatprep.subr.bf16.mxu0 %v7391_v49  ;;  %5876 = vmatprep.subr.bf16.mxu1 %v7393_v26 }
 0xd8e   :  { %v3908_v24 = vpop.f32.mrb[24].mxu0  ;;  %v3979_v32 = vpop.f32.mrb[24].mxu1 }
 0xd8f   :  { %v6011_v59 = vadd.f32 %v3908_v24, %v7283_v28  ;;  %v3910_v30 = vpop.f32.mrb[25].mxu0  ;;  %v3981_v45 = vpop.f32.mrb[25].mxu1  ;;  %v6027_v19 = vadd.f32 %v3979_v32, %v7298_v35 }
 0xd90   :  { %v6012_v12 = vadd.f32 %v3910_v30, %v7287_v9  ;;  %v6028_v58 = vadd.f32 %v3981_v45, %v7293_v5 }
 0xd91   :  { %v4807_v56 = vmul.f32 -1.442695, %v6011_v59 }
 0xd92   :  { %v4808_v7 = vmul.f32 -1.442695, %v6012_v12  ;;  %v4809_v36 = vmul.f32 -1.442695, %v6028_v58 }
 0xd93   :  { %6304 = vpow2.f32 %v4807_v56 }
 0xd94   :  { %6306 = vpow2.f32 %v4808_v7 }
 0xd95   :  { %6308 = vpow2.f32 %v4809_v36 }
 0xd96   :  { %6310 = vtanh.f32 %v6027_v19 }
 0xd9d   :  { %v6305_v41 = vpop.eup %6304 }
 0xd9e   :  { %v6307_v39 = vpop.eup %6306  ;;  %v3991_v38 = vadd.f32 1.0, %v6305_v41 }
 0xd9f   :  { %v3997_v22 = vadd.f32 1.0, %v6307_v39  ;;  %v6309_v16 = vpop.eup %6308 }
 0xda0   :  { %6312 = vrcp.f32 %v3991_v38  ;;  %v6311_v55 = vpop.eup %6310  ;;  %v4004_v4 = vadd.f32 1.0, %v6309_v16 }
 0xda1   :  { %6314 = vrcp.f32 %v3997_v22 }
 0xda2   :  { %6316 = vrcp.f32 %v4004_v4 }
 0xdaa   :  { %v6313_v3 = vpop.eup %6312 }
 0xdab   :  { %v6315_v47 = vpop.eup %6314  ;;  %v4008_v29 = vmul.f32 %v6313_v3, %v6311_v55 }
 0xdac   :  { %v4007_v40 = vmul.f32 %v6315_v47, %v7494_v10  ;;  %v6317_v53 = vpop.eup %6316 }
 0xdae   :  { %v7536_v15 = vadd.f32 %v4008_v29, %v4007_v40 }
 0xdb0   :  { %6318 = vtanh.f32 %v7536_v15 }
 0xdba   :  { %v6319_v13 = vpop.eup %6318 }
 0xdbb   :  { %v4011_v44 = vmul.f32 %v6319_v13, %v6317_v53 }
 0xdbd   :  { %4014 = vst [vmem:[#allocation14 + $0x20] sm:$0xff] %v4011_v44  ;;  %4150 = vmatmul.mubr.f32.vlgmr.msra.gmra.mrb[26].mxu0 %v4011_v44  ;;  %4221 = vmatmul.mubr.f32.vlgmr.msra.gmra.mrb[26].mxu1 %v4011_v44 }
 0xdbe   :  { %5846 = vmatpush1.bf16.msra.mxu0 %v7395_v43  ;;  %5878 = vmatpush1.bf16.msra.mxu1 %v7398_v50 }
 0xdbf   :  { %5848 = vmatprep.subr.bf16.mxu0 %v7403_v33  ;;  %5880 = vmatprep.subr.bf16.mxu1 %v7405_v37 }
 0xdc0   :  { %4392 = vmatprep.mubr.f32.mxu0 %v6519_v0  ;;  %4463 = vmatprep.mubr.f32.mxu1 %v6519_v0 }
 0xdc2   :  { %5850 = vmatpush1.bf16.msra.mxu0 %v7407_v27  ;;  %5882 = vmatpush1.bf16.msra.mxu1 %v7410_v8 }
 0xdc3   :  { %5852 = vmatprep.subr.bf16.mxu0 %v7415_v31  ;;  %5884 = vmatprep.subr.bf16.mxu1 %v7417_v61 }
 0xdc6   :  { %5854 = vmatpush1.bf16.msra.mxu0 %v7419_v11  ;;  %5886 = vmatpush1.bf16.msra.mxu1 %v7422_v2 }
 0xdc7   :  { %5856 = vmatprep.subr.bf16.mxu0 %v7427_v34  ;;  %5888 = vmatprep.subr.bf16.mxu1 %v7429_v60 }
 0xdca   :  { %5858 = vmatpush1.bf16.msra.mxu0 %v7431_v52  ;;  %5890 = vmatpush1.bf16.msra.mxu1 %v7434_v1 }
 0xdcb   :  { %5860 = vmatprep.subr.bf16.mxu0 %v7439_v20  ;;  %5892 = vmatprep.subr.bf16.mxu1 %v7441_v18 }
 0xdce   :  { %5862 = vmatpush1.bf16.msra.mxu0 %v7443_v63  ;;  %5894 = vmatpush1.bf16.msra.mxu1 %v7446_v25 }
 0xdcf   :  { %5864 = vmatprep.subr.bf16.mxu0 %v7450_v54  ;;  %5896 = vmatprep.subr.bf16.mxu1 %v7453_v62 }
 0xdd2   :  { %5866 = vmatpush1.bf16.msra.mxu0 %v7455_v23  ;;  %5898 = vmatpush1.bf16.msra.mxu1 %v7458_v46 }
 0xdd3   :  { %5868 = vmatprep.subr.bf16.mxu0 %v7461_v17  ;;  %5900 = vmatprep.subr.bf16.mxu1 %v7463_v57 }
 0xdd6   :  { %5870 = vmatpush1.bf16.msra.mxu0 %v7466_v51  ;;  %5902 = vmatpush1.bf16.msra.mxu1 %v7470_v6 }
 0xdd7   :  { %5872 = vmatprep.subr.bf16.mxu0 %v7472_v21  ;;  %5904 = vmatprep.subr.bf16.mxu1 %v7475_v42 }
 0xdda   :  { %5874 = vmatpush1.bf16.msra.mxu0 %v7478_v48  ;;  %5906 = vmatpush1.bf16.msra.mxu1 %v7482_v14 }
 0xddb   :  { %5908 = vmatprep.subr.bf16.mxu0 %v7391_v49  ;;  %5940 = vmatprep.subr.bf16.mxu1 %v7393_v26 }
 0xe90   :  { %v4151_v10 = vpop.f32.mrb[26].mxu0  ;;  %v4222_v24 = vpop.f32.mrb[26].mxu1 }
 0xe91   :  { %v6013_v32 = vadd.f32 %v4151_v10, %v7283_v28  ;;  %v4153_v59 = vpop.f32.mrb[27].mxu0  ;;  %v4224_v30 = vpop.f32.mrb[27].mxu1  ;;  %v6029_v36 = vadd.f32 %v4222_v24, %v7298_v35 }
 0xe92   :  { %v6014_v45 = vadd.f32 %v4153_v59, %v7287_v9  ;;  %v6030_v7 = vadd.f32 %v4224_v30, %v7293_v5 }
 0xe93   :  { %v4810_v12 = vmul.f32 -1.442695, %v6013_v32 }
 0xe94   :  { %v4811_v56 = vmul.f32 -1.442695, %v6014_v45  ;;  %v4812_v58 = vmul.f32 -1.442695, %v6030_v7 }
 0xe95   :  { %6320 = vpow2.f32 %v4810_v12 }
 0xe96   :  { %6322 = vpow2.f32 %v4811_v56 }
 0xe97   :  { %6324 = vpow2.f32 %v4812_v58 }
 0xe98   :  { %6326 = vtanh.f32 %v6029_v36 }
 0xe9f   :  { %v6321_v49 = vpop.eup %6320 }
 0xea0   :  { %v6323_v19 = vpop.eup %6322  ;;  %v4234_v26 = vadd.f32 1.0, %v6321_v49 }
 0xea1   :  { %v4240_v41 = vadd.f32 1.0, %v6323_v19  ;;  %v6325_v39 = vpop.eup %6324 }
 0xea2   :  { %6328 = vrcp.f32 %v4234_v26  ;;  %v6327_v38 = vpop.eup %6326  ;;  %v4247_v3 = vadd.f32 1.0, %v6325_v39 }
 0xea3   :  { %6330 = vrcp.f32 %v4240_v41 }
 0xea4   :  { %6332 = vrcp.f32 %v4247_v3 }
 0xeac   :  { %v6329_v22 = vpop.eup %6328 }
 0xead   :  { %v6331_v16 = vpop.eup %6330  ;;  %v4251_v55 = vmul.f32 %v6329_v22, %v6327_v38 }
 0xeae   :  { %v4250_v47 = vmul.f32 %v6331_v16, %v7536_v15  ;;  %v6333_v4 = vpop.eup %6332 }
 0xeb0   :  { %v7578_v29 = vadd.f32 %v4251_v55, %v4250_v47 }
 0xeb2   :  { %6334 = vtanh.f32 %v7578_v29 }
 0xebc   :  { %v6335_v40 = vpop.eup %6334 }
 0xebd   :  { %v4254_v53 = vmul.f32 %v6335_v40, %v6333_v4 }
 0xebf   :  { %4257 = vst [vmem:[#allocation14 + $0x28] sm:$0xff] %v4254_v53  ;;  %4393 = vmatmul.mubr.f32.vlgmr.msra.gmra.mrb[28].mxu0 %v4254_v53  ;;  %4464 = vmatmul.mubr.f32.vlgmr.msra.gmra.mrb[28].mxu1 %v4254_v53 }
 0xec0   :  { %5910 = vmatpush1.bf16.msra.mxu0 %v7395_v43  ;;  %5942 = vmatpush1.bf16.msra.mxu1 %v7398_v50 }
 0xec1   :  { %5912 = vmatprep.subr.bf16.mxu0 %v7403_v33  ;;  %5944 = vmatprep.subr.bf16.mxu1 %v7405_v37 }
 0xec2   :  { %4635 = vmatprep.mubr.f32.mxu0 %v6519_v0  ;;  %4706 = vmatprep.mubr.f32.mxu1 %v6519_v0 }
 0xec4   :  { %5914 = vmatpush1.bf16.msra.mxu0 %v7407_v27  ;;  %5946 = vmatpush1.bf16.msra.mxu1 %v7410_v8 }
 0xec5   :  { %5916 = vmatprep.subr.bf16.mxu0 %v7415_v31  ;;  %5948 = vmatprep.subr.bf16.mxu1 %v7417_v61 }
 0xec8   :  { %5918 = vmatpush1.bf16.msra.mxu0 %v7419_v11  ;;  %5950 = vmatpush1.bf16.msra.mxu1 %v7422_v2 }
 0xec9   :  { %5920 = vmatprep.subr.bf16.mxu0 %v7427_v34  ;;  %5952 = vmatprep.subr.bf16.mxu1 %v7429_v60 }
 0xecc   :  { %5922 = vmatpush1.bf16.msra.mxu0 %v7431_v52  ;;  %5954 = vmatpush1.bf16.msra.mxu1 %v7434_v1 }
 0xecd   :  { %5924 = vmatprep.subr.bf16.mxu0 %v7439_v20  ;;  %5956 = vmatprep.subr.bf16.mxu1 %v7441_v18 }
 0xed0   :  { %5926 = vmatpush1.bf16.msra.mxu0 %v7443_v63  ;;  %5958 = vmatpush1.bf16.msra.mxu1 %v7446_v25 }
 0xed1   :  { %5928 = vmatprep.subr.bf16.mxu0 %v7450_v54  ;;  %5960 = vmatprep.subr.bf16.mxu1 %v7453_v62 }
 0xed4   :  { %5930 = vmatpush1.bf16.msra.mxu0 %v7455_v23  ;;  %5962 = vmatpush1.bf16.msra.mxu1 %v7458_v46 }
 0xed5   :  { %5932 = vmatprep.subr.bf16.mxu0 %v7461_v17  ;;  %5964 = vmatprep.subr.bf16.mxu1 %v7463_v57 }
 0xed8   :  { %5934 = vmatpush1.bf16.msra.mxu0 %v7466_v51  ;;  %5966 = vmatpush1.bf16.msra.mxu1 %v7470_v6 }
 0xed9   :  { %5936 = vmatprep.subr.bf16.mxu0 %v7472_v21  ;;  %5968 = vmatprep.subr.bf16.mxu1 %v7475_v42 }
 0xedc   :  { %5938 = vmatpush1.bf16.msra.mxu0 %v7478_v48  ;;  %5970 = vmatpush1.bf16.msra.mxu1 %v7482_v14 }
 0xf92   :  { %v4394_v0 = vpop.f32.mrb[28].mxu0  ;;  %v4465_v43 = vpop.f32.mrb[28].mxu1 }
 0xf93   :  { %v6015_v50 = vadd.f32 %v4394_v0, %v7283_v28  ;;  %v4396_v33 = vpop.f32.mrb[29].mxu0  ;;  %v4467_v37 = vpop.f32.mrb[29].mxu1  ;;  %v6031_v2 = vadd.f32 %v4465_v43, %v7298_v35 }
 0xf94   :  { %v6016_v27 = vadd.f32 %v4396_v33, %v7287_v9  ;;  %v6032_v61 = vadd.f32 %v4467_v37, %v7293_v5 }
 0xf95   :  { %v4813_v8 = vmul.f32 -1.442695, %v6015_v50 }
 0xf96   :  { %v4814_v31 = vmul.f32 -1.442695, %v6016_v27  ;;  %v4815_v11 = vmul.f32 -1.442695, %v6032_v61 }
 0xf97   :  { %6336 = vpow2.f32 %v4813_v8 }
 0xf98   :  { %6338 = vpow2.f32 %v4814_v31 }
 0xf99   :  { %6340 = vpow2.f32 %v4815_v11 }
 0xf9a   :  { %6342 = vtanh.f32 %v6031_v2 }
 0xfa1   :  { %v6337_v34 = vpop.eup %6336 }
 0xfa2   :  { %v6339_v60 = vpop.eup %6338  ;;  %v4477_v52 = vadd.f32 1.0, %v6337_v34 }
 0xfa3   :  { %v4483_v1 = vadd.f32 1.0, %v6339_v60  ;;  %v6341_v20 = vpop.eup %6340 }
 0xfa4   :  { %6344 = vrcp.f32 %v4477_v52  ;;  %v6343_v18 = vpop.eup %6342  ;;  %v4490_v62 = vadd.f32 1.0, %v6341_v20 }
 0xfa5   :  { %6346 = vrcp.f32 %v4483_v1 }
 0xfa6   :  { %6348 = vrcp.f32 %v4490_v62 }
 0xfae   :  { %v6345_v63 = vpop.eup %6344 }
 0xfaf   :  { %v6347_v25 = vpop.eup %6346  ;;  %v4494_v54 = vmul.f32 %v6345_v63, %v6343_v18 }
 0xfb0   :  { %v4493_v23 = vmul.f32 %v6347_v25, %v7578_v29  ;;  %v6349_v17 = vpop.eup %6348 }
 0xfb2   :  { %v4495_v46 = vadd.f32 %v4494_v54, %v4493_v23 }
 0xfb4   :  { %6350 = vtanh.f32 %v4495_v46 }
 0xfbe   :  { %v6351_v57 = vpop.eup %6350 }
 0xfbf   :  { %v4497_v51 = vmul.f32 %v6351_v57, %v6349_v17 }
 0xfc1   :  { %4500 = vst [vmem:[#allocation14 + $0x30] sm:$0xff] %v4497_v51  ;;  %4636 = vmatmul.mubr.f32.vlgmr.msra.gmra.mrb[30].mxu0 %v4497_v51  ;;  %4707 = vmatmul.mubr.f32.vlgmr.msra.gmra.mrb[30].mxu1 %v4497_v51 }
0x1094   :  { %v4637_v6 = vpop.f32.mrb[30].mxu0  ;;  %v4708_v21 = vpop.f32.mrb[30].mxu1 }
0x1095   :  { %v6017_v42 = vadd.f32 %v4637_v6, %v7283_v28  ;;  %v4639_v48 = vpop.f32.mrb[31].mxu0  ;;  %v4710_v14 = vpop.f32.mrb[31].mxu1  ;;  %v6033_v32 = vadd.f32 %v4708_v21, %v7298_v35 }
0x1096   :  { %v6018_v15 = vadd.f32 %v4639_v48, %v7287_v9  ;;  %v6034_v10 = vadd.f32 %v4710_v14, %v7293_v5 }
0x1097   :  { %v4816_v13 = vmul.f32 -1.442695, %v6017_v42 }
0x1098   :  { %v4817_v44 = vmul.f32 -1.442695, %v6018_v15  ;;  %v4818_v24 = vmul.f32 -1.442695, %v6034_v10 }
0x1099   :  { %6352 = vpow2.f32 %v4816_v13 }
0x109a   :  { %6354 = vpow2.f32 %v4817_v44 }
0x109b   :  { %6356 = vpow2.f32 %v4818_v24 }
0x109c   :  { %6358 = vtanh.f32 %v6033_v32 }
0x10a3   :  { %v6353_v59 = vpop.eup %6352 }
0x10a4   :  { %v6355_v30 = vpop.eup %6354  ;;  %v4720_v45 = vadd.f32 1.0, %v6353_v59 }
0x10a5   :  { %v4726_v12 = vadd.f32 1.0, %v6355_v30  ;;  %v6357_v28 = vpop.eup %6356 }
0x10a6   :  { %6360 = vrcp.f32 %v4720_v45  ;;  %v6359_v56 = vpop.eup %6358  ;;  %v4733_v36 = vadd.f32 1.0, %v6357_v28 }
0x10a7   :  { %6362 = vrcp.f32 %v4726_v12 }
0x10a8   :  { %6364 = vrcp.f32 %v4733_v36 }
0x10b0   :  { %v6361_v9 = vpop.eup %6360 }
0x10b1   :  { %v6363_v7 = vpop.eup %6362  ;;  %v4737_v58 = vmul.f32 %v6361_v9, %v6359_v56 }
0x10b2   :  { %v4736_v49 = vmul.f32 %v6363_v7, %v4495_v46  ;;  %v6365_v5 = vpop.eup %6364 }
0x10b4   :  { %v4738_v19 = vadd.f32 %v4737_v58, %v4736_v49 }
0x10b6   :  { %6366 = vtanh.f32 %v4738_v19 }
0x10c0   :  { %v6367_v35 = vpop.eup %6366 }
0x10c1   :  { %v4740_v26 = vmul.f32 %v6367_v35, %v6365_v5 }
0x10c3   :  { %4743 = vst [vmem:[#allocation14 + $0x38] sm:$0xff] %v4740_v26 }
0x10c4   :  { %6489 = shalt.err (!%p6486_p2)
}
0x10c5   :  { %s6490_s20 = scalar_lea.hbm %s7643_s6, 1024 }
0x10c6   :  { %p6491_p3 = scmp.ne.s32.totalorder %s7643_s6, %s6490_s20  ;;  %p6494_p4 = scmp.lt.u32.totalorder %s6490_s20, %s7643_s6 }
0x10c8   :  { %p6496_p5 = pnand %p6494_p4, %p6491_p3 }
0x10ca   :  { %6499 = shalt.err (!%p6496_p5)
}
0x10cb   :  { %4755 = dma.vmem_to_hbm [thread:$0]  %s4750_s16, 1024, %s7643_s6, [#allocation7], %s6515_s3, %s6515_s3, %s6516_s12  }
0x10cc   :  { %6506 = dma.done.wait [#allocation7], 1024  }
0x10cd   :  { %6507 = vsyncadd [#allocation7], 4294966272 }
0x10ce   :  { %4759 = vsyncpa [#allocation6], 1 }
0x10cf   :  { %4760 = vsyncpa [#allocation9], 1 }
0x10d0   :  { %4761 = vsyncpa [#allocation12], 1 }
0x10d1   :  { %4762 = vsyncpa [#allocation7], 1 }

</bundles_post_ra>
